<compile_context>
chip_gen: v5e
topology: v5e:2x2
jax: 0.10.0
libtpu: 0.0.40
codegen_flags: <defaults>
</compile_context>

<pallas_src>
import functools

import jax
import jax.numpy as jnp
from jax import lax
from jax.experimental import pallas as pl
from jax.experimental.pallas import tpu as pltpu


# ---------------------------------------------------------------------------
# parameter-slab packing helpers (wrapper side; offsets are static ints)
# ---------------------------------------------------------------------------
def _pack_row_slab(items):
    """Stack 2-D arrays (lanes <= 128) along sublanes into one (R, 128) slab.

    Each item's row offset is 8-aligned so in-kernel slices stay tile-aligned.
    Returns (slab, {name: (row, rows, cols)}).
    """
    offs, chunks, r = {}, [], 0
    for name, a in items:
        a = jnp.asarray(a, jnp.float32)
        h, w = a.shape
        assert w <= 128, f"{name}: lane width {w} > 128"
        pad = (-r) % 8
        if pad:
            chunks.append(jnp.zeros((pad, 128), jnp.float32))
            r += pad
        offs[name] = (r, h, w)
        chunks.append(jnp.pad(a, ((0, 0), (0, 128 - w))))
        r += h
    slab = jnp.concatenate(chunks, axis=0)
    pad = (-slab.shape[0]) % 8
    if pad:
        slab = jnp.pad(slab, ((0, pad), (0, 0)))
    return slab, offs


def _pack_col_slab(items):
    """Pack (h, 1) bias/gain columns side by side along lanes.

    Returns (slab (Rmax, n_items), {name: (col, rows)}).
    """
    rmax = max(int(a.shape[0]) for _, a in items)
    rmax = ((rmax + 7) // 8) * 8
    offs, cols = {}, []
    for j, (name, a) in enumerate(items):
        a = jnp.asarray(a, jnp.float32).reshape(-1, 1)
        offs[name] = (j, int(a.shape[0]))
        cols.append(jnp.pad(a, ((0, rmax - a.shape[0]), (0, 0))))
    return jnp.concatenate(cols, axis=1), offs


# ---------------------------------------------------------------------------
# fused kernel: one grid step == Bt lane-packed images
# ---------------------------------------------------------------------------
def _fused_forward_kernel(x_ref, m_ref, cb_ref, cbt_ref, w_ref, b_ref,
                          out_ref, zq_ref, z_ref, *, H, W, w_offs, b_offs):
    f32 = jnp.float32
    bf16 = jnp.bfloat16
    HW = H * W
    L = x_ref.shape[2]          # Bt * HW lanes
    Bt = L // HW

    def Wm(name):               # matrix from the (rows, 128) weight slab
        r, h, w = w_offs[name]
        return w_ref[r:r + h, 0:w]

    def Bv(name):               # (C, 1) column from the bias slab
        j, h = b_offs[name]
        return b_ref[0:h, j:j + 1]

    offs = [dy * W + dx for dy in (-1, 0, 1) for dx in (-1, 0, 1)]

    def tap(x, t):
        # neighbour value at tap t (zero padding via precomputed per-image mask)
        off = offs[t]
        if off == 0:
            return x                                   # center tap: mask is all-ones
        r = pltpu.roll(x, (-off) % L, axis=1)
        return r * m_ref[t:t + 1, :]

    def gelu(v):
        # TODO(synk): torch nn.GELU() is erf-exact; tanh form (~1e-3) keeps it on EUP.
        return 0.5 * v * (1.0 + jnp.tanh(0.7978845608028654 *
                                         (v + 0.044715 * v * v * v)))

    def sigmoid(v):
        # exp on EUP + approx reciprocal on EUP (frees VALU slots).
        return pl.reciprocal(1.0 + jnp.exp(-v), approx=True)

    def mm(a, b):
        # native bf16 MXU path, f32 accumulate.
        return jnp.dot(a.astype(bf16), b.astype(bf16), preferred_element_type=f32)

    def layernorm(v, g, b, eps=1e-6):
        # LayerNorm over the channel axis (axis 0 here), biased variance.
        mu = jnp.mean(v, axis=0, keepdims=True)
        vc = v - mu
        var = jnp.mean(vc * vc, axis=0, keepdims=True)
        return vc * lax.rsqrt(var + eps) * g + b

    # ---- intro 3x3 conv fused with quant_conv (Cin==1 => VPU broadcast MAC)
    x_img = x_ref[0].astype(f32)                       # (Cin, L)
    Cin = x_img.shape[0]
    w_in = Wm("intro_w")                               # (width, Cin*9) folded weights
    width = w_in.shape[0]
    z = jnp.zeros((width, L), f32)
    for ci in range(Cin):
        xc = x_img[ci:ci + 1, :]
        for t in range(9):
            z = z + w_in[:, ci * 9 + t:ci * 9 + t + 1] * tap(xc, t)
    z = z + Bv("intro_b")
    z_ref[0] = z

    # ---- codebook: nearest-neighbour VQ (kept in f32 for exact argmin) -----
    # TODO(synk): Codebook_choose source not provided; standard VQ-GAN L2
    # argmin mapping implemented; unused indices/probabilities not materialized.
    cb = cb_ref[:, 0:width]                            # (K, width)
    e2 = cb_ref[:, width:width + 1]                    # (K, 1) precomputed ||e||^2
    cross = jnp.dot(cb, z, preferred_element_type=f32) # (K, L)
    d = e2 - 2.0 * cross                               # ||z||^2 const per column
    K = d.shape[0]
    dmin = jnp.min(d, axis=0, keepdims=True)
    kio = lax.broadcasted_iota(jnp.int32, d.shape, 0).astype(f32)
    idx = jnp.min(jnp.where(d <= dmin, kio, float(K)), axis=0, keepdims=True)
    one_hot = (kio == idx).astype(f32)                 # first-argmin tie-break
    z_q = jnp.dot(cbt_ref[...], one_hot, preferred_element_type=f32)
    zq_ref[0] = z_q

    # ---- post_quant_conv (1x1) ---------------------------------------------
    x0 = mm(Wm("post_w"), z_q) + Bv("post_b")          # (c, L)

    # ---- middle BaselineBlock ------------------------------------------------
    h = layernorm(x0, Bv("ln1_g"), Bv("ln1_b"))        # norm1
    h = mm(Wm("conv1_w"), h) + Bv("conv1_b")           # conv1 (1x1) -> (dw, L)
    w2 = Wm("conv2_w")                                 # depthwise 3x3 weights (dw, 9)
    acc = jnp.zeros_like(h)
    for t in range(9):
        acc = acc + w2[:, t:t + 1] * tap(h, t)
    h = gelu(acc + Bv("conv2_b"))

    # SE: per-image GAP + tiny MLP on VPU/XLU (no N=1 MXU round-trips).
    se1_wt = Wm("se1_wt")                              # (dw, dw//2)
    se1_b = Wm("se1_b_row")                            # (1, dw//2)
    se2_w = Wm("se2_w")                                # (dw, dw//2)
    se2_b = Bv("se2_b")                                # (dw, 1)
    parts = []
    for b in range(Bt):
        seg = h[:, b * HW:(b + 1) * HW]                # vreg-aligned lane slice
        pooled = jnp.mean(seg, axis=1, keepdims=True)  # (dw, 1)
        s1 = jnp.maximum(
            jnp.sum(se1_wt * pooled, axis=0, keepdims=True) + se1_b, 0.0)
        gate = sigmoid(jnp.sum(se2_w * s1, axis=1, keepdims=True) + se2_b)
        parts.append(seg * gate)
    h = jnp.concatenate(parts, axis=1) if Bt > 1 else parts[0]

    h = mm(Wm("conv3_w"), h) + Bv("conv3_b")           # conv3 (1x1) -> (c, L)
    y = x0 + h * Bv("beta")                            # dropout1 == identity

    g = layernorm(y, Bv("ln2_g"), Bv("ln2_b"))         # norm2
    g = gelu(mm(Wm("conv4_w"), g) + Bv("conv4_b"))     # conv4 + GELU -> (ffn, L)
    g = mm(Wm("conv5_w"), g) + Bv("conv5_b")           # conv5 -> (c, L)
    blk = y + g * Bv("gamma")                          # dropout2 == identity

    # ---- decoder ending: 3x3 conv (width -> Cout) + sigmoid -----------------
    # Taps are computed inside the loop (not pre-materialized) to avoid spills.
    c = blk.shape[0]
    end_w = Wm("end_w")                                # (Cout*c, 9)
    end_b = Bv("end_b")                                # (Cout, 1)
    Cout = end_b.shape[0]
    accs = [jnp.zeros((c, L), f32) for _ in range(Cout)]
    for t in range(9):
        sh_t = tap(blk, t)
        for co in range(Cout):
            accs[co] = accs[co] + end_w[co * c:(co + 1) * c, t:t + 1] * sh_t
    for co in range(Cout):
        row = jnp.sum(accs[co], axis=0, keepdims=True) + end_b[co:co + 1, :]
        out_ref[0, co:co + 1, :] = sigmoid(row)


# ---------------------------------------------------------------------------
# wrapper
# ---------------------------------------------------------------------------
def vqformer_enhancer_forward(params, inp_nchw, padder_size=1):
    """forward(inp, train_feat=False) -> (out[:, :, :H, :W], z_q, z), all NCHW."""
    f32 = jnp.float32
    B, Cin, H, W = inp_nchw.shape
    mod_h = (padder_size - H % padder_size) % padder_size
    mod_w = (padder_size - W % padder_size) % padder_size
    xp = jnp.pad(inp_nchw.astype(f32), ((0, 0), (0, 0), (0, mod_h), (0, mod_w)))
    Hp, Wp = H + mod_h, W + mod_w
    HW = Hp * Wp

    # --- batch lane-packing: Bt images per grid step, keep >= 2 steps (v7x).
    Bt = min(4, max(1, -(-B // 2)))
    G = -(-B // Bt)
    Bpad = G * Bt
    if Bpad != B:
        xp = jnp.pad(xp, ((0, Bpad - B), (0, 0), (0, 0), (0, 0)))
    L = Bt * HW
    x_pack = (xp.reshape(G, Bt, Cin, HW)
                .transpose(0, 2, 1, 3)
                .reshape(G, Cin, L))

    # --- parameter prep -------------------------------------------------------
    flat = dict(params)
    flat.update(flat.pop("middle_blk"))

    qw = flat["quant_w"].astype(f32)
    qb = flat["quant_b"].astype(f32)
    # Fold quant_conv (1x1) into the intro 3x3 conv (exact, no nonlinearity between).
    intro_fold_w = qw @ flat["intro_w"].astype(f32)          # (width, Cin*9)
    intro_fold_b = qw @ flat["intro_b"].astype(f32) + qb     # (width, 1)

    cb = flat["codebook"].astype(f32)                        # (K, width)
    cb_slab = jnp.concatenate([cb, jnp.sum(cb * cb, axis=1, keepdims=True)], axis=1)
    cbt = cb.T                                               # (width, K)

    width = intro_fold_w.shape[0]
    Cout = flat["end_b"].shape[0]

    w_slab, w_offs = _pack_row_slab([
        ("intro_w", intro_fold_w),
        ("post_w", flat["post_w"]),
        ("conv1_w", flat["conv1_w"]),
        ("conv2_w", flat["conv2_w"]),
        ("se1_wt", flat["se1_w"].T),                         # pre-transposed for VPU SE
        ("se1_b_row", flat["se1_b"].reshape(1, -1)),
        ("se2_w", flat["se2_w"]),
        ("conv3_w", flat["conv3_w"]),
        ("conv4_w", flat["conv4_w"]),
        ("conv5_w", flat["conv5_w"]),
        ("end_w", flat["end_w"]),
    ])
    b_slab, b_offs = _pack_col_slab([
        ("intro_b", intro_fold_b),
        ("post_b", flat["post_b"]),
        ("ln1_g", flat["ln1_g"]), ("ln1_b", flat["ln1_b"]),
        ("conv1_b", flat["conv1_b"]), ("conv2_b", flat["conv2_b"]),
        ("se2_b", flat["se2_b"]),
        ("conv3_b", flat["conv3_b"]), ("beta", flat["beta"]),
        ("ln2_g", flat["ln2_g"]), ("ln2_b", flat["ln2_b"]),
        ("conv4_b", flat["conv4_b"]), ("conv5_b", flat["conv5_b"]),
        ("gamma", flat["gamma"]),
        ("end_b", flat["end_b"]),
    ])

    # --- precomputed per-image border masks for the 3x3 taps ------------------
    pos = jnp.arange(L, dtype=jnp.int32) % HW
    hh = pos // Wp
    ww = pos % Wp
    mrows = []
    for dy in (-1, 0, 1):
        for dx in (-1, 0, 1):
            m = ((hh + dy >= 0) & (hh + dy < Hp) & (ww + dx >= 0) & (ww + dx < Wp))
            mrows.append(m.astype(f32))
    masks = jnp.stack(mrows, axis=0)                          # (9, L)

    # --- pallas_call -----------------------------------------------------------
    def _const_spec(a):
        zeros = (0,) * a.ndim
        return pl.BlockSpec(a.shape, lambda g, _z=zeros: _z)

    in_specs = [pl.BlockSpec((1, Cin, L), lambda g: (g, 0, 0)),
                _const_spec(masks), _const_spec(cb_slab), _const_spec(cbt),
                _const_spec(w_slab), _const_spec(b_slab)]
    out_specs = (
        pl.BlockSpec((1, Cout, L), lambda g: (g, 0, 0)),
        pl.BlockSpec((1, width, L), lambda g: (g, 0, 0)),
        pl.BlockSpec((1, width, L), lambda g: (g, 0, 0)),
    )
    out_shape = (
        jax.ShapeDtypeStruct((G, Cout, L), f32),
        jax.ShapeDtypeStruct((G, width, L), f32),
        jax.ShapeDtypeStruct((G, width, L), f32),
    )

    out, z_q, z = pl.pallas_call(
        functools.partial(_fused_forward_kernel, H=Hp, W=Wp,
                          w_offs=w_offs, b_offs=b_offs),
        out_shape=out_shape,
        grid=(G,),
        in_specs=in_specs,
        out_specs=out_specs,
        # >= 2 independent grid steps -> both TensorCores on v7x; no-op on v5e/v6e.
        compiler_params=pltpu.CompilerParams(dimension_semantics=("parallel",)),
    )(x_pack, masks, cb_slab, cbt, w_slab, b_slab)

    # --- unpack lane-packed outputs back to NCHW (tens of KiB; negligible) -----
    def unpack(a, C):
        a = a.reshape(G, C, Bt, HW).transpose(0, 2, 1, 3).reshape(Bpad, C, Hp, Wp)
        return a[:B]

    out_nchw = unpack(out, Cout)[:, :, :H, :W]
    z_q_nchw = unpack(z_q, width)
    z_nchw = unpack(z, width)
    return out_nchw, z_q_nchw, z_nchw


# ---------------------------------------------------------------------------
# parameters (kernel-native layouts; 1x1-conv weights are the torch
# (Cout, Cin) weights, 3x3 weights are torch weights reshaped to (Cout[*Cin], 9))
# ---------------------------------------------------------------------------
def init_params(key, img_channel=1, width=16, dw_expand=1, ffn_expand=2,
                num_codebook=64):
    c = width
    dw = c * dw_expand
    ffn = c * ffn_expand
    ks = iter(jax.random.split(key, 64))

    def nrm(shape, scale=0.05):
        return (scale * jax.random.normal(next(ks), shape)).astype(jnp.float32)

    return {
        # EnhancerEncoder.intro : Conv2d(img_channel, width, 3, pad=1)
        "intro_w": nrm((width, img_channel * 9)), "intro_b": nrm((width, 1)),
        # quant_conv : Conv2d(latent, latent, 1)
        "quant_w": nrm((width, width)), "quant_b": nrm((width, 1)),
        # codebook embeddings
        "codebook": nrm((num_codebook, width), scale=0.5),
        # post_quant_conv
        "post_w": nrm((width, width)), "post_b": nrm((width, 1)),
        # EnhancerDecoder.ending : Conv2d(width, img_channel, 3, pad=1) + Sigmoid
        "end_w": nrm((img_channel * width, 9)), "end_b": nrm((img_channel, 1)),
        "middle_blk": {
            "ln1_g": jnp.ones((c, 1), jnp.float32),
            "ln1_b": jnp.zeros((c, 1), jnp.float32),
            "conv1_w": nrm((dw, c)), "conv1_b": nrm((dw, 1)),
            "conv2_w": nrm((dw, 9)), "conv2_b": nrm((dw, 1)),   # depthwise 3x3
            "se1_w": nrm((dw // 2, dw)), "se1_b": nrm((dw // 2, 1)),
            "se2_w": nrm((dw, dw // 2)), "se2_b": nrm((dw, 1)),
            "conv3_w": nrm((c, dw)), "conv3_b": nrm((c, 1)),
            # torch inits beta/gamma to zeros; non-zero here to exercise path
            "beta": nrm((c, 1), scale=0.1),
            "ln2_g": jnp.ones((c, 1), jnp.float32),
            "ln2_b": jnp.zeros((c, 1), jnp.float32),
            "conv4_w": nrm((ffn, c)), "conv4_b": nrm((ffn, 1)),
            "conv5_w": nrm((c, ffn)), "conv5_b": nrm((c, 1)),
            "gamma": nrm((c, 1), scale=0.1),
        },
    }


if __name__ == "__main__":
    key = jax.random.PRNGKey(0)
    pkey, xkey = jax.random.split(key)
    params = init_params(pkey)
    # B=4 -> 2 grid steps of 2 lane-packed images each.
    x = jax.random.normal(xkey, (4, 1, 16, 16), jnp.float32)   # NCHW, like torch

    fwd = jax.jit(vqformer_enhancer_forward)
    out, z_q, z = fwd(params, x)
    jax.block_until_ready((out, z_q, z))

    assert out.shape == (4, 1, 16, 16)
    assert z_q.shape == (4, 16, 16, 16) and z.shape == (4, 16, 16, 16)
    assert bool(jnp.isfinite(out).all())
    assert bool(jnp.isfinite(z_q).all()) and bool(jnp.isfinite(z).all())
    print("KERNEL_OK")
</pallas_src>

<mosaic_0001>
module attributes {stable_mosaic.version = 11 : i64} {
  func.func @_fused_forward_kernel(%arg0: i32, %arg1: memref<1x1x512xf32, #tpu.memory_space<vmem>>, %arg2: memref<9x512xf32, #tpu.memory_space<vmem>>, %arg3: memref<64x17xf32, #tpu.memory_space<vmem>>, %arg4: memref<16x64xf32, #tpu.memory_space<vmem>>, %arg5: memref<184x128xf32, #tpu.memory_space<vmem>>, %arg6: memref<32x15xf32, #tpu.memory_space<vmem>>, %arg7: memref<1x1x512xf32, #tpu.memory_space<vmem>>, %arg8: memref<1x16x512xf32, #tpu.memory_space<vmem>>, %arg9: memref<1x16x512xf32, #tpu.memory_space<vmem>>) attributes {dimension_semantics = [#tpu.dimension_semantics<parallel>], iteration_bounds = array<i64: 2>, scalar_prefetch = 0 : i64, scratch_operands = 0 : i64, tpu.core_type = #tpu.core_type<tc>, window_params = [{transform_indices = @transform_0, window_bounds = array<i64: 1, 1, 512>}, {pipeline_mode = #tpu.pipeline_mode<synchronous>, transform_indices = @transform_1, window_bounds = array<i64: 9, 512>}, {pipeline_mode = #tpu.pipeline_mode<synchronous>, transform_indices = @transform_2, window_bounds = array<i64: 64, 17>}, {pipeline_mode = #tpu.pipeline_mode<synchronous>, transform_indices = @transform_3, window_bounds = array<i64: 16, 64>}, {pipeline_mode = #tpu.pipeline_mode<synchronous>, transform_indices = @transform_4, window_bounds = array<i64: 184, 128>}, {pipeline_mode = #tpu.pipeline_mode<synchronous>, transform_indices = @transform_5, window_bounds = array<i64: 32, 15>}, {transform_indices = @transform_6, window_bounds = array<i64: 1, 1, 512>}, {transform_indices = @transform_7, window_bounds = array<i64: 1, 16, 512>}, {transform_indices = @transform_8, window_bounds = array<i64: 1, 16, 512>}]} {
    %c0 = arith.constant 0 : index
    %c0_0 = arith.constant 0 : index
    %c0_1 = arith.constant 0 : index
    %0 = vector.load %arg1[%c0, %c0_0, %c0_1] : memref<1x1x512xf32, #tpu.memory_space<vmem>>, vector<1x1x512xf32>
    %1 = vector.shape_cast %0 : vector<1x1x512xf32> to vector<1x512xf32>
    %c0_2 = arith.constant 0 : index
    %c0_3 = arith.constant 0 : index
    %2 = vector.load %arg5[%c0_2, %c0_3] : memref<184x128xf32, #tpu.memory_space<vmem>>, vector<16x9xf32>
    %cst = arith.constant 0.000000e+00 : f32
    %3 = vector.broadcast %cst : f32 to vector<16x512xf32>
    %4 = vector.extract_strided_slice %2 {offsets = [0, 0], sizes = [16, 1], strides = [1, 1]} : vector<16x9xf32> to vector<16x1xf32>
    %c17_i32 = arith.constant 17 : i32
    %5 = tpu.dynamic_rotate %1 by %c17_i32 dim 1 : vector<1x512xf32>, i32 -> vector<1x512xf32>
    %c0_4 = arith.constant 0 : index
    %c0_5 = arith.constant 0 : index
    %6 = vector.load %arg2[%c0_4, %c0_5] : memref<9x512xf32, #tpu.memory_space<vmem>>, vector<1x512xf32>
    %7 = arith.mulf %5, %6 : vector<1x512xf32>
    %8 = vector.broadcast %4 : vector<16x1xf32> to vector<16x512xf32>
    %9 = vector.broadcast %7 : vector<1x512xf32> to vector<16x512xf32>
    %10 = arith.mulf %8, %9 : vector<16x512xf32>
    %11 = arith.addf %3, %10 : vector<16x512xf32>
    %12 = vector.extract_strided_slice %2 {offsets = [0, 1], sizes = [16, 1], strides = [1, 1]} : vector<16x9xf32> to vector<16x1xf32>
    %c16_i32 = arith.constant 16 : i32
    %13 = tpu.dynamic_rotate %1 by %c16_i32 dim 1 : vector<1x512xf32>, i32 -> vector<1x512xf32>
    %c1 = arith.constant 1 : index
    %c0_6 = arith.constant 0 : index
    %14 = vector.load %arg2[%c1, %c0_6] : memref<9x512xf32, #tpu.memory_space<vmem>>, vector<1x512xf32>
    %15 = arith.mulf %13, %14 : vector<1x512xf32>
    %16 = vector.broadcast %12 : vector<16x1xf32> to vector<16x512xf32>
    %17 = vector.broadcast %15 : vector<1x512xf32> to vector<16x512xf32>
    %18 = arith.mulf %16, %17 : vector<16x512xf32>
    %19 = arith.addf %11, %18 : vector<16x512xf32>
    %20 = vector.extract_strided_slice %2 {offsets = [0, 2], sizes = [16, 1], strides = [1, 1]} : vector<16x9xf32> to vector<16x1xf32>
    %c15_i32 = arith.constant 15 : i32
    %21 = tpu.dynamic_rotate %1 by %c15_i32 dim 1 : vector<1x512xf32>, i32 -> vector<1x512xf32>
    %c2 = arith.constant 2 : index
    %c0_7 = arith.constant 0 : index
    %22 = vector.load %arg2[%c2, %c0_7] : memref<9x512xf32, #tpu.memory_space<vmem>>, vector<1x512xf32>
    %23 = arith.mulf %21, %22 : vector<1x512xf32>
    %24 = vector.broadcast %20 : vector<16x1xf32> to vector<16x512xf32>
    %25 = vector.broadcast %23 : vector<1x512xf32> to vector<16x512xf32>
    %26 = arith.mulf %24, %25 : vector<16x512xf32>
    %27 = arith.addf %19, %26 : vector<16x512xf32>
    %28 = vector.extract_strided_slice %2 {offsets = [0, 3], sizes = [16, 1], strides = [1, 1]} : vector<16x9xf32> to vector<16x1xf32>
    %c1_i32 = arith.constant 1 : i32
    %29 = tpu.dynamic_rotate %1 by %c1_i32 dim 1 : vector<1x512xf32>, i32 -> vector<1x512xf32>
    %c3 = arith.constant 3 : index
    %c0_8 = arith.constant 0 : index
    %30 = vector.load %arg2[%c3, %c0_8] : memref<9x512xf32, #tpu.memory_space<vmem>>, vector<1x512xf32>
    %31 = arith.mulf %29, %30 : vector<1x512xf32>
    %32 = vector.broadcast %28 : vector<16x1xf32> to vector<16x512xf32>
    %33 = vector.broadcast %31 : vector<1x512xf32> to vector<16x512xf32>
    %34 = arith.mulf %32, %33 : vector<16x512xf32>
    %35 = arith.addf %27, %34 : vector<16x512xf32>
    %36 = vector.extract_strided_slice %2 {offsets = [0, 4], sizes = [16, 1], strides = [1, 1]} : vector<16x9xf32> to vector<16x1xf32>
    %37 = vector.broadcast %36 : vector<16x1xf32> to vector<16x512xf32>
    %38 = vector.broadcast %1 : vector<1x512xf32> to vector<16x512xf32>
    %39 = arith.mulf %37, %38 : vector<16x512xf32>
    %40 = arith.addf %35, %39 : vector<16x512xf32>
    %41 = vector.extract_strided_slice %2 {offsets = [0, 5], sizes = [16, 1], strides = [1, 1]} : vector<16x9xf32> to vector<16x1xf32>
    %c511_i32 = arith.constant 511 : i32
    %42 = tpu.dynamic_rotate %1 by %c511_i32 dim 1 : vector<1x512xf32>, i32 -> vector<1x512xf32>
    %c5 = arith.constant 5 : index
    %c0_9 = arith.constant 0 : index
    %43 = vector.load %arg2[%c5, %c0_9] : memref<9x512xf32, #tpu.memory_space<vmem>>, vector<1x512xf32>
    %44 = arith.mulf %42, %43 : vector<1x512xf32>
    %45 = vector.broadcast %41 : vector<16x1xf32> to vector<16x512xf32>
    %46 = vector.broadcast %44 : vector<1x512xf32> to vector<16x512xf32>
    %47 = arith.mulf %45, %46 : vector<16x512xf32>
    %48 = arith.addf %40, %47 : vector<16x512xf32>
    %49 = vector.extract_strided_slice %2 {offsets = [0, 6], sizes = [16, 1], strides = [1, 1]} : vector<16x9xf32> to vector<16x1xf32>
    %c497_i32 = arith.constant 497 : i32
    %50 = tpu.dynamic_rotate %1 by %c497_i32 dim 1 : vector<1x512xf32>, i32 -> vector<1x512xf32>
    %c6 = arith.constant 6 : index
    %c0_10 = arith.constant 0 : index
    %51 = vector.load %arg2[%c6, %c0_10] : memref<9x512xf32, #tpu.memory_space<vmem>>, vector<1x512xf32>
    %52 = arith.mulf %50, %51 : vector<1x512xf32>
    %53 = vector.broadcast %49 : vector<16x1xf32> to vector<16x512xf32>
    %54 = vector.broadcast %52 : vector<1x512xf32> to vector<16x512xf32>
    %55 = arith.mulf %53, %54 : vector<16x512xf32>
    %56 = arith.addf %48, %55 : vector<16x512xf32>
    %57 = vector.extract_strided_slice %2 {offsets = [0, 7], sizes = [16, 1], strides = [1, 1]} : vector<16x9xf32> to vector<16x1xf32>
    %c496_i32 = arith.constant 496 : i32
    %58 = tpu.dynamic_rotate %1 by %c496_i32 dim 1 : vector<1x512xf32>, i32 -> vector<1x512xf32>
    %c7 = arith.constant 7 : index
    %c0_11 = arith.constant 0 : index
    %59 = vector.load %arg2[%c7, %c0_11] : memref<9x512xf32, #tpu.memory_space<vmem>>, vector<1x512xf32>
    %60 = arith.mulf %58, %59 : vector<1x512xf32>
    %61 = vector.broadcast %57 : vector<16x1xf32> to vector<16x512xf32>
    %62 = vector.broadcast %60 : vector<1x512xf32> to vector<16x512xf32>
    %63 = arith.mulf %61, %62 : vector<16x512xf32>
    %64 = arith.addf %56, %63 : vector<16x512xf32>
    %65 = vector.extract_strided_slice %2 {offsets = [0, 8], sizes = [16, 1], strides = [1, 1]} : vector<16x9xf32> to vector<16x1xf32>
    %c495_i32 = arith.constant 495 : i32
    %66 = tpu.dynamic_rotate %1 by %c495_i32 dim 1 : vector<1x512xf32>, i32 -> vector<1x512xf32>
    %c8 = arith.constant 8 : index
    %c0_12 = arith.constant 0 : index
    %67 = vector.load %arg2[%c8, %c0_12] : memref<9x512xf32, #tpu.memory_space<vmem>>, vector<1x512xf32>
    %68 = arith.mulf %66, %67 : vector<1x512xf32>
    %69 = vector.broadcast %65 : vector<16x1xf32> to vector<16x512xf32>
    %70 = vector.broadcast %68 : vector<1x512xf32> to vector<16x512xf32>
    %71 = arith.mulf %69, %70 : vector<16x512xf32>
    %72 = arith.addf %64, %71 : vector<16x512xf32>
    %c0_13 = arith.constant 0 : index
    %c0_14 = arith.constant 0 : index
    %73 = vector.load %arg6[%c0_13, %c0_14] : memref<32x15xf32, #tpu.memory_space<vmem>>, vector<16x1xf32>
    %74 = vector.broadcast %73 : vector<16x1xf32> to vector<16x512xf32>
    %75 = arith.addf %72, %74 : vector<16x512xf32>
    %c0_15 = arith.constant 0 : index
    %c0_16 = arith.constant 0 : index
    %c0_17 = arith.constant 0 : index
    %76 = vector.load %arg9[%c0_15, %c0_16, %c0_17] : memref<1x16x512xf32, #tpu.memory_space<vmem>>, vector<1x16x512xf32>
    %77 = vector.shape_cast %76 : vector<1x16x512xf32> to vector<16x512xf32>
    %78 = vector.shape_cast %75 : vector<16x512xf32> to vector<1x16x512xf32>
    tpu.vector_store %arg9[%c0_15, %c0_16, %c0_17], %78 {strides = array<i32>} : memref<1x16x512xf32, #tpu.memory_space<vmem>>, vector<1x16x512xf32>,
    %c0_18 = arith.constant 0 : index
    %c0_19 = arith.constant 0 : index
    %79 = vector.load %arg3[%c0_18, %c0_19] : memref<64x17xf32, #tpu.memory_space<vmem>>, vector<64x16xf32>
    %c0_20 = arith.constant 0 : index
    %c16 = arith.constant 16 : index
    %80 = vector.load %arg3[%c0_20, %c16] : memref<64x17xf32, #tpu.memory_space<vmem>>, vector<64x1xf32>
    %cst_21 = arith.constant dense<0.000000e+00> : vector<64x512xf32>
    %81 = tpu.matmul %79, %75, %cst_21 {dimension_numbers = #tpu.dot_dimension_numbers<[1], [0], [0], [1], [0, 0, 1, 1], [], []>} : vector<64x16xf32>, vector<16x512xf32>, vector<64x512xf32> -> vector<64x512xf32>
    %cst_22 = arith.constant 2.000000e+00 : f32
    %82 = vector.broadcast %cst_22 : f32 to vector<64x512xf32>
    %83 = arith.mulf %82, %81 : vector<64x512xf32>
    %84 = vector.broadcast %80 : vector<64x1xf32> to vector<64x512xf32>
    %85 = arith.subf %84, %83 : vector<64x512xf32>
    %cst_23 = arith.constant dense<0x7F800000> : vector<512xf32>
    %86 = vector.multi_reduction <minimumf>, %85, %cst_23 [0] : vector<64x512xf32> to vector<512xf32>
    %87 = vector.shape_cast %86 : vector<512xf32> to vector<1x512xf32>
    %88 = tpu.iota {dimensions = array<i32: 0>} : vector<64x512xi32>
    %89 = arith.sitofp %88 : vector<64x512xi32> to vector<64x512xf32>
    %90 = vector.broadcast %87 : vector<1x512xf32> to vector<64x512xf32>
    %91 = arith.cmpf ole, %85, %90 : vector<64x512xf32>
    %cst_24 = arith.constant 6.400000e+01 : f32
    %92 = vector.broadcast %cst_24 : f32 to vector<64x512xf32>
    %93 = arith.select %91, %89, %92 : vector<64x512xi1>, vector<64x512xf32>
    %cst_25 = arith.constant dense<0x7F800000> : vector<512xf32>
    %94 = vector.multi_reduction <minimumf>, %93, %cst_25 [0] : vector<64x512xf32> to vector<512xf32>
    %95 = vector.shape_cast %94 : vector<512xf32> to vector<1x512xf32>
    %96 = vector.broadcast %95 : vector<1x512xf32> to vector<64x512xf32>
    %97 = arith.cmpf oeq, %89, %96 : vector<64x512xf32>
    %98 = arith.extui %97 : vector<64x512xi1> to vector<64x512xi32>
    %99 = arith.sitofp %98 : vector<64x512xi32> to vector<64x512xf32>
    %c0_26 = arith.constant 0 : index
    %c0_27 = arith.constant 0 : index
    %100 = vector.load %arg4[%c0_26, %c0_27] : memref<16x64xf32, #tpu.memory_space<vmem>>, vector<16x64xf32>
    %cst_28 = arith.constant dense<0.000000e+00> : vector<16x512xf32>
    %101 = tpu.matmul %100, %99, %cst_28 {dimension_numbers = #tpu.dot_dimension_numbers<[1], [0], [0], [1], [0, 0, 1, 1], [], []>} : vector<16x64xf32>, vector<64x512xf32>, vector<16x512xf32> -> vector<16x512xf32>
    %c0_29 = arith.constant 0 : index
    %c0_30 = arith.constant 0 : index
    %c0_31 = arith.constant 0 : index
    %102 = vector.load %arg8[%c0_29, %c0_30, %c0_31] : memref<1x16x512xf32, #tpu.memory_space<vmem>>, vector<1x16x512xf32>
    %103 = vector.shape_cast %102 : vector<1x16x512xf32> to vector<16x512xf32>
    %104 = vector.shape_cast %101 : vector<16x512xf32> to vector<1x16x512xf32>
    tpu.vector_store %arg8[%c0_29, %c0_30, %c0_31], %104 {strides = array<i32>} : memref<1x16x512xf32, #tpu.memory_space<vmem>>, vector<1x16x512xf32>,
    %c16_32 = arith.constant 16 : index
    %c0_33 = arith.constant 0 : index
    %105 = vector.load %arg5[%c16_32, %c0_33] : memref<184x128xf32, #tpu.memory_space<vmem>>, vector<16x16xf32>
    %106 = arith.truncf %105 : vector<16x16xf32> to vector<16x16xbf16>
    %107 = arith.truncf %101 : vector<16x512xf32> to vector<16x512xbf16>
    %cst_34 = arith.constant dense<0.000000e+00> : vector<16x512xf32>
    %108 = tpu.matmul %106, %107, %cst_34 {dimension_numbers = #tpu.dot_dimension_numbers<[1], [0], [0], [1], [0, 0, 1, 1], [], []>} : vector<16x16xbf16>, vector<16x512xbf16>, vector<16x512xf32> -> vector<16x512xf32>
    %c0_35 = arith.constant 0 : index
    %c1_36 = arith.constant 1 : index
    %109 = vector.load %arg6[%c0_35, %c1_36] : memref<32x15xf32, #tpu.memory_space<vmem>>, vector<16x1xf32>
    %110 = vector.broadcast %109 : vector<16x1xf32> to vector<16x512xf32>
    %111 = arith.addf %108, %110 : vector<16x512xf32>
    %c0_37 = arith.constant 0 : index
    %c2_38 = arith.constant 2 : index
    %112 = vector.load %arg6[%c0_37, %c2_38] : memref<32x15xf32, #tpu.memory_space<vmem>>, vector<16x1xf32>
    %c0_39 = arith.constant 0 : index
    %c3_40 = arith.constant 3 : index
    %113 = vector.load %arg6[%c0_39, %c3_40] : memref<32x15xf32, #tpu.memory_space<vmem>>, vector<16x1xf32>
    %cst_41 = arith.constant dense<0.000000e+00> : vector<512xf32>
    %114 = vector.multi_reduction <add>, %111, %cst_41 [0] : vector<16x512xf32> to vector<512xf32>
    %115 = vector.shape_cast %114 : vector<512xf32> to vector<1x512xf32>
    %cst_42 = arith.constant 1.600000e+01 : f32
    %116 = vector.broadcast %cst_42 : f32 to vector<1x512xf32>
    %117 = arith.divf %115, %116 : vector<1x512xf32>
    %118 = vector.broadcast %117 : vector<1x512xf32> to vector<16x512xf32>
    %119 = arith.subf %111, %118 : vector<16x512xf32>
    %120 = arith.mulf %119, %119 : vector<16x512xf32>
    %cst_43 = arith.constant dense<0.000000e+00> : vector<512xf32>
    %121 = vector.multi_reduction <add>, %120, %cst_43 [0] : vector<16x512xf32> to vector<512xf32>
    %122 = vector.shape_cast %121 : vector<512xf32> to vector<1x512xf32>
    %cst_44 = arith.constant 1.600000e+01 : f32
    %123 = vector.broadcast %cst_44 : f32 to vector<1x512xf32>
    %124 = arith.divf %122, %123 : vector<1x512xf32>
    %cst_45 = arith.constant 9.99999997E-7 : f32
    %125 = vector.broadcast %cst_45 : f32 to vector<1x512xf32>
    %126 = arith.addf %124, %125 : vector<1x512xf32>
    %127 = math.rsqrt %126 : vector<1x512xf32>
    %128 = vector.broadcast %127 : vector<1x512xf32> to vector<16x512xf32>
    %129 = arith.mulf %119, %128 : vector<16x512xf32>
    %130 = vector.broadcast %112 : vector<16x1xf32> to vector<16x512xf32>
    %131 = arith.mulf %129, %130 : vector<16x512xf32>
    %132 = vector.broadcast %113 : vector<16x1xf32> to vector<16x512xf32>
    %133 = arith.addf %131, %132 : vector<16x512xf32>
    %c32 = arith.constant 32 : index
    %c0_46 = arith.constant 0 : index
    %134 = vector.load %arg5[%c32, %c0_46] : memref<184x128xf32, #tpu.memory_space<vmem>>, vector<16x16xf32>
    %135 = arith.truncf %134 : vector<16x16xf32> to vector<16x16xbf16>
    %136 = arith.truncf %133 : vector<16x512xf32> to vector<16x512xbf16>
    %cst_47 = arith.constant dense<0.000000e+00> : vector<16x512xf32>
    %137 = tpu.matmul %135, %136, %cst_47 {dimension_numbers = #tpu.dot_dimension_numbers<[1], [0], [0], [1], [0, 0, 1, 1], [], []>} : vector<16x16xbf16>, vector<16x512xbf16>, vector<16x512xf32> -> vector<16x512xf32>
    %c0_48 = arith.constant 0 : index
    %c4 = arith.constant 4 : index
    %138 = vector.load %arg6[%c0_48, %c4] : memref<32x15xf32, #tpu.memory_space<vmem>>, vector<16x1xf32>
    %139 = vector.broadcast %138 : vector<16x1xf32> to vector<16x512xf32>
    %140 = arith.addf %137, %139 : vector<16x512xf32>
    %c48 = arith.constant 48 : index
    %c0_49 = arith.constant 0 : index
    %141 = vector.load %arg5[%c48, %c0_49] : memref<184x128xf32, #tpu.memory_space<vmem>>, vector<16x9xf32>
    %cst_50 = arith.constant 0.000000e+00 : f32
    %142 = vector.broadcast %cst_50 : f32 to vector<16x512xf32>
    %143 = vector.extract_strided_slice %141 {offsets = [0, 0], sizes = [16, 1], strides = [1, 1]} : vector<16x9xf32> to vector<16x1xf32>
    %c17_i32_51 = arith.constant 17 : i32
    %144 = tpu.dynamic_rotate %140 by %c17_i32_51 dim 1 : vector<16x512xf32>, i32 -> vector<16x512xf32>
    %c0_52 = arith.constant 0 : index
    %c0_53 = arith.constant 0 : index
    %145 = vector.load %arg2[%c0_52, %c0_53] : memref<9x512xf32, #tpu.memory_space<vmem>>, vector<1x512xf32>
    %146 = vector.broadcast %145 : vector<1x512xf32> to vector<16x512xf32>
    %147 = arith.mulf %144, %146 : vector<16x512xf32>
    %148 = vector.broadcast %143 : vector<16x1xf32> to vector<16x512xf32>
    %149 = arith.mulf %148, %147 : vector<16x512xf32>
    %150 = arith.addf %142, %149 : vector<16x512xf32>
    %151 = vector.extract_strided_slice %141 {offsets = [0, 1], sizes = [16, 1], strides = [1, 1]} : vector<16x9xf32> to vector<16x1xf32>
    %c16_i32_54 = arith.constant 16 : i32
    %152 = tpu.dynamic_rotate %140 by %c16_i32_54 dim 1 : vector<16x512xf32>, i32 -> vector<16x512xf32>
    %c1_55 = arith.constant 1 : index
    %c0_56 = arith.constant 0 : index
    %153 = vector.load %arg2[%c1_55, %c0_56] : memref<9x512xf32, #tpu.memory_space<vmem>>, vector<1x512xf32>
    %154 = vector.broadcast %153 : vector<1x512xf32> to vector<16x512xf32>
    %155 = arith.mulf %152, %154 : vector<16x512xf32>
    %156 = vector.broadcast %151 : vector<16x1xf32> to vector<16x512xf32>
    %157 = arith.mulf %156, %155 : vector<16x512xf32>
    %158 = arith.addf %150, %157 : vector<16x512xf32>
    %159 = vector.extract_strided_slice %141 {offsets = [0, 2], sizes = [16, 1], strides = [1, 1]} : vector<16x9xf32> to vector<16x1xf32>
    %c15_i32_57 = arith.constant 15 : i32
    %160 = tpu.dynamic_rotate %140 by %c15_i32_57 dim 1 : vector<16x512xf32>, i32 -> vector<16x512xf32>
    %c2_58 = arith.constant 2 : index
    %c0_59 = arith.constant 0 : index
    %161 = vector.load %arg2[%c2_58, %c0_59] : memref<9x512xf32, #tpu.memory_space<vmem>>, vector<1x512xf32>
    %162 = vector.broadcast %161 : vector<1x512xf32> to vector<16x512xf32>
    %163 = arith.mulf %160, %162 : vector<16x512xf32>
    %164 = vector.broadcast %159 : vector<16x1xf32> to vector<16x512xf32>
    %165 = arith.mulf %164, %163 : vector<16x512xf32>
    %166 = arith.addf %158, %165 : vector<16x512xf32>
    %167 = vector.extract_strided_slice %141 {offsets = [0, 3], sizes = [16, 1], strides = [1, 1]} : vector<16x9xf32> to vector<16x1xf32>
    %c1_i32_60 = arith.constant 1 : i32
    %168 = tpu.dynamic_rotate %140 by %c1_i32_60 dim 1 : vector<16x512xf32>, i32 -> vector<16x512xf32>
    %c3_61 = arith.constant 3 : index
    %c0_62 = arith.constant 0 : index
    %169 = vector.load %arg2[%c3_61, %c0_62] : memref<9x512xf32, #tpu.memory_space<vmem>>, vector<1x512xf32>
    %170 = vector.broadcast %169 : vector<1x512xf32> to vector<16x512xf32>
    %171 = arith.mulf %168, %170 : vector<16x512xf32>
    %172 = vector.broadcast %167 : vector<16x1xf32> to vector<16x512xf32>
    %173 = arith.mulf %172, %171 : vector<16x512xf32>
    %174 = arith.addf %166, %173 : vector<16x512xf32>
    %175 = vector.extract_strided_slice %141 {offsets = [0, 4], sizes = [16, 1], strides = [1, 1]} : vector<16x9xf32> to vector<16x1xf32>
    %176 = vector.broadcast %175 : vector<16x1xf32> to vector<16x512xf32>
    %177 = arith.mulf %176, %140 : vector<16x512xf32>
    %178 = arith.addf %174, %177 : vector<16x512xf32>
    %179 = vector.extract_strided_slice %141 {offsets = [0, 5], sizes = [16, 1], strides = [1, 1]} : vector<16x9xf32> to vector<16x1xf32>
    %c511_i32_63 = arith.constant 511 : i32
    %180 = tpu.dynamic_rotate %140 by %c511_i32_63 dim 1 : vector<16x512xf32>, i32 -> vector<16x512xf32>
    %c5_64 = arith.constant 5 : index
    %c0_65 = arith.constant 0 : index
    %181 = vector.load %arg2[%c5_64, %c0_65] : memref<9x512xf32, #tpu.memory_space<vmem>>, vector<1x512xf32>
    %182 = vector.broadcast %181 : vector<1x512xf32> to vector<16x512xf32>
    %183 = arith.mulf %180, %182 : vector<16x512xf32>
    %184 = vector.broadcast %179 : vector<16x1xf32> to vector<16x512xf32>
    %185 = arith.mulf %184, %183 : vector<16x512xf32>
    %186 = arith.addf %178, %185 : vector<16x512xf32>
    %187 = vector.extract_strided_slice %141 {offsets = [0, 6], sizes = [16, 1], strides = [1, 1]} : vector<16x9xf32> to vector<16x1xf32>
    %c497_i32_66 = arith.constant 497 : i32
    %188 = tpu.dynamic_rotate %140 by %c497_i32_66 dim 1 : vector<16x512xf32>, i32 -> vector<16x512xf32>
    %c6_67 = arith.constant 6 : index
    %c0_68 = arith.constant 0 : index
    %189 = vector.load %arg2[%c6_67, %c0_68] : memref<9x512xf32, #tpu.memory_space<vmem>>, vector<1x512xf32>
    %190 = vector.broadcast %189 : vector<1x512xf32> to vector<16x512xf32>
    %191 = arith.mulf %188, %190 : vector<16x512xf32>
    %192 = vector.broadcast %187 : vector<16x1xf32> to vector<16x512xf32>
    %193 = arith.mulf %192, %191 : vector<16x512xf32>
    %194 = arith.addf %186, %193 : vector<16x512xf32>
    %195 = vector.extract_strided_slice %141 {offsets = [0, 7], sizes = [16, 1], strides = [1, 1]} : vector<16x9xf32> to vector<16x1xf32>
    %c496_i32_69 = arith.constant 496 : i32
    %196 = tpu.dynamic_rotate %140 by %c496_i32_69 dim 1 : vector<16x512xf32>, i32 -> vector<16x512xf32>
    %c7_70 = arith.constant 7 : index
    %c0_71 = arith.constant 0 : index
    %197 = vector.load %arg2[%c7_70, %c0_71] : memref<9x512xf32, #tpu.memory_space<vmem>>, vector<1x512xf32>
    %198 = vector.broadcast %197 : vector<1x512xf32> to vector<16x512xf32>
    %199 = arith.mulf %196, %198 : vector<16x512xf32>
    %200 = vector.broadcast %195 : vector<16x1xf32> to vector<16x512xf32>
    %201 = arith.mulf %200, %199 : vector<16x512xf32>
    %202 = arith.addf %194, %201 : vector<16x512xf32>
    %203 = vector.extract_strided_slice %141 {offsets = [0, 8], sizes = [16, 1], strides = [1, 1]} : vector<16x9xf32> to vector<16x1xf32>
    %c495_i32_72 = arith.constant 495 : i32
    %204 = tpu.dynamic_rotate %140 by %c495_i32_72 dim 1 : vector<16x512xf32>, i32 -> vector<16x512xf32>
    %c8_73 = arith.constant 8 : index
    %c0_74 = arith.constant 0 : index
    %205 = vector.load %arg2[%c8_73, %c0_74] : memref<9x512xf32, #tpu.memory_space<vmem>>, vector<1x512xf32>
    %206 = vector.broadcast %205 : vector<1x512xf32> to vector<16x512xf32>
    %207 = arith.mulf %204, %206 : vector<16x512xf32>
    %208 = vector.broadcast %203 : vector<16x1xf32> to vector<16x512xf32>
    %209 = arith.mulf %208, %207 : vector<16x512xf32>
    %210 = arith.addf %202, %209 : vector<16x512xf32>
    %c0_75 = arith.constant 0 : index
    %c5_76 = arith.constant 5 : index
    %211 = vector.load %arg6[%c0_75, %c5_76] : memref<32x15xf32, #tpu.memory_space<vmem>>, vector<16x1xf32>
    %212 = vector.broadcast %211 : vector<16x1xf32> to vector<16x512xf32>
    %213 = arith.addf %210, %212 : vector<16x512xf32>
    %cst_77 = arith.constant 5.000000e-01 : f32
    %214 = vector.broadcast %cst_77 : f32 to vector<16x512xf32>
    %215 = arith.mulf %214, %213 : vector<16x512xf32>
    %cst_78 = arith.constant 4.471500e-02 : f32
    %216 = vector.broadcast %cst_78 : f32 to vector<16x512xf32>
    %217 = arith.mulf %216, %213 : vector<16x512xf32>
    %218 = arith.mulf %217, %213 : vector<16x512xf32>
    %219 = arith.mulf %218, %213 : vector<16x512xf32>
    %220 = arith.addf %213, %219 : vector<16x512xf32>
    %cst_79 = arith.constant 0.797884583 : f32
    %221 = vector.broadcast %cst_79 : f32 to vector<16x512xf32>
    %222 = arith.mulf %221, %220 : vector<16x512xf32>
    %223 = math.tanh %222 : vector<16x512xf32>
    %cst_80 = arith.constant 1.000000e+00 : f32
    %224 = vector.broadcast %cst_80 : f32 to vector<16x512xf32>
    %225 = arith.addf %224, %223 : vector<16x512xf32>
    %226 = arith.mulf %215, %225 : vector<16x512xf32>
    %c64 = arith.constant 64 : index
    %c0_81 = arith.constant 0 : index
    %227 = vector.load %arg5[%c64, %c0_81] : memref<184x128xf32, #tpu.memory_space<vmem>>, vector<16x8xf32>
    %c80 = arith.constant 80 : index
    %c0_82 = arith.constant 0 : index
    %228 = vector.load %arg5[%c80, %c0_82] : memref<184x128xf32, #tpu.memory_space<vmem>>, vector<1x8xf32>
    %c88 = arith.constant 88 : index
    %c0_83 = arith.constant 0 : index
    %229 = vector.load %arg5[%c88, %c0_83] : memref<184x128xf32, #tpu.memory_space<vmem>>, vector<16x8xf32>
    %c0_84 = arith.constant 0 : index
    %c6_85 = arith.constant 6 : index
    %230 = vector.load %arg6[%c0_84, %c6_85] : memref<32x15xf32, #tpu.memory_space<vmem>>, vector<16x1xf32>
    %231 = vector.extract_strided_slice %226 {offsets = [0, 0], sizes = [16, 256], strides = [1, 1]} : vector<16x512xf32> to vector<16x256xf32>
    %cst_86 = arith.constant dense<0.000000e+00> : vector<16xf32>
    %232 = vector.multi_reduction <add>, %231, %cst_86 [1] : vector<16x256xf32> to vector<16xf32>
    %233 = vector.shape_cast %232 : vector<16xf32> to vector<16x1xf32>
    %cst_87 = arith.constant 2.560000e+02 : f32
    %234 = vector.broadcast %cst_87 : f32 to vector<16x1xf32>
    %235 = arith.divf %233, %234 : vector<16x1xf32>
    %236 = vector.broadcast %235 : vector<16x1xf32> to vector<16x8xf32>
    %237 = arith.mulf %227, %236 : vector<16x8xf32>
    %cst_88 = arith.constant dense<0.000000e+00> : vector<8xf32>
    %238 = vector.multi_reduction <add>, %237, %cst_88 [0] : vector<16x8xf32> to vector<8xf32>
    %239 = vector.shape_cast %238 : vector<8xf32> to vector<1x8xf32>
    %240 = arith.addf %239, %228 : vector<1x8xf32>
    %cst_89 = arith.constant 0.000000e+00 : f32
    %241 = vector.broadcast %cst_89 : f32 to vector<1x8xf32>
    %242 = arith.maximumf %240, %241 : vector<1x8xf32>
    %243 = vector.broadcast %242 : vector<1x8xf32> to vector<16x8xf32>
    %244 = arith.mulf %229, %243 : vector<16x8xf32>
    %cst_90 = arith.constant dense<0.000000e+00> : vector<16xf32>
    %245 = vector.multi_reduction <add>, %244, %cst_90 [1] : vector<16x8xf32> to vector<16xf32>
    %246 = vector.shape_cast %245 : vector<16xf32> to vector<16x1xf32>
    %247 = arith.addf %246, %230 : vector<16x1xf32>
    %cst_91 = arith.constant 0.000000e+00 : f32
    %248 = vector.broadcast %cst_91 : f32 to vector<16x1xf32>
    %249 = arith.subf %248, %247 : vector<16x1xf32>
    %250 = math.exp %249 : vector<16x1xf32>
    %cst_92 = arith.constant 1.000000e+00 : f32
    %251 = vector.broadcast %cst_92 : f32 to vector<16x1xf32>
    %252 = arith.addf %251, %250 : vector<16x1xf32>
    %253 = tpu.reciprocal %252 {approx = true} : vector<16x1xf32> -> vector<16x1xf32>
    %254 = vector.broadcast %253 : vector<16x1xf32> to vector<16x256xf32>
    %255 = arith.mulf %231, %254 : vector<16x256xf32>
    %256 = vector.extract_strided_slice %226 {offsets = [0, 256], sizes = [16, 256], strides = [1, 1]} : vector<16x512xf32> to vector<16x256xf32>
    %cst_93 = arith.constant dense<0.000000e+00> : vector<16xf32>
    %257 = vector.multi_reduction <add>, %256, %cst_93 [1] : vector<16x256xf32> to vector<16xf32>
    %258 = vector.shape_cast %257 : vector<16xf32> to vector<16x1xf32>
    %cst_94 = arith.constant 2.560000e+02 : f32
    %259 = vector.broadcast %cst_94 : f32 to vector<16x1xf32>
    %260 = arith.divf %258, %259 : vector<16x1xf32>
    %261 = vector.broadcast %260 : vector<16x1xf32> to vector<16x8xf32>
    %262 = arith.mulf %227, %261 : vector<16x8xf32>
    %cst_95 = arith.constant dense<0.000000e+00> : vector<8xf32>
    %263 = vector.multi_reduction <add>, %262, %cst_95 [0] : vector<16x8xf32> to vector<8xf32>
    %264 = vector.shape_cast %263 : vector<8xf32> to vector<1x8xf32>
    %265 = arith.addf %264, %228 : vector<1x8xf32>
    %cst_96 = arith.constant 0.000000e+00 : f32
    %266 = vector.broadcast %cst_96 : f32 to vector<1x8xf32>
    %267 = arith.maximumf %265, %266 : vector<1x8xf32>
    %268 = vector.broadcast %267 : vector<1x8xf32> to vector<16x8xf32>
    %269 = arith.mulf %229, %268 : vector<16x8xf32>
    %cst_97 = arith.constant dense<0.000000e+00> : vector<16xf32>
    %270 = vector.multi_reduction <add>, %269, %cst_97 [1] : vector<16x8xf32> to vector<16xf32>
    %271 = vector.shape_cast %270 : vector<16xf32> to vector<16x1xf32>
    %272 = arith.addf %271, %230 : vector<16x1xf32>
    %cst_98 = arith.constant 0.000000e+00 : f32
    %273 = vector.broadcast %cst_98 : f32 to vector<16x1xf32>
    %274 = arith.subf %273, %272 : vector<16x1xf32>
    %275 = math.exp %274 : vector<16x1xf32>
    %cst_99 = arith.constant 1.000000e+00 : f32
    %276 = vector.broadcast %cst_99 : f32 to vector<16x1xf32>
    %277 = arith.addf %276, %275 : vector<16x1xf32>
    %278 = tpu.reciprocal %277 {approx = true} : vector<16x1xf32> -> vector<16x1xf32>
    %279 = vector.broadcast %278 : vector<16x1xf32> to vector<16x256xf32>
    %280 = arith.mulf %256, %279 : vector<16x256xf32>
    %281 = tpu.concatenate %255, %280 in 1 : vector<16x256xf32>, vector<16x256xf32> -> vector<16x512xf32>
    %c104 = arith.constant 104 : index
    %c0_100 = arith.constant 0 : index
    %282 = vector.load %arg5[%c104, %c0_100] : memref<184x128xf32, #tpu.memory_space<vmem>>, vector<16x16xf32>
    %283 = arith.truncf %282 : vector<16x16xf32> to vector<16x16xbf16>
    %284 = arith.truncf %281 : vector<16x512xf32> to vector<16x512xbf16>
    %cst_101 = arith.constant dense<0.000000e+00> : vector<16x512xf32>
    %285 = tpu.matmul %283, %284, %cst_101 {dimension_numbers = #tpu.dot_dimension_numbers<[1], [0], [0], [1], [0, 0, 1, 1], [], []>} : vector<16x16xbf16>, vector<16x512xbf16>, vector<16x512xf32> -> vector<16x512xf32>
    %c0_102 = arith.constant 0 : index
    %c7_103 = arith.constant 7 : index
    %286 = vector.load %arg6[%c0_102, %c7_103] : memref<32x15xf32, #tpu.memory_space<vmem>>, vector<16x1xf32>
    %287 = vector.broadcast %286 : vector<16x1xf32> to vector<16x512xf32>
    %288 = arith.addf %285, %287 : vector<16x512xf32>
    %c0_104 = arith.constant 0 : index
    %c8_105 = arith.constant 8 : index
    %289 = vector.load %arg6[%c0_104, %c8_105] : memref<32x15xf32, #tpu.memory_space<vmem>>, vector<16x1xf32>
    %290 = vector.broadcast %289 : vector<16x1xf32> to vector<16x512xf32>
    %291 = arith.mulf %288, %290 : vector<16x512xf32>
    %292 = arith.addf %111, %291 : vector<16x512xf32>
    %c0_106 = arith.constant 0 : index
    %c9 = arith.constant 9 : index
    %293 = vector.load %arg6[%c0_106, %c9] : memref<32x15xf32, #tpu.memory_space<vmem>>, vector<16x1xf32>
    %c0_107 = arith.constant 0 : index
    %c10 = arith.constant 10 : index
    %294 = vector.load %arg6[%c0_107, %c10] : memref<32x15xf32, #tpu.memory_space<vmem>>, vector<16x1xf32>
    %cst_108 = arith.constant dense<0.000000e+00> : vector<512xf32>
    %295 = vector.multi_reduction <add>, %292, %cst_108 [0] : vector<16x512xf32> to vector<512xf32>
    %296 = vector.shape_cast %295 : vector<512xf32> to vector<1x512xf32>
    %cst_109 = arith.constant 1.600000e+01 : f32
    %297 = vector.broadcast %cst_109 : f32 to vector<1x512xf32>
    %298 = arith.divf %296, %297 : vector<1x512xf32>
    %299 = vector.broadcast %298 : vector<1x512xf32> to vector<16x512xf32>
    %300 = arith.subf %292, %299 : vector<16x512xf32>
    %301 = arith.mulf %300, %300 : vector<16x512xf32>
    %cst_110 = arith.constant dense<0.000000e+00> : vector<512xf32>
    %302 = vector.multi_reduction <add>, %301, %cst_110 [0] : vector<16x512xf32> to vector<512xf32>
    %303 = vector.shape_cast %302 : vector<512xf32> to vector<1x512xf32>
    %cst_111 = arith.constant 1.600000e+01 : f32
    %304 = vector.broadcast %cst_111 : f32 to vector<1x512xf32>
    %305 = arith.divf %303, %304 : vector<1x512xf32>
    %cst_112 = arith.constant 9.99999997E-7 : f32
    %306 = vector.broadcast %cst_112 : f32 to vector<1x512xf32>
    %307 = arith.addf %305, %306 : vector<1x512xf32>
    %308 = math.rsqrt %307 : vector<1x512xf32>
    %309 = vector.broadcast %308 : vector<1x512xf32> to vector<16x512xf32>
    %310 = arith.mulf %300, %309 : vector<16x512xf32>
    %311 = vector.broadcast %293 : vector<16x1xf32> to vector<16x512xf32>
    %312 = arith.mulf %310, %311 : vector<16x512xf32>
    %313 = vector.broadcast %294 : vector<16x1xf32> to vector<16x512xf32>
    %314 = arith.addf %312, %313 : vector<16x512xf32>
    %c120 = arith.constant 120 : index
    %c0_113 = arith.constant 0 : index
    %315 = vector.load %arg5[%c120, %c0_113] : memref<184x128xf32, #tpu.memory_space<vmem>>, vector<32x16xf32>
    %316 = arith.truncf %315 : vector<32x16xf32> to vector<32x16xbf16>
    %317 = arith.truncf %314 : vector<16x512xf32> to vector<16x512xbf16>
    %cst_114 = arith.constant dense<0.000000e+00> : vector<32x512xf32>
    %318 = tpu.matmul %316, %317, %cst_114 {dimension_numbers = #tpu.dot_dimension_numbers<[1], [0], [0], [1], [0, 0, 1, 1], [], []>} : vector<32x16xbf16>, vector<16x512xbf16>, vector<32x512xf32> -> vector<32x512xf32>
    %c0_115 = arith.constant 0 : index
    %c11 = arith.constant 11 : index
    %319 = vector.load %arg6[%c0_115, %c11] : memref<32x15xf32, #tpu.memory_space<vmem>>, vector<32x1xf32>
    %320 = vector.broadcast %319 : vector<32x1xf32> to vector<32x512xf32>
    %321 = arith.addf %318, %320 : vector<32x512xf32>
    %cst_116 = arith.constant 5.000000e-01 : f32
    %322 = vector.broadcast %cst_116 : f32 to vector<32x512xf32>
    %323 = arith.mulf %322, %321 : vector<32x512xf32>
    %cst_117 = arith.constant 4.471500e-02 : f32
    %324 = vector.broadcast %cst_117 : f32 to vector<32x512xf32>
    %325 = arith.mulf %324, %321 : vector<32x512xf32>
    %326 = arith.mulf %325, %321 : vector<32x512xf32>
    %327 = arith.mulf %326, %321 : vector<32x512xf32>
    %328 = arith.addf %321, %327 : vector<32x512xf32>
    %cst_118 = arith.constant 0.797884583 : f32
    %329 = vector.broadcast %cst_118 : f32 to vector<32x512xf32>
    %330 = arith.mulf %329, %328 : vector<32x512xf32>
    %331 = math.tanh %330 : vector<32x512xf32>
    %cst_119 = arith.constant 1.000000e+00 : f32
    %332 = vector.broadcast %cst_119 : f32 to vector<32x512xf32>
    %333 = arith.addf %332, %331 : vector<32x512xf32>
    %334 = arith.mulf %323, %333 : vector<32x512xf32>
    %c152 = arith.constant 152 : index
    %c0_120 = arith.constant 0 : index
    %335 = vector.load %arg5[%c152, %c0_120] : memref<184x128xf32, #tpu.memory_space<vmem>>, vector<16x32xf32>
    %336 = arith.truncf %335 : vector<16x32xf32> to vector<16x32xbf16>
    %337 = arith.truncf %334 : vector<32x512xf32> to vector<32x512xbf16>
    %cst_121 = arith.constant dense<0.000000e+00> : vector<16x512xf32>
    %338 = tpu.matmul %336, %337, %cst_121 {dimension_numbers = #tpu.dot_dimension_numbers<[1], [0], [0], [1], [0, 0, 1, 1], [], []>} : vector<16x32xbf16>, vector<32x512xbf16>, vector<16x512xf32> -> vector<16x512xf32>
    %c0_122 = arith.constant 0 : index
    %c12 = arith.constant 12 : index
    %339 = vector.load %arg6[%c0_122, %c12] : memref<32x15xf32, #tpu.memory_space<vmem>>, vector<16x1xf32>
    %340 = vector.broadcast %339 : vector<16x1xf32> to vector<16x512xf32>
    %341 = arith.addf %338, %340 : vector<16x512xf32>
    %c0_123 = arith.constant 0 : index
    %c13 = arith.constant 13 : index
    %342 = vector.load %arg6[%c0_123, %c13] : memref<32x15xf32, #tpu.memory_space<vmem>>, vector<16x1xf32>
    %343 = vector.broadcast %342 : vector<16x1xf32> to vector<16x512xf32>
    %344 = arith.mulf %341, %343 : vector<16x512xf32>
    %345 = arith.addf %292, %344 : vector<16x512xf32>
    %c168 = arith.constant 168 : index
    %c0_124 = arith.constant 0 : index
    %346 = vector.load %arg5[%c168, %c0_124] : memref<184x128xf32, #tpu.memory_space<vmem>>, vector<16x9xf32>
    %c0_125 = arith.constant 0 : index
    %c14 = arith.constant 14 : index
    %347 = vector.load %arg6[%c0_125, %c14] : memref<32x15xf32, #tpu.memory_space<vmem>>, vector<1x1xf32>
    %cst_126 = arith.constant 0.000000e+00 : f32
    %348 = vector.broadcast %cst_126 : f32 to vector<16x512xf32>
    %c17_i32_127 = arith.constant 17 : i32
    %349 = tpu.dynamic_rotate %345 by %c17_i32_127 dim 1 : vector<16x512xf32>, i32 -> vector<16x512xf32>
    %c0_128 = arith.constant 0 : index
    %c0_129 = arith.constant 0 : index
    %350 = vector.load %arg2[%c0_128, %c0_129] : memref<9x512xf32, #tpu.memory_space<vmem>>, vector<1x512xf32>
    %351 = vector.broadcast %350 : vector<1x512xf32> to vector<16x512xf32>
    %352 = arith.mulf %349, %351 : vector<16x512xf32>
    %353 = vector.extract_strided_slice %346 {offsets = [0, 0], sizes = [16, 1], strides = [1, 1]} : vector<16x9xf32> to vector<16x1xf32>
    %354 = vector.broadcast %353 : vector<16x1xf32> to vector<16x512xf32>
    %355 = arith.mulf %354, %352 : vector<16x512xf32>
    %356 = arith.addf %348, %355 : vector<16x512xf32>
    %c16_i32_130 = arith.constant 16 : i32
    %357 = tpu.dynamic_rotate %345 by %c16_i32_130 dim 1 : vector<16x512xf32>, i32 -> vector<16x512xf32>
    %c1_131 = arith.constant 1 : index
    %c0_132 = arith.constant 0 : index
    %358 = vector.load %arg2[%c1_131, %c0_132] : memref<9x512xf32, #tpu.memory_space<vmem>>, vector<1x512xf32>
    %359 = vector.broadcast %358 : vector<1x512xf32> to vector<16x512xf32>
    %360 = arith.mulf %357, %359 : vector<16x512xf32>
    %361 = vector.extract_strided_slice %346 {offsets = [0, 1], sizes = [16, 1], strides = [1, 1]} : vector<16x9xf32> to vector<16x1xf32>
    %362 = vector.broadcast %361 : vector<16x1xf32> to vector<16x512xf32>
    %363 = arith.mulf %362, %360 : vector<16x512xf32>
    %364 = arith.addf %356, %363 : vector<16x512xf32>
    %c15_i32_133 = arith.constant 15 : i32
    %365 = tpu.dynamic_rotate %345 by %c15_i32_133 dim 1 : vector<16x512xf32>, i32 -> vector<16x512xf32>
    %c2_134 = arith.constant 2 : index
    %c0_135 = arith.constant 0 : index
    %366 = vector.load %arg2[%c2_134, %c0_135] : memref<9x512xf32, #tpu.memory_space<vmem>>, vector<1x512xf32>
    %367 = vector.broadcast %366 : vector<1x512xf32> to vector<16x512xf32>
    %368 = arith.mulf %365, %367 : vector<16x512xf32>
    %369 = vector.extract_strided_slice %346 {offsets = [0, 2], sizes = [16, 1], strides = [1, 1]} : vector<16x9xf32> to vector<16x1xf32>
    %370 = vector.broadcast %369 : vector<16x1xf32> to vector<16x512xf32>
    %371 = arith.mulf %370, %368 : vector<16x512xf32>
    %372 = arith.addf %364, %371 : vector<16x512xf32>
    %c1_i32_136 = arith.constant 1 : i32
    %373 = tpu.dynamic_rotate %345 by %c1_i32_136 dim 1 : vector<16x512xf32>, i32 -> vector<16x512xf32>
    %c3_137 = arith.constant 3 : index
    %c0_138 = arith.constant 0 : index
    %374 = vector.load %arg2[%c3_137, %c0_138] : memref<9x512xf32, #tpu.memory_space<vmem>>, vector<1x512xf32>
    %375 = vector.broadcast %374 : vector<1x512xf32> to vector<16x512xf32>
    %376 = arith.mulf %373, %375 : vector<16x512xf32>
    %377 = vector.extract_strided_slice %346 {offsets = [0, 3], sizes = [16, 1], strides = [1, 1]} : vector<16x9xf32> to vector<16x1xf32>
    %378 = vector.broadcast %377 : vector<16x1xf32> to vector<16x512xf32>
    %379 = arith.mulf %378, %376 : vector<16x512xf32>
    %380 = arith.addf %372, %379 : vector<16x512xf32>
    %381 = vector.extract_strided_slice %346 {offsets = [0, 4], sizes = [16, 1], strides = [1, 1]} : vector<16x9xf32> to vector<16x1xf32>
    %382 = vector.broadcast %381 : vector<16x1xf32> to vector<16x512xf32>
    %383 = arith.mulf %382, %345 : vector<16x512xf32>
    %384 = arith.addf %380, %383 : vector<16x512xf32>
    %c511_i32_139 = arith.constant 511 : i32
    %385 = tpu.dynamic_rotate %345 by %c511_i32_139 dim 1 : vector<16x512xf32>, i32 -> vector<16x512xf32>
    %c5_140 = arith.constant 5 : index
    %c0_141 = arith.constant 0 : index
    %386 = vector.load %arg2[%c5_140, %c0_141] : memref<9x512xf32, #tpu.memory_space<vmem>>, vector<1x512xf32>
    %387 = vector.broadcast %386 : vector<1x512xf32> to vector<16x512xf32>
    %388 = arith.mulf %385, %387 : vector<16x512xf32>
    %389 = vector.extract_strided_slice %346 {offsets = [0, 5], sizes = [16, 1], strides = [1, 1]} : vector<16x9xf32> to vector<16x1xf32>
    %390 = vector.broadcast %389 : vector<16x1xf32> to vector<16x512xf32>
    %391 = arith.mulf %390, %388 : vector<16x512xf32>
    %392 = arith.addf %384, %391 : vector<16x512xf32>
    %c497_i32_142 = arith.constant 497 : i32
    %393 = tpu.dynamic_rotate %345 by %c497_i32_142 dim 1 : vector<16x512xf32>, i32 -> vector<16x512xf32>
    %c6_143 = arith.constant 6 : index
    %c0_144 = arith.constant 0 : index
    %394 = vector.load %arg2[%c6_143, %c0_144] : memref<9x512xf32, #tpu.memory_space<vmem>>, vector<1x512xf32>
    %395 = vector.broadcast %394 : vector<1x512xf32> to vector<16x512xf32>
    %396 = arith.mulf %393, %395 : vector<16x512xf32>
    %397 = vector.extract_strided_slice %346 {offsets = [0, 6], sizes = [16, 1], strides = [1, 1]} : vector<16x9xf32> to vector<16x1xf32>
    %398 = vector.broadcast %397 : vector<16x1xf32> to vector<16x512xf32>
    %399 = arith.mulf %398, %396 : vector<16x512xf32>
    %400 = arith.addf %392, %399 : vector<16x512xf32>
    %c496_i32_145 = arith.constant 496 : i32
    %401 = tpu.dynamic_rotate %345 by %c496_i32_145 dim 1 : vector<16x512xf32>, i32 -> vector<16x512xf32>
    %c7_146 = arith.constant 7 : index
    %c0_147 = arith.constant 0 : index
    %402 = vector.load %arg2[%c7_146, %c0_147] : memref<9x512xf32, #tpu.memory_space<vmem>>, vector<1x512xf32>
    %403 = vector.broadcast %402 : vector<1x512xf32> to vector<16x512xf32>
    %404 = arith.mulf %401, %403 : vector<16x512xf32>
    %405 = vector.extract_strided_slice %346 {offsets = [0, 7], sizes = [16, 1], strides = [1, 1]} : vector<16x9xf32> to vector<16x1xf32>
    %406 = vector.broadcast %405 : vector<16x1xf32> to vector<16x512xf32>
    %407 = arith.mulf %406, %404 : vector<16x512xf32>
    %408 = arith.addf %400, %407 : vector<16x512xf32>
    %c495_i32_148 = arith.constant 495 : i32
    %409 = tpu.dynamic_rotate %345 by %c495_i32_148 dim 1 : vector<16x512xf32>, i32 -> vector<16x512xf32>
    %c8_149 = arith.constant 8 : index
    %c0_150 = arith.constant 0 : index
    %410 = vector.load %arg2[%c8_149, %c0_150] : memref<9x512xf32, #tpu.memory_space<vmem>>, vector<1x512xf32>
    %411 = vector.broadcast %410 : vector<1x512xf32> to vector<16x512xf32>
    %412 = arith.mulf %409, %411 : vector<16x512xf32>
    %413 = vector.extract_strided_slice %346 {offsets = [0, 8], sizes = [16, 1], strides = [1, 1]} : vector<16x9xf32> to vector<16x1xf32>
    %414 = vector.broadcast %413 : vector<16x1xf32> to vector<16x512xf32>
    %415 = arith.mulf %414, %412 : vector<16x512xf32>
    %416 = arith.addf %408, %415 : vector<16x512xf32>
    %cst_151 = arith.constant dense<0.000000e+00> : vector<512xf32>
    %417 = vector.multi_reduction <add>, %416, %cst_151 [0] : vector<16x512xf32> to vector<512xf32>
    %418 = vector.shape_cast %417 : vector<512xf32> to vector<1x512xf32>
    %419 = vector.broadcast %347 : vector<1x1xf32> to vector<1x512xf32>
    %420 = arith.addf %418, %419 : vector<1x512xf32>
    %cst_152 = arith.constant 0.000000e+00 : f32
    %421 = vector.broadcast %cst_152 : f32 to vector<1x512xf32>
    %422 = arith.subf %421, %420 : vector<1x512xf32>
    %423 = math.exp %422 : vector<1x512xf32>
    %cst_153 = arith.constant 1.000000e+00 : f32
    %424 = vector.broadcast %cst_153 : f32 to vector<1x512xf32>
    %425 = arith.addf %424, %423 : vector<1x512xf32>
    %426 = tpu.reciprocal %425 {approx = true} : vector<1x512xf32> -> vector<1x512xf32>
    %c0_154 = arith.constant 0 : index
    %c0_155 = arith.constant 0 : index
    %c0_156 = arith.constant 0 : index
    %427 = vector.load %arg7[%c0_154, %c0_155, %c0_156] : memref<1x1x512xf32, #tpu.memory_space<vmem>>, vector<1x1x512xf32>
    %428 = vector.shape_cast %427 : vector<1x1x512xf32> to vector<1x512xf32>
    %429 = vector.shape_cast %426 : vector<1x512xf32> to vector<1x1x512xf32>
    tpu.vector_store %arg7[%c0_154, %c0_155, %c0_156], %429 {strides = array<i32>} : memref<1x1x512xf32, #tpu.memory_space<vmem>>, vector<1x1x512xf32>,
    return
  }
  func.func @transform_0(%arg0: i32) -> (i32, i32, i32) {
    %c0_i32 = arith.constant 0 : i32
    %c0_i32_0 = arith.constant 0 : i32
    %c0_i32_1 = arith.constant 0 : i32
    return %arg0, %c0_i32, %c0_i32_0 : i32, i32, i32
  }
  func.func @transform_1(%arg0: i32) -> (i32, i32) {
    %c0_i32 = arith.constant 0 : i32
    %c0_i32_0 = arith.constant 0 : i32
    %c0_i32_1 = arith.constant 0 : i32
    return %c0_i32, %c0_i32_0 : i32, i32
  }
  func.func @transform_2(%arg0: i32) -> (i32, i32) {
    %c0_i32 = arith.constant 0 : i32
    %c0_i32_0 = arith.constant 0 : i32
    %c0_i32_1 = arith.constant 0 : i32
    return %c0_i32, %c0_i32_0 : i32, i32
  }
  func.func @transform_3(%arg0: i32) -> (i32, i32) {
    %c0_i32 = arith.constant 0 : i32
    %c0_i32_0 = arith.constant 0 : i32
    %c0_i32_1 = arith.constant 0 : i32
    return %c0_i32, %c0_i32_0 : i32, i32
  }
  func.func @transform_4(%arg0: i32) -> (i32, i32) {
    %c0_i32 = arith.constant 0 : i32
    %c0_i32_0 = arith.constant 0 : i32
    %c0_i32_1 = arith.constant 0 : i32
    return %c0_i32, %c0_i32_0 : i32, i32
  }
  func.func @transform_5(%arg0: i32) -> (i32, i32) {
    %c0_i32 = arith.constant 0 : i32
    %c0_i32_0 = arith.constant 0 : i32
    %c0_i32_1 = arith.constant 0 : i32
    return %c0_i32, %c0_i32_0 : i32, i32
  }
  func.func @transform_6(%arg0: i32) -> (i32, i32, i32) {
    %c0_i32 = arith.constant 0 : i32
    %c0_i32_0 = arith.constant 0 : i32
    %c0_i32_1 = arith.constant 0 : i32
    return %arg0, %c0_i32, %c0_i32_0 : i32, i32, i32
  }
  func.func @transform_7(%arg0: i32) -> (i32, i32, i32) {
    %c0_i32 = arith.constant 0 : i32
    %c0_i32_0 = arith.constant 0 : i32
    %c0_i32_1 = arith.constant 0 : i32
    return %arg0, %c0_i32, %c0_i32_0 : i32, i32, i32
  }
  func.func @transform_8(%arg0: i32) -> (i32, i32, i32) {
    %c0_i32 = arith.constant 0 : i32
    %c0_i32_0 = arith.constant 0 : i32
    %c0_i32_1 = arith.constant 0 : i32
    return %arg0, %c0_i32, %c0_i32_0 : i32, i32, i32
  }
}

</mosaic_0001>

<bundles_post_ra>
// kernel: vqformer_enhancer_forward.1
= control target key start
LH: loop header
LB: loop body
LE: loop exit
PB: predicated region body
PF: predicated region fallthrough
CT: control target
= control target key end

     0   :  { %s4374_s27 = smov 0   ;;  %s7496_s0 = inlined_call_operand.vmem [shape: f32[2,1,512], index: 0, kind: input, shape index: {}]   ;;  %s7497_s1 = inlined_call_operand.vmem [shape: f32[9,512], index: 1, kind: input, shape index: {}]   ;;  %s7498_s2 = inlined_call_operand.vmem [shape: f32[64,17], index: 2, kind: input, shape index: {}]   ;;  %s7499_s3 = inlined_call_operand.vmem [shape: f32[16,64], index: 3, kind: input, shape index: {}]   ;;  %s7500_s4 = inlined_call_operand.vmem [shape: f32[184,128], index: 4, kind: input, shape index: {}]   ;;  %s7501_s5 = inlined_call_operand.vmem [shape: f32[32,15], index: 5, kind: input, shape index: {}]   ;;  %s7502_s6 = inlined_call_operand.vmem [shape: f32[2,1,512], index: 6, kind: output, shape index: {0}]   ;;  %s7503_s7 = inlined_call_operand.vmem [shape: f32[2,16,512], index: 7, kind: output, shape index: {1}]   ;;  %s7504_s8 = inlined_call_operand.vmem [shape: f32[2,16,512], index: 8, kind: output, shape index: {2}]  }
   0x1 LB: > { %s3914_s28 = sadd.s32 4294967295, %s4300_s27   ;;  %p3918_p0 = scmp.ge.s32.totalorder %s4300_s27, 1  ;;  %s4300_s27 = sphi %s4374_s27, %s19_s27  }
   0x2   : > { %p266_p1 = scmp.lt.s32.totalorder %s4300_s27, 3 }
   0x4   : > { %p267_p2 = pnand %p3918_p0, %p266_p1 }
   0x6   : > { %270 = sbr.rel (%p267_p2) target bundleno = 2632 (0xa48), region = 44 }
   0xb   : > { %p308_p3 = scmp.lt.s32.totalorder %s3914_s28, 1  ;;  %v7523_v0 = vmov 1   ;;  %v7513_v1 = vmov 0   ;;  %s4304_s11 = smov 17   ;;  %v4426_v6 = vld [vmem:[%s7500_s4] sm:$0xff]  ;;  %v329_v7 = vld [vmem:[%s7500_s4 + $0x8] sm:$0xff]  ;;  %v7519_v47 = vlaneseq }
   0xc   : > { %4107 = vset.pattern.permute.xlu1 %v7523_v0  ;;  %4108 = vset.pattern.permute.xlu2 %v7513_v1  ;;  %s4305_s12 = smov 16   ;;  %s4306_s13 = smov 15   ;;  %v7521_v9 = vmov 2   ;;  %v7515_v10 = vmov 3   ;;  %v7517_v11 = vmov 4   ;;  %v7505_v12 = vmov 6  }
   0xd   : > { %s7983_s28 = smov (!%p308_p3, %s3914_s28), 1  ;;  %4106 = vset.pattern.permute.xlu0 %v7513_v1  ;;  %s4307_s14 = smov 1   ;;  %v7509_v13 = vmov 5   ;;  %v7507_v14 = vmov 8   ;;  %v814_v16 = vld [vmem:[%s7501_s5] sm:$0xff]  ;;  %v7511_v19 = vmov 7  }
   0xe   : > { %s3919_s29 = sshll.u32 %s7983_s28, 2  ;;  %s4309_s19 = smov 127   ;;  %v815_v22 = vld [vmem:[%s7501_s5 + $0x8] sm:$0xff]  ;;  %v4561_v49 = vand.u32 127, %v7519_v47  ;;  %vm850_vm8 = vcmask 130048  }
   0xf   : > { %s311_s10 = scalar_lea.vmem %s7496_s0, %s3919_s29  ;;  %s4311_s20 = smov 113   ;;  %v4568_v51 = vld [vmem:[%s7497_s1] ss:$8 sm:$0xf] }
  0x10   : > { %v327_v2 = vld [vmem:[%s311_s10] sm:$0xf]  ;;  %s4314_s21 = smov 112   ;;  %s4317_s22 = smov 111   ;;  %vm349_vm0 = vcmp.lt.s32.totalorder %v4561_v49, 17  ;;  %v358_v54 = vperm.slane %v4568_v51, 2 }
  0x11   : > { %v4393_v3 = vperm.slane %v327_v2, 3  ;;  %v4395_v4 = vperm.slane %v327_v2, 2  ;;  %v4397_v5 = vperm.slane %v327_v2, 1  ;;  %v4432_v8 = vperm.slane %v327_v2, 0  ;;  %s4069_s17 = sshll.u32 %s7983_s28, 6 }
  0x12   : > { %v4575_v53 = vld [vmem:[%s7497_s1 + $0x1] ss:$8 sm:$0xf]  ;;  %vm406_vm1 = vcmp.lt.s32.totalorder %v4561_v49, 16  ;;  %v359_v60 = vperm.slane %v4568_v51, 3  ;;  %vm462_vm2 = vcmp.lt.s32.totalorder %v4561_v49, 15  ;;  %s4787_s24 = scalar_lea.vmem %s7504_s8, %s4069_s17  ;;  %s5419_s15 = scalar_lea.vmem %s7503_s7, %s4069_s17 }
  0x13   : > { %7678 = vst [vmem:[#allocation2_spill] sm:$0xff] %v4397_v5  ;;  %345 = vrot.lane.b32.xlu1 %v4393_v3, %s4304_s11  ;;  %402 = vrot.lane.b32.xlu2 %v4395_v4, %s4305_s12  ;;  %v416_v56 = vperm.slane %v4575_v53, 2  ;;  %v4587_v57 = vld [vmem:[%s7497_s1 + $0x2] ss:$8 sm:$0xf]  ;;  %v417_v58 = vperm.slane %v4575_v53, 3 }
  0x14   : > { %341 = vrot.lane.b32.xlu0 %v4397_v5, %s4304_s11  ;;  %7693 = vst [vmem:[#allocation17_spill] sm:$0xff] %v4587_v57  ;;  %v473_v2 = vperm.slane %v4587_v57, 3  ;;  %vm518_vm3 = vcmp.lt.s32.totalorder %v4561_v49, 1  ;;  %vm598_vm4 = vcmp.lt.s32.totalorder %v4561_v49, 127  ;;  %vm7557_vm5 = vcmp.lt.s32.totalorder %v4561_v49, 113 }
  0x15   : > { %vm7556_vm6 = vcmp.lt.s32.totalorder %v4561_v49, 112  ;;  %vm7555_vm7 = vcmp.lt.s32.totalorder %v4561_v49, 111 }
  0x1b   : > { %404 = vrot.lane.b32.xlu2 %v4393_v3, %s4305_s12  ;;  %400 = vrot.lane.b32.xlu1 %v4397_v5, %s4305_s12 }
  0x1c   : > { %343 = vrot.lane.b32.xlu0 %v4395_v4, %s4304_s11 }
  0x23   : > { %460 = vrot.lane.b32.xlu2 %v4393_v3, %s4306_s13  ;;  %458 = vrot.lane.b32.xlu1 %v4395_v4, %s4306_s13 }
  0x24   : > { %456 = vrot.lane.b32.xlu0 %v4397_v5, %s4306_s13 }
  0x2b   : > { %516 = vrot.lane.b32.xlu2 %v4393_v3, %s4307_s14  ;;  %514 = vrot.lane.b32.xlu1 %v4395_v4, %s4307_s14 }
  0x2c   : > { %512 = vrot.lane.b32.xlu0 %v4397_v5, %s4307_s14 }
  0x33   : > { %370 = vperm.xlu2 %4108, %v4426_v6   ;;  %431 = vperm.xlu1 %4107, %v329_v7  }
  0x34   : > { %375 = vperm.xlu0 %4106, %v329_v7  }
  0x3b   : > { %4109 = vset.pattern.permute.xlu2 %v7521_v9  ;;  %427 = vperm.xlu1 %4107, %v4426_v6  }
  0x3c   : > { %590 = vrot.lane.b32.xlu0 %v4432_v8, %s4309_s19  ;;  %487 = vperm.xlu2 %4109, %v329_v7  }
  0x3d   : > { %4110 = vset.pattern.permute.xlu0 %v7521_v9 }
  0x43   : > { %594 = vrot.lane.b32.xlu1 %v4395_v4, %s4309_s19 }
  0x44   : > { %483 = vperm.xlu0 %4110, %v4426_v6   ;;  %596 = vrot.lane.b32.xlu2 %v4393_v3, %s4309_s19 }
  0x45   : > { %4111 = vset.pattern.permute.xlu1 %v7515_v10  ;;  %4118 = vset.pattern.permute.xlu2 %v7505_v12 }
  0x4b   : > { %543 = vperm.xlu1 %4111, %v329_v7  }
  0x4c   : > { %4112 = vset.pattern.permute.xlu0 %v7515_v10  ;;  %646 = vrot.lane.b32.xlu2 %v4432_v8, %s4311_s20 }
  0x4d   : > { %539 = vperm.xlu0 %4112, %v4426_v6  }
  0x53   : > { %650 = vrot.lane.b32.xlu1 %v4395_v4, %s4311_s20 }
  0x54   : > { %652 = vrot.lane.b32.xlu2 %v4393_v3, %s4311_s20  ;;  %4113 = vset.pattern.permute.xlu1 %v7517_v11 }
  0x55   : > { %4114 = vset.pattern.permute.xlu0 %v7517_v11 }
  0x56   : > { %567 = vperm.xlu0 %4114, %v4426_v6  }
  0x5b   : > { %571 = vperm.xlu1 %4113, %v329_v7  }
  0x5c   : > { %702 = vrot.lane.b32.xlu2 %v4432_v8, %s4314_s21 }
  0x5e   : > { %4116 = vset.pattern.permute.xlu0 %v7509_v13 }
  0x5f   : > { %619 = vperm.xlu0 %4116, %v4426_v6  }
  0x63   : > { %706 = vrot.lane.b32.xlu1 %v4395_v4, %s4314_s21 }
  0x64   : > { %708 = vrot.lane.b32.xlu2 %v4393_v3, %s4314_s21  ;;  %4115 = vset.pattern.permute.xlu1 %v7509_v13 }
  0x67   : > { %4121 = vset.pattern.permute.xlu0 %v7507_v14 }
  0x68   : > { %791 = vperm.xlu0 %4121, %v329_v7  }
  0x6b   : > { %623 = vperm.xlu1 %4115, %v329_v7  }
  0x6c   : > { %758 = vrot.lane.b32.xlu2 %v4432_v8, %s4317_s22 }
  0x6d   : > { %v4469_v15 = vpop.permute.xlu2 %402 }
  0x70   : > { %4124 = vset.pattern.permute.xlu0 %v7513_v1 }
  0x71   : > { %818 = vperm.xlu0 %4124, %v814_v16   ;;  %v472_v16 = vperm.slane %v4587_v57, 2 }
  0x73   : > { %762 = vrot.lane.b32.xlu1 %v4395_v4, %s4317_s22 }
  0x74   : > { %764 = vrot.lane.b32.xlu2 %v4393_v3, %s4317_s22  ;;  %4117 = vset.pattern.permute.xlu1 %v7505_v12 }
  0x75   : > { %v4480_v17 = vpop.permute.xlu2 %404 }
  0x76   : > { %v407_v61 = vsel %vm406_vm1, %v4469_v15, %v4480_v17 }
  0x77   : > { %v425_v12 = vmul.f32 %v417_v58, %v407_v61 }
  0x79   : > { %704 = vrot.lane.b32.xlu0 %v4397_v5, %s4314_s21 }
  0x7b   : > { %679 = vperm.xlu1 %4117, %v329_v7  }
  0x7c   : > { %675 = vperm.xlu2 %4118, %v4426_v6  }
  0x7d   : > { %v4485_v18 = vpop.permute.xlu2 %460 }
  0x7e   : > { %7679 = vst [vmem:[#allocation3_spill] sm:$0xff] %v4485_v18 }
  0x83   : > { %4119 = vset.pattern.permute.xlu1 %v7511_v19 }
  0x84   : > { %735 = vperm.xlu1 %4119, %v329_v7   ;;  %4120 = vset.pattern.permute.xlu2 %v7511_v19  ;;  %v4650_v19 = vld [vmem:[%s7497_s1 + $0x5] ss:$8 sm:$0xf] }
  0x85   : > { %v4489_v20 = vpop.permute.xlu1 %345  ;;  %731 = vperm.xlu2 %4120, %v4426_v6   ;;  %v4492_v21 = vpop.permute.xlu2 %516  ;;  %7694 = vst [vmem:[#allocation18_spill] sm:$0xff] %v4650_v19  ;;  %v609_v11 = vperm.slane %v4650_v19, 3 }
  0x86   : > { %v4497_v23 = vpop.permute.xlu0 %341 }
  0x8c   : > { %4122 = vset.pattern.permute.xlu1 %v7507_v14 }
  0x8d   : > { %787 = vperm.xlu1 %4122, %v4426_v6   ;;  %v4501_v24 = vpop.permute.xlu1 %400  ;;  %4123 = vset.pattern.permute.xlu2 %v7513_v1  ;;  %v4504_v25 = vpop.permute.xlu2 %370 }
  0x8e   : > { %7680 = vst [vmem:[#allocation4_spill] sm:$0xff] %v4504_v25  ;;  %823 = vperm.xlu2 %4123, %v815_v22   ;;  %v344_v28 = vpop.permute.xlu0 %343  ;;  %v408_v59 = vsel %vm406_vm1, %v4501_v24, %v4469_v15 }
  0x8f   : > { %v351_v55 = vsel %vm349_vm0, %v4497_v23, %v344_v28  ;;  %v350_v62 = vsel %vm349_vm0, %v344_v28, %v4489_v20  ;;  %v424_v6 = vmul.f32 %v416_v56, %v408_v59 }
  0x90   : > { %v366_v63 = vmul.f32 %v358_v54, %v351_v55  ;;  %v367_v14 = vmul.f32 %v359_v60, %v350_v62  ;;  %v4620_v55 = vld [vmem:[%s7497_s1 + $0x3] ss:$8 sm:$0xf]  ;;  %v437_v60 = vperm.slane %v425_v12, 0 }
  0x91   : > { %v436_v58 = vperm.slane %v424_v6, 0  ;;  %v528_v62 = vperm.slane %v4620_v55, 2  ;;  %v4642_v12 = vld [vmem:[%s7497_s1 + $0x6] ss:$8 sm:$0xf] }
  0x92   : > { %v380_v54 = vperm.slane %v366_v63, 0  ;;  %v381_v61 = vperm.slane %v367_v14, 0  ;;  %v665_v47 = vperm.slane %v4642_v12, 3 }
  0x94   : > { %v384_v0 = vmul.f32 %v380_v54, %v4504_v25  ;;  %v385_v14 = vmul.f32 %v381_v61, %v4504_v25 }
  0x95   : > { %v459_v26 = vpop.permute.xlu1 %458  ;;  %339 = vrot.lane.b32.xlu1 %v4432_v8, %s4304_s11 }
  0x96   : > { %v4508_v27 = vpop.permute.xlu2 %487  ;;  %398 = vrot.lane.b32.xlu2 %v4432_v8, %s4305_s12  ;;  %v4520_v31 = vpop.permute.xlu0 %456  ;;  %v463_v7 = vsel %vm462_vm2, %v459_v26, %v4485_v18 }
  0x97   : > { %7681 = vst [vmem:[#allocation5_spill] sm:$0xff] %v4508_v27  ;;  %v464_v15 = vsel %vm462_vm2, %v4520_v31, %v459_v26  ;;  %v4622_v56 = vmul.f32 %v473_v2, %v463_v7  ;;  %v529_v26 = vperm.slane %v4620_v55, 3 }
  0x98   : > { %7682 = vst [vmem:[#allocation6_spill] sm:$0xff] %v4520_v31  ;;  %v4625_v59 = vmul.f32 %v472_v16, %v464_v15 }
  0x9d   : > { %v4512_v29 = vpop.permute.xlu1 %514  ;;  %454 = vrot.lane.b32.xlu1 %v4432_v8, %s4306_s13 }
  0x9e   : > { %v4516_v30 = vpop.permute.xlu2 %596  ;;  %510 = vrot.lane.b32.xlu2 %v4432_v8, %s4307_s14  ;;  %v4530_v34 = vpop.permute.xlu0 %512  ;;  %v519_v63 = vsel %vm518_vm3, %v4512_v29, %v4492_v21 }
  0x9f   : > { %v520_v2 = vsel %vm518_vm3, %v4530_v34, %v4512_v29  ;;  %v4655_v1 = vmul.f32 %v529_v26, %v519_v63  ;;  %v608_v29 = vperm.slane %v4650_v19, 2  ;;  %v4669_v26 = vld [vmem:[%s7497_s1 + $0x7] ss:$8 sm:$0xf]  ;;  %v7696_v63 = vperm.slane %v4622_v56, 0 }
  0xa0   : > { %v4657_v10 = vmul.f32 %v528_v62, %v520_v2 }
  0xa1   : > { %v501_v2 = vmul.f32 %v7696_v63, %v4508_v27  ;;  %v549_v63 = vperm.slane %v4655_v1, 0 }
  0xa5   : > { %v4522_v32 = vpop.permute.xlu1 %431  ;;  %592 = vrot.lane.b32.xlu1 %v4397_v5, %s4309_s19 }
  0xa6   : > { %7683 = vst [vmem:[#allocation7_spill] sm:$0xff] %v4522_v32  ;;  %648 = vrot.lane.b32.xlu2 %v4397_v5, %s4311_s20  ;;  %v4528_v33 = vpop.permute.xlu2 %646  ;;  %v4538_v37 = vpop.permute.xlu0 %375  ;;  %v444_v6 = vmul.f32 %v436_v58, %v4522_v32  ;;  %v445_v16 = vmul.f32 %v437_v60, %v4522_v32 }
  0xa7   : > { %7684 = vst [vmem:[#allocation8_spill] sm:$0xff] %v4528_v33  ;;  %v388_v7 = vmul.f32 %v380_v54, %v4538_v37  ;;  %v389_v15 = vmul.f32 %v381_v61, %v4538_v37 }
  0xa8   : > { %7686 = vst [vmem:[#allocation10_spill] sm:$0xff] %v4538_v37 }
  0xa9   : > { %v453_v32 = vadd.f32 %v445_v16, %v389_v15  ;;  %v664_v15 = vperm.slane %v4642_v12, 2 }
  0xab   : > { %v509_v31 = vadd.f32 %v501_v2, %v453_v32  ;;  %v720_v32 = vperm.slane %v4669_v26, 2 }
  0xad   : > { %v4532_v35 = vpop.permute.xlu1 %427  ;;  %760 = vrot.lane.b32.xlu1 %v4397_v5, %s4317_s22  ;;  %v452_v5 = vadd.f32 %v444_v6, %v388_v7  ;;  %v7697_v7 = vperm.slane %v4625_v59, 0 }
  0xae   : > { %7685 = vst [vmem:[#allocation9_spill] sm:$0xff] %v4532_v35  ;;  %v4536_v36 = vpop.permute.xlu2 %652  ;;  %v4548_v42 = vpop.permute.xlu0 %590  ;;  %v440_v1 = vmul.f32 %v436_v58, %v4532_v35 }
  0xaf   : > { %7689 = vst [vmem:[#allocation13_spill] sm:$0xff] %v4548_v42  ;;  %v602_v54 = vsel %vm598_vm4, %v4516_v30, %v4548_v42  ;;  %v658_v61 = vsel %vm7557_vm5, %v4536_v36, %v4528_v33  ;;  %v500_v19 = vmul.f32 %v7697_v7, %v4508_v27  ;;  %v548_v42 = vperm.slane %v4657_v10, 0  ;;  %v4705_v27 = vld [vmem:[%s7497_s1 + $0x20] ss:$8 sm:$0xf] }
  0xb0   : > { %v721_v33 = vperm.slane %v4669_v26, 3  ;;  %7698 = vst [vmem:[#allocation20_spill] sm:$0xff] %v4705_v27 }
  0xb1   : > { %v508_v18 = vadd.f32 %v500_v19, %v452_v5 }
  0xb5   : > { %v4540_v38 = vpop.permute.xlu1 %594 }
  0xb6   : > { %7687 = vst [vmem:[#allocation11_spill] sm:$0xff] %v4540_v38  ;;  %v4542_v39 = vpop.permute.xlu2 %702  ;;  %v4554_v45 = vpop.permute.xlu0 %483  ;;  %v599_v16 = vsel %vm598_vm4, %v4540_v38, %v4516_v30  ;;  %v4707_v30 = vmul.f32 %v609_v11, %v602_v54  ;;  %v4709_v38 = vmul.f32 %v665_v47, %v658_v61  ;;  %v777_v11 = vperm.slane %v4705_v27, 3 }
  0xb7   : > { %v616_v10 = vmul.f32 %v608_v29, %v599_v16  ;;  %v776_v47 = vperm.slane %v4705_v27, 2 }
  0xb8   : > { %v685_v29 = vperm.slane %v4709_v38, 0 }
  0xb9   : > { %v628_v61 = vperm.slane %v616_v10, 0  ;;  %v448_v10 = vadd.f32 %v440_v1, %v384_v0 }
  0xbd   : > { %v4544_v40 = vpop.permute.xlu1 %543 }
  0xbe   : > { %7688 = vst [vmem:[#allocation12_spill] sm:$0xff] %v4544_v40  ;;  %v4546_v41 = vpop.permute.xlu2 %708  ;;  %v556_v37 = vmul.f32 %v548_v42, %v4544_v40 }
  0xbf   : > { %v4563_v50 = vpop.permute.xlu0 %539  ;;  %v714_v5 = vsel %vm7556_vm6, %v4546_v41, %v4542_v39 }
  0xc0   : > { %v564_v16 = vadd.f32 %v556_v37, %v508_v18  ;;  %v553_v0 = vmul.f32 %v549_v63, %v4563_v50 }
  0xc5   : > { %v4550_v43 = vpop.permute.xlu1 %650 }
  0xc6   : > { %7690 = vst [vmem:[#allocation14_spill] sm:$0xff] %v4550_v43  ;;  %v4552_v44 = vpop.permute.xlu2 %758  ;;  %v655_v7 = vsel %vm7557_vm5, %v4550_v43, %v4536_v36  ;;  %v441_v36 = vmul.f32 %v437_v60, %v4532_v35  ;;  %v557_v43 = vmul.f32 %v549_v63, %v4544_v40  ;;  %v629_v60 = vperm.slane %v4707_v30, 0 }
  0xc7   : > { %7691 = vst [vmem:[#allocation15_spill] sm:$0xff] %v4552_v44  ;;  %v4716_v25 = vmul.f32 %v664_v15, %v655_v7 }
  0xc8   : > { %v4613_v13 = vpop.permute.xlu0 %567  ;;  %v565_v38 = vadd.f32 %v557_v43, %v509_v31  ;;  %v7700_v31 = vperm.slane %v4622_v56, 0 }
  0xc9   : > { %v684_v27 = vperm.slane %v4716_v25, 0 }
  0xca   : > { %v497_v25 = vmul.f32 %v7700_v31, %v4554_v45 }
  0xcd   : > { %v4556_v46 = vpop.permute.xlu1 %571 }
  0xce   : > { %7692 = vst [vmem:[#allocation16_spill] sm:$0xff] %v4556_v46  ;;  %v4558_v48 = vpop.permute.xlu2 %764  ;;  %v580_v15 = vmul.f32 %v4556_v46, %v4395_v4  ;;  %v581_v7 = vmul.f32 %v4556_v46, %v4393_v3  ;;  %v7699_v46 = vperm.slane %v4625_v59, 0 }
  0xcf   : > { %v770_v19 = vsel %vm7555_vm7, %v4558_v48, %v4552_v44  ;;  %v729_v44 = vmul.f32 %v721_v33, %v714_v5 }
  0xd0   : > { %v496_v57 = vmul.f32 %v7699_v46, %v4554_v45  ;;  %v588_v33 = vadd.f32 %v580_v15, %v564_v16  ;;  %v589_v43 = vadd.f32 %v581_v7, %v565_v38 }
  0xd1   : > { %v4684_v6 = vpop.permute.xlu0 %619 }
  0xd2   : > { %v504_v56 = vadd.f32 %v496_v57, %v448_v10  ;;  %v632_v57 = vmul.f32 %v628_v61, %v4684_v6 }
  0xd5   : > { %v4570_v52 = vpop.permute.xlu1 %706 }
  0xd6   : > { %v4608_v22 = vpop.permute.xlu2 %675  ;;  %v711_v2 = vsel %vm7556_vm6, %v4570_v52, %v4546_v41  ;;  %v4748_v41 = vmul.f32 %v777_v11, %v770_v19  ;;  %v741_v19 = vperm.slane %v729_v44, 0 }
  0xd7   : > { %v728_v35 = vmul.f32 %v720_v32, %v711_v2  ;;  %v552_v32 = vmul.f32 %v548_v42, %v4563_v50  ;;  %v576_v2 = vmul.f32 %v4613_v13, %v4395_v4  ;;  %v688_v10 = vmul.f32 %v684_v27, %v4608_v22 }
  0xd8   : > { %v689_v31 = vmul.f32 %v685_v29, %v4608_v22 }
  0xd9   : > { %v740_v1 = vperm.slane %v728_v35, 0  ;;  %v560_v15 = vadd.f32 %v552_v32, %v504_v56 }
  0xda   : > { %v4745_v30 = vpop.permute.xlu0 %791 }
  0xdd   : > { %v4615_v28 = vpop.permute.xlu1 %623 }
  0xde   : > { %v637_v18 = vmul.f32 %v629_v60, %v4615_v28 }
  0xdf   : > { %v4671_v62 = vpop.permute.xlu2 %731 }
  0xe3   : > { %v4775_v38 = vpop.permute.xlu0 %818 }
  0xe5   : > { %v4661_v9 = vpop.permute.xlu1 %762 }
  0xe6   : > { %7695 = vst [vmem:[#allocation19_spill] sm:$0xff] %v4661_v9  ;;  %v767_v54 = vsel %vm7555_vm7, %v4661_v9, %v4558_v48  ;;  %v636_v48 = vmul.f32 %v628_v61, %v4615_v28  ;;  %v449_v9 = vadd.f32 %v441_v36, %v385_v14  ;;  %v797_v14 = vperm.slane %v4748_v41, 0 }
  0xe7   : > { %v784_v37 = vmul.f32 %v776_v47, %v767_v54  ;;  %v645_v36 = vadd.f32 %v637_v18, %v589_v43  ;;  %v577_v54 = vmul.f32 %v4613_v13, %v4393_v3  ;;  %v584_v18 = vadd.f32 %v576_v2, %v560_v15 }
  0xe8   : > { %v4750_v40 = vpop.permute.xlu2 %823  ;;  %v644_v46 = vadd.f32 %v636_v48, %v588_v33  ;;  %v505_v47 = vadd.f32 %v497_v25, %v449_v9  ;;  %v633_v9 = vmul.f32 %v629_v60, %v4684_v6  ;;  %v805_v48 = vmul.f32 %v797_v14, %v4745_v30 }
  0xe9   : > { %v796_v59 = vperm.slane %v784_v37, 0  ;;  %v640_v60 = vadd.f32 %v632_v57, %v584_v18  ;;  %v744_v43 = vmul.f32 %v740_v1, %v4671_v62  ;;  %v356_v57 = vperm.slane %v4568_v51, 0 }
  0xea   : > { %v561_v7 = vadd.f32 %v553_v0, %v505_v47 }
  0xeb   : > { %v804_v3 = vmul.f32 %v796_v59, %v4745_v30  ;;  %v696_v32 = vadd.f32 %v688_v10, %v640_v60  ;;  %v4848_v60 = vmul.f32 %v4613_v13, %v4432_v8 }
  0xec   : > { %v585_v37 = vadd.f32 %v577_v54, %v561_v7  ;;  %v718_v7 = vperm.slane %v4669_v26, 0 }
  0xed   : > { %v4729_v58 = vpop.permute.xlu1 %679 }
  0xee   : > { %v692_v11 = vmul.f32 %v684_v27, %v4729_v58  ;;  %v693_v5 = vmul.f32 %v685_v29, %v4729_v58 }
  0xf0   : > { %v700_v42 = vadd.f32 %v692_v11, %v644_v46  ;;  %v701_v16 = vadd.f32 %v693_v5, %v645_v36  ;;  %v399_v25 = vpop.permute.xlu2 %398  ;;  %v641_v11 = vadd.f32 %v633_v9, %v585_v37  ;;  %v745_v5 = vmul.f32 %v741_v19, %v4671_v62 }
  0xf1   : > { %v752_v36 = vadd.f32 %v744_v43, %v696_v32  ;;  %v4859_v32 = vld [vmem:[%s7498_s2 + $0x8] sm:$0xff] }
  0xf2   : > { %v697_v0 = vadd.f32 %v689_v31, %v641_v11  ;;  %v662_v11 = vperm.slane %v4642_v12, 0 }
  0xf4   : > { %v753_v47 = vadd.f32 %v745_v5, %v697_v0  ;;  %v7701_v5 = vld [vmem:[#allocation17_spill] sm:$0xff] }
  0xf6   : > { %v4769_v44 = vpop.permute.xlu1 %735 }
  0xf7   : > { %v748_v63 = vmul.f32 %v740_v1, %v4769_v44  ;;  %v749_v35 = vmul.f32 %v741_v19, %v4769_v44  ;;  %v414_v19 = vperm.slane %v4575_v53, 0 }
  0xf9   : > { %v756_v4 = vadd.f32 %v748_v63, %v700_v42  ;;  %v757_v41 = vadd.f32 %v749_v35, %v701_v16  ;;  %v705_v42 = vpop.permute.xlu0 %704  ;;  %v415_v63 = vperm.slane %v4575_v53, 1  ;;  %v410_v16 = vsel %vm406_vm1, %v4480_v17, %v399_v25  ;;  %v4815_v17 = vld [vmem:[%s7498_s2] sm:$0xff] }
  0xfa   : > { %v409_v35 = vsel %vm406_vm1, %v399_v25, %v4501_v24  ;;  %v357_v53 = vperm.slane %v4568_v51, 1  ;;  %v713_v24 = vsel %vm7556_vm6, %v4542_v39, %v705_v42  ;;  %v422_v9 = vmul.f32 %v414_v19, %v410_v16 }
  0xfb   : > { %v812_v33 = vadd.f32 %v804_v3, %v756_v4  ;;  %v813_v61 = vadd.f32 %v805_v48, %v757_v41  ;;  %v526_v4 = vperm.slane %v4620_v55, 0  ;;  %v527_v3 = vperm.slane %v4620_v55, 1 }
  0xfc   : > { %v423_v41 = vmul.f32 %v415_v63, %v409_v35  ;;  %v719_v39 = vperm.slane %v4669_v26, 1  ;;  %v4844_v10 = vmul.f32 %v718_v7, %v713_v24  ;;  %v434_v31 = vperm.slane %v422_v9, 0  ;;  %v7707_v24 = vld [vmem:[#allocation7_spill] sm:$0xff] }
  0xfd   : > { %v832_v27 = vadd.f32 %v4750_v40, %v812_v33  ;;  %v833_v29 = vadd.f32 %v4750_v40, %v813_v61 }
  0xfe   : > { %v435_v33 = vperm.slane %v423_v41, 0  ;;  %v738_v0 = vperm.slane %v4844_v10, 0  ;;  %v442_v9 = vmul.f32 %v434_v31, %v7707_v24 }
  0xff   : > { %v4793_v46 = vpop.permute.xlu1 %787  ;;  %840 = vst [vmem:[%s4787_s24 + $0x30] sm:$0xff] %v832_v27  ;;  %971 = vmatpush.msra.mxu2 %v832_v27  ;;  %1012 = vmatpush.msra.mxu3 %v833_v29  ;;  %v470_v27 = vperm.slane %v7701_v5, 0 }
 0x100   : > { %841 = vst [vmem:[%s4787_s24 + $0x38] sm:$0xff] %v833_v29  ;;  %v800_v56 = vmul.f32 %v796_v59, %v4793_v46  ;;  %v801_v1 = vmul.f32 %v797_v14, %v4793_v46  ;;  %v511_v59 = vpop.permute.xlu2 %510  ;;  %v471_v29 = vperm.slane %v7701_v5, 1 }
 0x101   : > { %v521_v51 = vsel %vm518_vm3, %v511_v59, %v4530_v34  ;;  %v522_v48 = vsel %vm518_vm3, %v4492_v21, %v511_v59  ;;  %v712_v21 = vsel %vm7556_vm6, %v705_v42, %v4570_v52  ;;  %v663_v52 = vperm.slane %v4642_v12, 1  ;;  %v7704_v42 = vld [vmem:[#allocation10_spill] sm:$0xff] }
 0x102   : > { %v808_v2 = vadd.f32 %v800_v56, %v752_v36  ;;  %v809_v54 = vadd.f32 %v801_v1, %v753_v47  ;;  %v535_v25 = vmul.f32 %v527_v3, %v521_v51  ;;  %v4850_v43 = vmul.f32 %v719_v39, %v712_v21  ;;  %v7702_v36 = vld [vmem:[#allocation9_spill] sm:$0xff] }
 0x103   : > { %v438_v56 = vmul.f32 %v434_v31, %v7702_v36  ;;  %v439_v19 = vmul.f32 %v435_v33, %v7702_v36 }
 0x104   : > { %v828_v15 = vadd.f32 %v4775_v38, %v808_v2  ;;  %v829_v14 = vadd.f32 %v4775_v38, %v809_v54  ;;  %v547_v1 = vperm.slane %v535_v25, 0  ;;  %v7703_v2 = vld [vmem:[#allocation4_spill] sm:$0xff]  ;;  %v739_v35 = vperm.slane %v4850_v43, 0 }
 0x106   : > { %836 = vst [vmem:[%s4787_s24 + $0x10] sm:$0xff] %v828_v15  ;;  %972 = vmatpush.msra.mxu2 %v828_v15  ;;  %1013 = vmatpush.msra.mxu3 %v829_v14 }
 0x107   : > { %837 = vst [vmem:[%s4787_s24 + $0x18] sm:$0xff] %v829_v14  ;;  %v340_v18 = vpop.permute.xlu1 %339  ;;  %3948 = vmatmul.msk.f32.vlgmr.msra.gmra.mxu2 %vm850_vm8, %v4815_v17  ;;  %3956 = vmatmul.msk.f32.vlgmr.msra.gmra.mxu3 %vm850_vm8, %v4815_v17  ;;  %v7705_v14 = vld [vmem:[#allocation6_spill] sm:$0xff] }
 0x108   : > { %v352_v55 = vsel %vm349_vm0, %v340_v18, %v4497_v23  ;;  %v353_v37 = vsel %vm349_vm0, %v4489_v20, %v340_v18  ;;  %v534_v23 = vmul.f32 %v526_v4, %v522_v48  ;;  %v649_v59 = vpop.permute.xlu2 %648  ;;  %v443_v4 = vmul.f32 %v435_v33, %v7707_v24  ;;  %v7708_v18 = vld [vmem:[#allocation18_spill] sm:$0xff]  ;;  %v7715_v24 = vld [vmem:[#allocation13_spill] sm:$0xff] }
 0x109   : > { %v364_v34 = vmul.f32 %v356_v57, %v353_v37  ;;  %v365_v26 = vmul.f32 %v357_v53, %v352_v55  ;;  %v7706_v57 = vld [vmem:[#allocation3_spill] sm:$0xff]  ;;  %v551_v48 = vmul.f32 %v547_v1, %v4563_v50  ;;  %v606_v39 = vperm.slane %v7708_v18, 0  ;;  %v7709_v37 = vld [vmem:[#allocation14_spill] sm:$0xff] }
 0x10a   : > { %v546_v47 = vperm.slane %v534_v23, 0  ;;  %v607_v55 = vperm.slane %v7708_v18, 1  ;;  %v656_v21 = vsel %vm7557_vm5, %v649_v59, %v7709_v37  ;;  %v742_v37 = vmul.f32 %v738_v0, %v4671_v62 }
 0x10b   : > { %v378_v61 = vperm.slane %v364_v34, 0  ;;  %v379_v20 = vperm.slane %v365_v26, 0  ;;  %v7710_v34 = vld [vmem:[#allocation8_spill] sm:$0xff] }
 0x10c   : > { %v550_v51 = vmul.f32 %v546_v47, %v4563_v50  ;;  %v657_v26 = vsel %vm7557_vm5, %v7710_v34, %v649_v59 }
 0x10d   : > { %v382_v54 = vmul.f32 %v378_v61, %v7703_v2  ;;  %v383_v12 = vmul.f32 %v379_v20, %v7703_v2  ;;  %v386_v63 = vmul.f32 %v378_v61, %v7704_v42  ;;  %v387_v15 = vmul.f32 %v379_v20, %v7704_v42  ;;  %v4898_v2 = vld [vmem:[%s7498_s2 + $0x10] sm:$0xff] }
 0x10e   : > { %v7712_v42 = vld [vmem:[#allocation12_spill] sm:$0xff] }
 0x10f   : > { %v455_v16 = vpop.permute.xlu1 %454  ;;  %3949 = vmatmul.msk.f32.gmra.mxu2 %vm850_vm8, %v4859_v32  ;;  %3957 = vmatmul.msk.f32.gmra.mxu3 %vm850_vm8, %v4859_v32  ;;  %v446_v25 = vadd.f32 %v438_v56, %v382_v54  ;;  %v447_v33 = vadd.f32 %v439_v19, %v383_v12  ;;  %v450_v61 = vadd.f32 %v442_v9, %v386_v63 }
 0x110   : > { %v465_v7 = vsel %vm462_vm2, %v455_v16, %v7705_v14  ;;  %v466_v53 = vsel %vm462_vm2, %v7706_v57, %v455_v16  ;;  %v451_v20 = vadd.f32 %v443_v4, %v387_v15  ;;  %v554_v16 = vmul.f32 %v546_v47, %v7712_v42  ;;  %v7713_v14 = vld [vmem:[#allocation2_spill] sm:$0xff]  ;;  %v7714_v57 = vld [vmem:[#allocation11_spill] sm:$0xff] }
 0x111   : > { %v478_v3 = vmul.f32 %v470_v27, %v466_v53  ;;  %v479_v41 = vmul.f32 %v471_v29, %v465_v7  ;;  %v7711_v27 = vld [vmem:[#allocation5_spill] sm:$0xff]  ;;  %v555_v56 = vmul.f32 %v547_v1, %v7712_v42  ;;  %v670_v19 = vmul.f32 %v662_v11, %v657_v26 }
 0x112   : > { %v671_v54 = vmul.f32 %v663_v52, %v656_v21  ;;  %v575_v7 = vmul.f32 %v4613_v13, %v7713_v14  ;;  %v7716_v13 = vld [vmem:[#allocation16_spill] sm:$0xff]  ;;  %v743_v21 = vmul.f32 %v739_v35, %v4671_v62  ;;  %v746_v42 = vmul.f32 %v738_v0, %v4769_v44 }
 0x113   : > { %v490_v31 = vperm.slane %v478_v3, 0  ;;  %v491_v23 = vperm.slane %v479_v41, 0  ;;  %v578_v4 = vmul.f32 %v7716_v13, %v4432_v8  ;;  %v579_v3 = vmul.f32 %v7716_v13, %v7713_v14 }
 0x115   : > { %v494_v50 = vmul.f32 %v490_v31, %v4554_v45  ;;  %v495_v5 = vmul.f32 %v491_v23, %v4554_v45  ;;  %v498_v29 = vmul.f32 %v490_v31, %v7711_v27  ;;  %v499_v36 = vmul.f32 %v491_v23, %v7711_v27  ;;  %v7717_v31 = vld [vmem:[#allocation20_spill] sm:$0xff] }
 0x116   : > { %v774_v23 = vperm.slane %v7717_v31, 0  ;;  %v775_v8 = vperm.slane %v7717_v31, 1 }
 0x117   : > { %v502_v12 = vadd.f32 %v494_v50, %v446_v25  ;;  %v503_v63 = vadd.f32 %v495_v5, %v447_v33  ;;  %v506_v59 = vadd.f32 %v498_v29, %v450_v61  ;;  %v507_v15 = vadd.f32 %v499_v36, %v451_v20  ;;  %v593_v45 = vpop.permute.xlu1 %592  ;;  %3950 = vmatmul.msk.f32.gmra.mxu2 %vm850_vm8, %v4898_v2  ;;  %v4930_v61 = vld [vmem:[%s7498_s2 + $0x18] sm:$0xff] }
 0x118   : > { %v600_v53 = vsel %vm598_vm4, %v593_v45, %v7714_v57  ;;  %v601_v47 = vsel %vm598_vm4, %v7715_v24, %v593_v45  ;;  %3958 = vmatmul.msk.f32.gmra.mxu3 %vm850_vm8, %v4898_v2  ;;  %v4319_v45 = vmov 16   ;;  %v846_v24 = vld [vmem:[%s7498_s2 + $0x20] sm:$0xff] }
 0x119   : > { %v558_v11 = vadd.f32 %v550_v51, %v502_v12  ;;  %v559_v52 = vadd.f32 %v551_v48, %v503_v63  ;;  %v562_v1 = vadd.f32 %v554_v16, %v506_v59  ;;  %v563_v9 = vadd.f32 %v555_v56, %v507_v15  ;;  %v7719_v63 = vld [vmem:[#allocation15_spill] sm:$0xff]  ;;  %4127 = vset.pattern.permute.xlu1 %v4319_v45 }
 0x11a   : > { %v614_v41 = vmul.f32 %v606_v39, %v601_v47  ;;  %v615_v18 = vmul.f32 %v607_v55, %v600_v53  ;;  %v682_v51 = vperm.slane %v670_v19, 0  ;;  %v683_v48 = vperm.slane %v671_v54, 0  ;;  %1080 = vperm.xlu1 %4127, %v4898_v2   ;;  %4126 = vset.pattern.permute.xlu0 %v4319_v45 }
 0x11b   : > { %v582_v25 = vadd.f32 %v4848_v60, %v558_v11  ;;  %v583_v39 = vadd.f32 %v575_v7, %v559_v52  ;;  %v586_v55 = vadd.f32 %v578_v4, %v562_v1  ;;  %v587_v33 = vadd.f32 %v579_v3, %v563_v9  ;;  %1076 = vperm.xlu0 %4126, %v4859_v32  }
 0x11c   : > { %v626_v34 = vperm.slane %v614_v41, 0  ;;  %v627_v26 = vperm.slane %v615_v18, 0  ;;  %v686_v27 = vmul.f32 %v682_v51, %v4608_v22  ;;  %v690_v60 = vmul.f32 %v682_v51, %v4729_v58  ;;  %4125 = vset.pattern.permute.xlu2 %v4319_v45  ;;  %v847_v51 = vld [vmem:[%s7498_s2 + $0x28] sm:$0xff] }
 0x11d   : > { %v691_v29 = vmul.f32 %v683_v48, %v4729_v58  ;;  %1072 = vperm.xlu2 %4125, %v4815_v17  }
 0x11e   : > { %v630_v62 = vmul.f32 %v626_v34, %v4684_v6  ;;  %v631_v20 = vmul.f32 %v627_v26, %v4684_v6  ;;  %v634_v50 = vmul.f32 %v626_v34, %v4615_v28  ;;  %v635_v5 = vmul.f32 %v627_v26, %v4615_v28  ;;  %v7718_v6 = vld [vmem:[#allocation19_spill] sm:$0xff] }
 0x11f   : > { %v761_v36 = vpop.permute.xlu1 %760  ;;  %3951 = vmatmul.msk.f32.gmra.mxu2 %vm850_vm8, %v4930_v61  ;;  %v687_v28 = vmul.f32 %v683_v48, %v4608_v22  ;;  %v747_v22 = vmul.f32 %v739_v35, %v4769_v44 }
 0x120   : > { %v638_v16 = vadd.f32 %v630_v62, %v582_v25  ;;  %v639_v56 = vadd.f32 %v631_v20, %v583_v39  ;;  %v642_v19 = vadd.f32 %v634_v50, %v586_v55  ;;  %v643_v54 = vadd.f32 %v635_v5, %v587_v33  ;;  %3959 = vmatmul.msk.f32.gmra.mxu3 %vm850_vm8, %v4930_v61 }
 0x121   : > { %v768_v12 = vsel %vm7555_vm7, %v761_v36, %v7718_v6  ;;  %v769_v58 = vsel %vm7555_vm7, %v7719_v63, %v761_v36 }
 0x122   : > { %v782_v10 = vmul.f32 %v774_v23, %v769_v58  ;;  %v783_v0 = vmul.f32 %v775_v8, %v768_v12  ;;  %v698_v59 = vadd.f32 %v690_v60, %v642_v19  ;;  %v699_v15 = vadd.f32 %v691_v29, %v643_v54  ;;  %1088 = vperm.xlu1 %4127, %v846_v24  }
 0x123   : > { %v694_v14 = vadd.f32 %v686_v27, %v638_v16  ;;  %v695_v7 = vadd.f32 %v687_v28, %v639_v56 }
 0x124   : > { %v794_v57 = vperm.slane %v782_v10, 0  ;;  %v795_v53 = vperm.slane %v783_v0, 0  ;;  %v754_v47 = vadd.f32 %v746_v42, %v698_v59  ;;  %v755_v11 = vadd.f32 %v747_v22, %v699_v15 }
 0x125   : > { %v750_v52 = vadd.f32 %v742_v37, %v694_v14  ;;  %v751_v1 = vadd.f32 %v743_v21, %v695_v7  ;;  %1084 = vperm.xlu2 %4125, %v4930_v61  }
 0x126   : > { %v802_v44 = vmul.f32 %v794_v57, %v4745_v30  ;;  %v803_v43 = vmul.f32 %v795_v53, %v4745_v30  ;;  %v798_v35 = vmul.f32 %v794_v57, %v4793_v46  ;;  %v799_v9 = vmul.f32 %v795_v53, %v4793_v46  ;;  %v848_v46 = vld [vmem:[%s7498_s2 + $0x30] sm:$0xff] }
 0x127   : > { %3952 = vmatmul.msk.f32.gmra.mxu2 %vm850_vm8, %v846_v24  ;;  %1096 = vperm.xlu0 %4126, %v848_v46  }
 0x128   : > { %v810_v13 = vadd.f32 %v802_v44, %v754_v47  ;;  %v811_v4 = vadd.f32 %v803_v43, %v755_v11  ;;  %v806_v3 = vadd.f32 %v798_v35, %v750_v52  ;;  %v807_v41 = vadd.f32 %v799_v9, %v751_v1  ;;  %3960 = vmatmul.msk.f32.gmra.mxu3 %vm850_vm8, %v846_v24 }
 0x12a   : > { %v830_v18 = vadd.f32 %v4750_v40, %v810_v13  ;;  %v831_v37 = vadd.f32 %v4750_v40, %v811_v4  ;;  %v826_v30 = vadd.f32 %v4775_v38, %v806_v3  ;;  %v827_v21 = vadd.f32 %v4775_v38, %v807_v41  ;;  %v849_v40 = vld [vmem:[%s7498_s2 + $0x38] sm:$0xff] }
 0x12b   : > { %1100 = vperm.xlu1 %4127, %v849_v40   ;;  %v7720_v38 = vmov 1  }
 0x12c   : > { %838 = vst [vmem:[%s4787_s24 + $0x20] sm:$0xff] %v830_v18  ;;  %889 = vmatpush.msra.mxu0 %v830_v18  ;;  %930 = vmatpush.msra.mxu1 %v831_v37 }
 0x12d   : > { %839 = vst [vmem:[%s4787_s24 + $0x28] sm:$0xff] %v831_v37  ;;  %1092 = vperm.xlu2 %4125, %v847_v51  }
 0x12e   : > { %834 = vst [vmem:[%s4787_s24] sm:$0xff] %v826_v30  ;;  %890 = vmatpush.msra.mxu0 %v826_v30  ;;  %931 = vmatpush.msra.mxu1 %v827_v21 }
 0x12f   : > { %835 = vst [vmem:[%s4787_s24 + $0x8] sm:$0xff] %v827_v21  ;;  %3932 = vmatmul.msk.f32.vlgmr.msra.gmra.mxu0 %vm850_vm8, %v4815_v17  ;;  %3940 = vmatmul.msk.f32.vlgmr.msra.gmra.mxu1 %vm850_vm8, %v4815_v17  ;;  %v7721_v17 = vmov 2  }
 0x130   : > { %3953 = vmatmul.msk.f32.gmra.mxu2 %vm850_vm8, %v847_v51  ;;  %3961 = vmatmul.msk.f32.gmra.mxu3 %vm850_vm8, %v847_v51 }
 0x131   : > { %4129 = vset.pattern.permute.xlu0 %v7720_v38 }
 0x133   : > { %4130 = vset.pattern.permute.xlu1 %v7721_v17 }
 0x135   : > { %4128 = vset.pattern.permute.xlu2 %v7720_v38 }
 0x137   : > { %3933 = vmatmul.msk.f32.gmra.mxu0 %vm850_vm8, %v4859_v32  ;;  %3941 = vmatmul.msk.f32.gmra.mxu1 %vm850_vm8, %v4859_v32 }
 0x138   : > { %3954 = vmatmul.msk.f32.gmra.mxu2 %vm850_vm8, %v848_v46  ;;  %3962 = vmatmul.msk.f32.gmra.mxu3 %vm850_vm8, %v848_v46 }
 0x13f   : > { %3934 = vmatmul.msk.f32.gmra.mxu0 %vm850_vm8, %v4898_v2  ;;  %3942 = vmatmul.msk.f32.gmra.mxu1 %vm850_vm8, %v4898_v2 }
 0x140   : > { %3955 = vmatmul.msk.f32.gmra.mxu2 %vm850_vm8, %v849_v40  ;;  %3963 = vmatmul.msk.f32.gmra.mxu3 %vm850_vm8, %v849_v40 }
 0x147   : > { %3935 = vmatmul.msk.f32.gmra.mxu0 %vm850_vm8, %v4930_v61  ;;  %3943 = vmatmul.msk.f32.gmra.mxu1 %vm850_vm8, %v4930_v61 }
 0x14f   : > { %3936 = vmatmul.msk.f32.gmra.mxu0 %vm850_vm8, %v846_v24  ;;  %3944 = vmatmul.msk.f32.gmra.mxu1 %vm850_vm8, %v846_v24 }
 0x157   : > { %3937 = vmatmul.msk.f32.gmra.mxu0 %vm850_vm8, %v847_v51  ;;  %3945 = vmatmul.msk.f32.gmra.mxu1 %vm850_vm8, %v847_v51 }
 0x15f   : > { %3938 = vmatmul.msk.f32.gmra.mxu0 %vm850_vm8, %v848_v46  ;;  %3946 = vmatmul.msk.f32.gmra.mxu1 %vm850_vm8, %v848_v46 }
 0x167   : > { %3939 = vmatmul.msk.f32.gmra.mxu0 %vm850_vm8, %v849_v40  ;;  %3947 = vmatmul.msk.f32.gmra.mxu1 %vm850_vm8, %v849_v40 }
 0x177   : > { %v5019_v25 = vpop.permute.xlu2 %1072 }
 0x17f   : > { %v5039_v54 = vpop.permute.xlu2 %1084 }
 0x187   : > { %v5069_v9 = vpop.permute.xlu2 %1092 }
 0x18a   : > { %v974_v32 = vpop.f32.mrf.mxu2  ;;  %v1015_v2 = vpop.f32.mrf.mxu3 }
 0x18b   : > { %v1041_v39 = vmul.f32 2.0, %v974_v32  ;;  %v1042_v33 = vmul.f32 2.0, %v1015_v2 }
 0x18c   : > { %v5034_v56 = vpop.permute.xlu1 %1080 }
 0x18d   : > { %v5021_v20 = vpop.permute.xlu0 %1076  ;;  %v5026_v60 = vsub.f32 %v5019_v25, %v1041_v39  ;;  %v5032_v16 = vsub.f32 %v5019_v25, %v1042_v33 }
 0x192   : > { %v977_v48 = vpop.f32.mrf.mxu2  ;;  %v1018_v34 = vpop.f32.mrf.mxu3 }
 0x193   : > { %v1045_v55 = vmul.f32 2.0, %v977_v48  ;;  %v1046_v61 = vmul.f32 2.0, %v1018_v34 }
 0x194   : > { %v5059_v47 = vpop.permute.xlu1 %1088 }
 0x195   : > { %v5029_v29 = vsub.f32 %v5021_v20, %v1045_v55  ;;  %v5037_v19 = vsub.f32 %v5021_v20, %v1046_v61 }
 0x197   : > { %v1161_v12 = vmin.f32 %v5026_v60, %v5029_v29  ;;  %v1174_v10 = vmin.f32 %v5032_v16, %v5037_v19 }
 0x199   : > { %v5079_v40 = vpop.permute.xlu0 %1096 }
 0x19a   : > { %v980_v26 = vpop.f32.mrf.mxu2 }
 0x19b   : > { %v1021_v31 = vpop.f32.mrf.mxu3  ;;  %v1049_v50 = vmul.f32 2.0, %v980_v26 }
 0x19c   : > { %v1050_v36 = vmul.f32 2.0, %v1021_v31 }
 0x19d   : > { %v5042_v6 = vsub.f32 %v5034_v56, %v1049_v50  ;;  %v5089_v31 = vpop.permute.xlu1 %1100 }
 0x19e   : > { %v5047_v58 = vsub.f32 %v5034_v56, %v1050_v36 }
 0x19f   : > { %v1162_v14 = vmin.f32 %v1161_v12, %v5042_v6 }
 0x1a0   : > { %v1175_v24 = vmin.f32 %v1174_v10, %v5047_v58 }
 0x1a2   : > { %v983_v23 = vpop.f32.mrf.mxu2 }
 0x1a3   : > { %v1024_v8 = vpop.f32.mrf.mxu3  ;;  %v1053_v28 = vmul.f32 2.0, %v983_v23 }
 0x1a4   : > { %v1054_v63 = vmul.f32 2.0, %v1024_v8 }
 0x1a5   : > { %v5052_v22 = vsub.f32 %v5039_v54, %v1053_v28 }
 0x1a6   : > { %v5056_v53 = vsub.f32 %v5039_v54, %v1054_v63  ;;  %v7722_v63 = vlaneseq }
 0x1a7   : > { %v1163_v52 = vmin.f32 %v1162_v14, %v5052_v22 }
 0x1a8   : > { %v1176_v43 = vmin.f32 %v1175_v24, %v5056_v53  ;;  %v1188_v10 = vshrl.u32 %v7722_v63, 7 }
 0x1aa   : > { %v986_v62 = vpop.f32.mrf.mxu2 }
 0x1ab   : > { %v1027_v5 = vpop.f32.mrf.mxu3  ;;  %v1057_v59 = vmul.f32 2.0, %v986_v62 }
 0x1ac   : > { %v5023_v27 = vpop.f32.mrf.mxu0  ;;  %v933_v42 = vpop.f32.mrf.mxu1  ;;  %v1058_v7 = vmul.f32 2.0, %v1027_v5 }
 0x1ad   : > { %v5063_v1 = vsub.f32 %v5059_v47, %v1057_v59  ;;  %v1039_v59 = vmul.f32 2.0, %v5023_v27 }
 0x1ae   : > { %v5067_v35 = vsub.f32 %v5059_v47, %v1058_v7  ;;  %v1040_v7 = vmul.f32 2.0, %v933_v42 }
 0x1af   : > { %v1164_v18 = vmin.f32 %v1163_v52, %v5063_v1 }
 0x1b0   : > { %v1177_v46 = vmin.f32 %v1176_v43, %v5067_v35  ;;  %v5110_v42 = vsub.f32 %v5019_v25, %v1040_v7  ;;  %v5135_v7 = vcvt.s32.f32 %v1188_v10 }
 0x1b3   : > { %v989_v0 = vpop.f32.mrf.mxu2  ;;  %v1030_v15 = vpop.f32.mrf.mxu3 }
 0x1b4   : > { %v895_v45 = vpop.f32.mrf.mxu0  ;;  %v936_v57 = vpop.f32.mrf.mxu1  ;;  %v1061_v11 = vmul.f32 2.0, %v989_v0  ;;  %v1062_v44 = vmul.f32 2.0, %v1030_v15 }
 0x1b5   : > { %v1043_v24 = vmul.f32 2.0, %v895_v45 }
 0x1b6   : > { %v5073_v37 = vsub.f32 %v5069_v9, %v1061_v11  ;;  %v5077_v51 = vsub.f32 %v5069_v9, %v1062_v44  ;;  %v1044_v11 = vmul.f32 2.0, %v936_v57 }
 0x1b7   : > { %v5107_v27 = vsub.f32 %v5021_v20, %v1043_v24 }
 0x1b8   : > { %v1165_v32 = vmin.f32 %v1164_v18, %v5073_v37  ;;  %v1178_v48 = vmin.f32 %v1177_v46, %v5077_v51  ;;  %v1190_v46 = vadd.s32 16, %v1188_v10  ;;  %v5113_v45 = vsub.f32 %v5021_v20, %v1044_v11 }
 0x1bb   : > { %v992_v13 = vpop.f32.mrf.mxu2  ;;  %v1033_v3 = vpop.f32.mrf.mxu3 }
 0x1bc   : > { %v1065_v4 = vmul.f32 2.0, %v992_v13  ;;  %v898_v41 = vpop.f32.mrf.mxu0  ;;  %v1066_v30 = vmul.f32 2.0, %v1033_v3  ;;  %v939_v21 = vpop.f32.mrf.mxu1  ;;  %v1189_v3 = vadd.s32 8, %v1188_v10 }
 0x1bd   : > { %v1047_v43 = vmul.f32 2.0, %v898_v41 }
 0x1be   : > { %v5083_v2 = vsub.f32 %v5079_v40, %v1065_v4  ;;  %v5087_v34 = vsub.f32 %v5079_v40, %v1066_v30  ;;  %v1048_v4 = vmul.f32 2.0, %v939_v21  ;;  %v5104_v30 = vsub.f32 %v5019_v25, %v1039_v59 }
 0x1bf   : > { %v5116_v41 = vsub.f32 %v5034_v56, %v1047_v43  ;;  %v1194_v25 = vadd.s32 48, %v1188_v10  ;;  %v5137_v24 = vcvt.s32.f32 %v1189_v3 }
 0x1c0   : > { %v1166_v39 = vmin.f32 %v1165_v32, %v5083_v2  ;;  %v1179_v61 = vmin.f32 %v1178_v48, %v5087_v34  ;;  %v1191_v32 = vadd.s32 24, %v1188_v10 }
 0x1c3   : > { %v995_v26 = vpop.f32.mrf.mxu2  ;;  %v1036_v8 = vpop.f32.mrf.mxu3 }
 0x1c4   : > { %v1069_v23 = vmul.f32 2.0, %v995_v26  ;;  %v901_v55 = vpop.f32.mrf.mxu0  ;;  %v1070_v33 = vmul.f32 2.0, %v1036_v8  ;;  %v942_v62 = vpop.f32.mrf.mxu1  ;;  %v5119_v8 = vsub.f32 %v5034_v56, %v1048_v4 }
 0x1c5   : > { %v1051_v21 = vmul.f32 2.0, %v901_v55  ;;  %v1052_v26 = vmul.f32 2.0, %v942_v62  ;;  %v1148_v55 = vmin.f32 %v5110_v42, %v5113_v45  ;;  %v1195_v62 = vadd.s32 56, %v1188_v10 }
 0x1c6   : > { %v5094_v50 = vsub.f32 %v5089_v31, %v1069_v23  ;;  %v5097_v5 = vsub.f32 %v5089_v31, %v1070_v33 }
 0x1c8   : > { %v1167_v36 = vmin.f32 %v1166_v39, %v5094_v50  ;;  %v1180_v28 = vmin.f32 %v1179_v61, %v5097_v5 }
 0x1ca   : > { %v1168_v12 = vrot.slane %v1167_v36, 4  ;;  %v1181_v0 = vrot.slane %v1180_v28, 4 }
 0x1cc   : > { %v1169_v15 = vmin.f32 %v1167_v36, %v1168_v12  ;;  %v904_v14 = vpop.f32.mrf.mxu0  ;;  %v1182_v52 = vmin.f32 %v1180_v28, %v1181_v0  ;;  %v945_v44 = vpop.f32.mrf.mxu1  ;;  %v1192_v36 = vadd.s32 32, %v1188_v10  ;;  %v1193_v28 = vadd.s32 40, %v1188_v10 }
 0x1cd   : > { %v1055_v33 = vmul.f32 2.0, %v904_v14  ;;  %v1056_v61 = vmul.f32 2.0, %v945_v44  ;;  %v1135_v0 = vmin.f32 %v5104_v30, %v5107_v27  ;;  %v5133_v14 = vsub.f32 %v5039_v54, %v1052_v26 }
 0x1ce   : > { %v1170_v13 = vrot.slane %v1169_v15, 2  ;;  %v1183_v18 = vrot.slane %v1182_v52, 2  ;;  %v5157_v10 = vcvt.s32.f32 %v1191_v32 }
 0x1cf   : > { %v1136_v11 = vmin.f32 %v1135_v0, %v5116_v41  ;;  %v5142_v44 = vsub.f32 %v5059_v47, %v1055_v33  ;;  %v5145_v43 = vsub.f32 %v5059_v47, %v1056_v61  ;;  %v5161_v47 = vcvt.s32.f32 %v1193_v28 }
 0x1d0   : > { %v1171_v48 = vmin.f32 %v1169_v15, %v1170_v13  ;;  %v1184_v57 = vmin.f32 %v1182_v52, %v1183_v18  ;;  %v5130_v15 = vsub.f32 %v5039_v54, %v1051_v21  ;;  %v1149_v52 = vmin.f32 %v1148_v55, %v5119_v8 }
 0x1d1   : > { %v5155_v54 = vcvt.s32.f32 %v1190_v46  ;;  %v5159_v13 = vcvt.s32.f32 %v1192_v36  ;;  %v5173_v18 = vcvt.s32.f32 %v1194_v25  ;;  %v5175_v46 = vcvt.s32.f32 %v1195_v62 }
 0x1d2   : > { %v1172_v23 = vrot.slane %v1171_v48, 1  ;;  %v1185_v39 = vrot.slane %v1184_v57, 1  ;;  %v1137_v4 = vmin.f32 %v1136_v11, %v5130_v15 }
 0x1d4   : > { %v5121_v12 = vmin.f32 %v1171_v48, %v1172_v23  ;;  %v907_v20 = vpop.f32.mrf.mxu0  ;;  %v5127_v59 = vmin.f32 %v1184_v57, %v1185_v39  ;;  %v948_v56 = vpop.f32.mrf.mxu1  ;;  %v1138_v32 = vmin.f32 %v1137_v4, %v5142_v44 }
 0x1d5   : > { %v1059_v21 = vmul.f32 2.0, %v907_v20  ;;  %v1060_v33 = vmul.f32 2.0, %v948_v56 }
 0x1d6   : > { %vm1206_vm9 = vcmp.le.f32.partialorder %v5026_v60, %v5121_v12  ;;  %vm1207_vm10 = vcmp.le.f32.partialorder %v5032_v16, %v5127_v59  ;;  %vm1210_vm11 = vcmp.le.f32.partialorder %v5029_v29, %v5121_v12  ;;  %vm1211_vm12 = vcmp.le.f32.partialorder %v5037_v19, %v5127_v59 }
 0x1d7   : > { %v1150_v60 = vmin.f32 %v1149_v52, %v5133_v14  ;;  %vm1214_vm13 = vcmp.le.f32.partialorder %v5042_v6, %v5121_v12  ;;  %vm1215_vm14 = vcmp.le.f32.partialorder %v5047_v58, %v5127_v59  ;;  %v1238_v29 = vsel %vm1206_vm9, %v5135_v7, 64.0 }
 0x1d8   : > { %v1239_v16 = vsel %vm1207_vm10, %v5135_v7, 64.0  ;;  %v1242_v19 = vsel %vm1210_vm11, %v5137_v24, 64.0  ;;  %v1243_v3 = vsel %vm1211_vm12, %v5137_v24, 64.0  ;;  %vm1218_vm15 = vcmp.le.f32.partialorder %v5052_v22, %v5121_v12 }
 0x1d9   : > { %v1151_v48 = vmin.f32 %v1150_v60, %v5145_v43  ;;  %v1246_v58 = vsel %vm1214_vm13, %v5155_v54, 64.0  ;;  %v1247_v57 = vsel %vm1215_vm14, %v5155_v54, 64.0  ;;  %vm1219_vm9 = vcmp.le.f32.partialorder %v5056_v53, %v5127_v59 }
 0x1da   : > { %v1294_v23 = vmin.f32 %v1238_v29, %v1242_v19  ;;  %v1307_v39 = vmin.f32 %v1239_v16, %v1243_v3  ;;  %vm1222_vm10 = vcmp.le.f32.partialorder %v5063_v1, %v5121_v12  ;;  %vm1223_vm11 = vcmp.le.f32.partialorder %v5067_v35, %v5127_v59 }
 0x1db   : > { %vm1226_vm12 = vcmp.le.f32.partialorder %v5073_v37, %v5121_v12  ;;  %vm1227_vm13 = vcmp.le.f32.partialorder %v5077_v51, %v5127_v59  ;;  %vm1230_vm14 = vcmp.le.f32.partialorder %v5083_v2, %v5121_v12  ;;  %v1250_v53 = vsel %vm1218_vm15, %v5157_v10, 64.0 }
 0x1dc   : > { %v910_v6 = vpop.f32.mrf.mxu0  ;;  %v951_v26 = vpop.f32.mrf.mxu1  ;;  %v1295_v36 = vmin.f32 %v1294_v23, %v1246_v58  ;;  %v1308_v28 = vmin.f32 %v1307_v39, %v1247_v57  ;;  %v1251_v20 = vsel %vm1219_vm9, %v5157_v10, 64.0  ;;  %v5201_v0 = vsub.f32 %v5069_v9, %v1059_v21 }
 0x1dd   : > { %v1063_v61 = vmul.f32 2.0, %v910_v6  ;;  %v1064_v25 = vmul.f32 2.0, %v951_v26  ;;  %vm1231_vm7 = vcmp.le.f32.partialorder %v5087_v34, %v5127_v59  ;;  %v5206_v56 = vsub.f32 %v5069_v9, %v1060_v33 }
 0x1de   : > { %v1296_v55 = vmin.f32 %v1295_v36, %v1250_v53  ;;  %v1309_v62 = vmin.f32 %v1308_v28, %v1251_v20  ;;  %vm1234_vm6 = vcmp.le.f32.partialorder %v5094_v50, %v5121_v12  ;;  %v1254_v22 = vsel %vm1222_vm10, %v5159_v13, 64.0 }
 0x1df   : > { %v1255_v11 = vsel %vm1223_vm11, %v5159_v13, 64.0  ;;  %v5219_v52 = vsub.f32 %v5079_v40, %v1063_v61  ;;  %vm1235_vm15 = vcmp.le.f32.partialorder %v5097_v5, %v5127_v59  ;;  %v5224_v60 = vsub.f32 %v5079_v40, %v1064_v25 }
 0x1e0   : > { %v1297_v9 = vmin.f32 %v1296_v55, %v1254_v22  ;;  %v1310_v4 = vmin.f32 %v1309_v62, %v1255_v11  ;;  %v1258_v1 = vsel %vm1226_vm12, %v5161_v47, 64.0  ;;  %v1259_v35 = vsel %vm1227_vm13, %v5161_v47, 64.0 }
 0x1e1   : > { %v1139_v16 = vmin.f32 %v1138_v32, %v5201_v0  ;;  %v1152_v40 = vmin.f32 %v1151_v48, %v5206_v56  ;;  %v1262_v37 = vsel %vm1230_vm14, %v5173_v18, 64.0  ;;  %v1263_v51 = vsel %vm1231_vm7, %v5173_v18, 64.0 }
 0x1e2   : > { %v1298_v6 = vmin.f32 %v1297_v9, %v1258_v1  ;;  %v1311_v58 = vmin.f32 %v1310_v4, %v1259_v35  ;;  %v1266_v2 = vsel %vm1234_vm6, %v5175_v46, 64.0  ;;  %v1267_v34 = vsel %vm1235_vm15, %v5175_v46, 64.0 }
 0x1e3   : > { %v1140_v21 = vmin.f32 %v1139_v16, %v5219_v52  ;;  %v1153_v48 = vmin.f32 %v1152_v40, %v5224_v60 }
 0x1e4   : > { %v913_v29 = vpop.f32.mrf.mxu0  ;;  %v954_v3 = vpop.f32.mrf.mxu1  ;;  %v1299_v26 = vmin.f32 %v1298_v6, %v1262_v37  ;;  %v1312_v23 = vmin.f32 %v1311_v58, %v1263_v51 }
 0x1e5   : > { %v1067_v19 = vmul.f32 2.0, %v913_v29  ;;  %v1068_v57 = vmul.f32 2.0, %v954_v3 }
 0x1e6   : > { %v1300_v61 = vmin.f32 %v1299_v26, %v1266_v2  ;;  %v1313_v36 = vmin.f32 %v1312_v23, %v1267_v34  ;;  %v4320_v2 = vmov 1.0  }
 0x1e7   : > { %v5246_v32 = vsub.f32 %v5089_v31, %v1067_v19  ;;  %v5250_v39 = vsub.f32 %v5089_v31, %v1068_v57 }
 0x1e8   : > { %v1301_v53 = vrot.slane %v1300_v61, 4  ;;  %v1314_v31 = vrot.slane %v1313_v36, 4 }
 0x1e9   : > { %v1141_v33 = vmin.f32 %v1140_v21, %v5246_v32  ;;  %v1154_v28 = vmin.f32 %v1153_v48, %v5250_v39 }
 0x1ea   : > { %v1302_v62 = vmin.f32 %v1300_v61, %v1301_v53  ;;  %v1315_v22 = vmin.f32 %v1313_v36, %v1314_v31 }
 0x1eb   : > { %v1142_v25 = vrot.slane %v1141_v33, 4  ;;  %v1155_v20 = vrot.slane %v1154_v28, 4 }
 0x1ec   : > { %v1303_v11 = vrot.slane %v1302_v62, 2  ;;  %v1316_v9 = vrot.slane %v1315_v22, 2 }
 0x1ed   : > { %v1143_v55 = vmin.f32 %v1141_v33, %v1142_v25  ;;  %v1156_v50 = vmin.f32 %v1154_v28, %v1155_v20 }
 0x1ee   : > { %v1304_v1 = vmin.f32 %v1302_v62, %v1303_v11  ;;  %v1317_v35 = vmin.f32 %v1315_v22, %v1316_v9 }
 0x1ef   : > { %v1144_v12 = vrot.slane %v1143_v55, 2  ;;  %v1157_v4 = vrot.slane %v1156_v50, 2 }
 0x1f0   : > { %v1305_v6 = vrot.slane %v1304_v1, 1  ;;  %v1318_v58 = vrot.slane %v1317_v35, 1 }
 0x1f1   : > { %v1145_v5 = vmin.f32 %v1143_v55, %v1144_v12  ;;  %v1158_v59 = vmin.f32 %v1156_v50, %v1157_v4  ;;  %v1416_v50 = vld [vmem:[%s7499_s3] sm:$0xff] }
 0x1f3   : > { %v1146_v29 = vrot.slane %v1145_v5, 1  ;;  %v1159_v16 = vrot.slane %v1158_v59, 1 }
 0x1f5   : > { %v1147_v19 = vmin.f32 %v1145_v5, %v1146_v29  ;;  %v5264_v3 = vmin.f32 %v1158_v59, %v1159_v16 }
 0x1f7   : > { %vm1204_vm6 = vcmp.le.f32.partialorder %v5104_v30, %v1147_v19  ;;  %vm1208_vm7 = vcmp.le.f32.partialorder %v5107_v27, %v1147_v19  ;;  %vm1212_vm9 = vcmp.le.f32.partialorder %v5116_v41, %v1147_v19  ;;  %vm1216_vm10 = vcmp.le.f32.partialorder %v5130_v15, %v1147_v19 }
 0x1f8   : > { %v1236_v40 = vsel %vm1204_vm6, %v5135_v7, 64.0  ;;  %v1240_v57 = vsel %vm1208_vm7, %v5137_v24, 64.0  ;;  %vm1205_vm11 = vcmp.le.f32.partialorder %v5110_v42, %v5264_v3  ;;  %vm1209_vm12 = vcmp.le.f32.partialorder %v5113_v45, %v5264_v3 }
 0x1f9   : > { %v1268_v37 = vmin.f32 %v1236_v40, %v1240_v57  ;;  %v5274_v30 = vmin.f32 %v1304_v1, %v1305_v6  ;;  %v5276_v27 = vmin.f32 %v1317_v35, %v1318_v58  ;;  %vm1220_vm13 = vcmp.le.f32.partialorder %v5142_v44, %v1147_v19  ;;  %v1417_v1 = vld [vmem:[%s7499_s3 + $0x8] sm:$0xff] }
 0x1fa   : > { %v1244_v41 = vsel %vm1212_vm9, %v5155_v54, 64.0  ;;  %vm1213_vm14 = vcmp.le.f32.partialorder %v5119_v8, %v5264_v3  ;;  %v1237_v15 = vsel %vm1205_vm11, %v5135_v7, 64.0  ;;  %v1241_v21 = vsel %vm1209_vm12, %v5137_v24, 64.0 }
 0x1fb   : > { %v1269_v51 = vmin.f32 %v1268_v37, %v1244_v41  ;;  %vm1224_vm15 = vcmp.le.f32.partialorder %v5201_v0, %v1147_v19  ;;  %vm1228_vm6 = vcmp.le.f32.partialorder %v5219_v52, %v1147_v19  ;;  %v1248_v42 = vsel %vm1216_vm10, %v5157_v10, 64.0 }
 0x1fc   : > { %vm1232_vm7 = vcmp.le.f32.partialorder %v5246_v32, %v1147_v19  ;;  %vm1217_vm9 = vcmp.le.f32.partialorder %v5133_v14, %v5264_v3  ;;  %v1281_v44 = vmin.f32 %v1237_v15, %v1241_v21  ;;  %v1252_v26 = vsel %vm1220_vm13, %v5159_v13, 64.0 }
 0x1fd   : > { %v1270_v45 = vmin.f32 %v1269_v51, %v1248_v42  ;;  %v1245_v8 = vsel %vm1213_vm14, %v5155_v54, 64.0  ;;  %vm1350_vm11 = vcmp.eq.f32.partialorder %v5175_v46, %v5274_v30  ;;  %vm1351_vm12 = vcmp.eq.f32.partialorder %v5175_v46, %v5276_v27 }
 0x1fe   : > { %vm1221_vm10 = vcmp.le.f32.partialorder %v5145_v43, %v5264_v3  ;;  %v1282_v48 = vmin.f32 %v1281_v44, %v1245_v8  ;;  %4016 = vmatpush.msk.msrb.mxu2 %vm1350_vm11, %v4320_v2  ;;  %4026 = vmatpush.msk.msrb.mxu3 %vm1351_vm12, %v4320_v2  ;;  %v1256_v14 = vsel %vm1224_vm15, %v5161_v47, 64.0  ;;  %v1249_v34 = vsel %vm1217_vm9, %v5157_v10, 64.0 }
 0x1ff   : > { %v1271_v23 = vmin.f32 %v1270_v45, %v1252_v26  ;;  %vm1346_vm13 = vcmp.eq.f32.partialorder %v5173_v18, %v5274_v30  ;;  %vm1347_vm14 = vcmp.eq.f32.partialorder %v5173_v18, %v5276_v27  ;;  %vm1225_vm5 = vcmp.le.f32.partialorder %v5206_v56, %v5264_v3 }
 0x200   : > { %v1283_v43 = vmin.f32 %v1282_v48, %v1249_v34  ;;  %4017 = vmatpush.msk.msrb.mxu2 %vm1346_vm13, %v4320_v2  ;;  %4027 = vmatpush.msk.msrb.mxu3 %vm1347_vm14, %v4320_v2  ;;  %v1260_v0 = vsel %vm1228_vm6, %v5173_v18, 64.0  ;;  %v1253_v61 = vsel %vm1221_vm10, %v5159_v13, 64.0  ;;  %vm1342_vm15 = vcmp.eq.f32.partialorder %v5161_v47, %v5274_v30 }
 0x201   : > { %v1272_v33 = vmin.f32 %v1271_v23, %v1256_v14  ;;  %vm1343_vm9 = vcmp.eq.f32.partialorder %v5161_v47, %v5276_v27  ;;  %vm1229_vm11 = vcmp.le.f32.partialorder %v5224_v60, %v5264_v3  ;;  %v1264_v52 = vsel %vm1232_vm7, %v5175_v46, 64.0 }
 0x202   : > { %v1284_v56 = vmin.f32 %v1283_v43, %v1253_v61  ;;  %4018 = vmatpush.msk.msrb.mxu2 %vm1342_vm15, %v4320_v2  ;;  %4028 = vmatpush.msk.msrb.mxu3 %vm1343_vm9, %v4320_v2  ;;  %v1257_v28 = vsel %vm1225_vm5, %v5161_v47, 64.0  ;;  %vm1338_vm6 = vcmp.eq.f32.partialorder %v5159_v13, %v5274_v30  ;;  %vm1339_vm12 = vcmp.eq.f32.partialorder %v5159_v13, %v5276_v27 }
 0x203   : > { %v1273_v36 = vmin.f32 %v1272_v33, %v1260_v0  ;;  %vm1233_vm10 = vcmp.le.f32.partialorder %v5250_v39, %v5264_v3  ;;  %v1261_v32 = vsel %vm1229_vm11, %v5173_v18, 64.0  ;;  %vm1334_vm5 = vcmp.eq.f32.partialorder %v5157_v10, %v5274_v30 }
 0x204   : > { %v1285_v60 = vmin.f32 %v1284_v56, %v1257_v28  ;;  %4019 = vmatpush.msk.msrb.mxu2 %vm1338_vm6, %v4320_v2  ;;  %4029 = vmatpush.msk.msrb.mxu3 %vm1339_vm12, %v4320_v2  ;;  %vm1335_vm7 = vcmp.eq.f32.partialorder %v5157_v10, %v5276_v27  ;;  %v1265_v39 = vsel %vm1233_vm10, %v5175_v46, 64.0  ;;  %vm1330_vm13 = vcmp.eq.f32.partialorder %v5155_v54, %v5274_v30 }
 0x205   : > { %v1274_v25 = vmin.f32 %v1273_v36, %v1264_v52  ;;  %vm1331_vm14 = vcmp.eq.f32.partialorder %v5155_v54, %v5276_v27  ;;  %vm1326_vm15 = vcmp.eq.f32.partialorder %v5137_v24, %v5274_v30  ;;  %vm1327_vm9 = vcmp.eq.f32.partialorder %v5137_v24, %v5276_v27 }
 0x206   : > { %v1286_v31 = vmin.f32 %v1285_v60, %v1261_v32  ;;  %4020 = vmatpush.msk.msrb.mxu2 %vm1334_vm5, %v4320_v2  ;;  %4030 = vmatpush.msk.msrb.mxu3 %vm1335_vm7, %v4320_v2  ;;  %vm1418_vm11 = vcmask 523264   ;;  %vm1322_vm6 = vcmp.eq.f32.partialorder %v5135_v7, %v5274_v30  ;;  %vm1323_vm12 = vcmp.eq.f32.partialorder %v5135_v7, %v5276_v27 }
 0x207   : > { %v1275_v53 = vrot.slane %v1274_v25, 4  ;;  %v7724_v58 = vmov 3   ;;  %v7725_v57 = vmov 0   ;;  %v4321_v15 = vmov 16.0  }
 0x208   : > { %v1287_v55 = vmin.f32 %v1286_v31, %v1265_v39  ;;  %4021 = vmatpush.msk.msrb.mxu2 %vm1330_vm13, %v4320_v2  ;;  %4031 = vmatpush.msk.msrb.mxu3 %vm1331_vm14, %v4320_v2  ;;  %4192 = vrcp.f32 %v4321_v15 }
 0x209   : > { %v1276_v20 = vmin.f32 %v1274_v25, %v1275_v53 }
 0x20a   : > { %v1288_v22 = vrot.slane %v1287_v55, 4  ;;  %4022 = vmatpush.msk.msrb.mxu2 %vm1326_vm15, %v4320_v2  ;;  %4032 = vmatpush.msk.msrb.mxu3 %vm1327_vm9, %v4320_v2 }
 0x20b   : > { %v1277_v62 = vrot.slane %v1276_v20, 2 }
 0x20c   : > { %v1289_v11 = vmin.f32 %v1287_v55, %v1288_v22  ;;  %4023 = vmatpush.msk.msrb.mxu2 %vm1322_vm6, %v4320_v2  ;;  %4033 = vmatpush.msk.msrb.mxu3 %vm1323_vm12, %v4320_v2 }
 0x20d   : > { %v1278_v12 = vmin.f32 %v1276_v20, %v1277_v62  ;;  %4024 = vmatmul.msk.f32.vlgmr.msrb.gmra.mxu2 %vm1418_vm11, %v1416_v50  ;;  %4034 = vmatmul.msk.f32.vlgmr.msrb.gmra.mxu3 %vm1418_vm11, %v1416_v50 }
 0x20e   : > { %v1290_v4 = vrot.slane %v1289_v11, 2  ;;  %v4193_v45 = vpop.eup %4192 }
 0x20f   : > { %v1279_v9 = vrot.slane %v1278_v12, 1  ;;  %v1632_v26 = vmul.f32 16.0, %v4193_v45 }
 0x210   : > { %v1291_v59 = vmin.f32 %v1289_v11, %v1290_v4 }
 0x211   : > { %v1280_v5 = vmin.f32 %v1278_v12, %v1279_v9  ;;  %v1633_v43 = vsub.f32 1.0, %v1632_v26 }
 0x212   : > { %v1292_v29 = vrot.slane %v1291_v59, 1 }
 0x213   : > { %vm1348_vm10 = vcmp.eq.f32.partialorder %v5175_v46, %v1280_v5  ;;  %vm1344_vm5 = vcmp.eq.f32.partialorder %v5173_v18, %v1280_v5  ;;  %vm1340_vm13 = vcmp.eq.f32.partialorder %v5161_v47, %v1280_v5  ;;  %vm1336_vm15 = vcmp.eq.f32.partialorder %v5159_v13, %v1280_v5 }
 0x214   : > { %3996 = vmatpush.msk.msrb.mxu0 %vm1348_vm10, %v4320_v2  ;;  %v1293_v35 = vmin.f32 %v1291_v59, %v1292_v29  ;;  %vm1332_vm6 = vcmp.eq.f32.partialorder %v5157_v10, %v1280_v5  ;;  %vm1328_vm10 = vcmp.eq.f32.partialorder %v5155_v54, %v1280_v5  ;;  %v1634_v25 = vmul.f32 %v4193_v45, %v1633_v43 }
 0x215   : > { %4025 = vmatmul.msk.f32.gmra.mxu2 %vm1418_vm11, %v1417_v1  ;;  %4035 = vmatmul.msk.f32.gmra.mxu3 %vm1418_vm11, %v1417_v1 }
 0x216   : > { %vm1349_vm7 = vcmp.eq.f32.partialorder %v5175_v46, %v1293_v35  ;;  %3997 = vmatpush.msk.msrb.mxu0 %vm1344_vm5, %v4320_v2  ;;  %vm1345_vm14 = vcmp.eq.f32.partialorder %v5173_v18, %v1293_v35  ;;  %vm1341_vm9 = vcmp.eq.f32.partialorder %v5161_v47, %v1293_v35  ;;  %vm1337_vm12 = vcmp.eq.f32.partialorder %v5159_v13, %v1293_v35  ;;  %v1525_v13 = vld [vmem:[%s7500_s4 + $0x10] sm:$0xff]  ;;  %v1526_v47 = vld [vmem:[%s7500_s4 + $0x18] sm:$0xff] }
 0x217   : > { %4006 = vmatpush.msk.msrb.mxu1 %vm1349_vm7, %v4320_v2  ;;  %vm1333_vm5 = vcmp.eq.f32.partialorder %v5157_v10, %v1293_v35  ;;  %vm1324_vm7 = vcmp.eq.f32.partialorder %v5137_v24, %v1280_v5  ;;  %v5425_v10 = vld [vmem:[%s7501_s5] sm:$0xff]  ;;  %v7723_v18 = vmov 4   ;;  %v1527_v6 = vpack.c.bf16 %v1526_v47, %v1525_v13 }
 0x218   : > { %3998 = vmatpush.msk.msrb.mxu0 %vm1340_vm13, %v4320_v2  ;;  %vm1329_vm13 = vcmp.eq.f32.partialorder %v5155_v54, %v1293_v35  ;;  %1536 = vperm.xlu2 %4128, %v5425_v10   ;;  %v1635_v39 = vadd.f32 %v4193_v45, %v1634_v25 }
 0x219   : > { %4007 = vmatpush.msk.msrb.mxu1 %vm1345_vm14, %v4320_v2  ;;  %vm1320_vm14 = vcmp.eq.f32.partialorder %v5135_v7, %v1280_v5  ;;  %1743 = vperm.xlu1 %4130, %v5425_v10  }
 0x21a   : > { %3999 = vmatpush.msk.msrb.mxu0 %vm1336_vm15, %v4320_v2  ;;  %vm1325_vm15 = vcmp.eq.f32.partialorder %v5137_v24, %v1293_v35  ;;  %v5411_v24 = vld [vmem:[%s7501_s5 + $0x8] sm:$0xff] }
 0x21b   : > { %4008 = vmatpush.msk.msrb.mxu1 %vm1341_vm9, %v4320_v2  ;;  %vm1321_vm9 = vcmp.eq.f32.partialorder %v5135_v7, %v1293_v35  ;;  %1541 = vperm.xlu0 %4129, %v5411_v24  }
 0x21c   : > { %4000 = vmatpush.msk.msrb.mxu0 %vm1332_vm6, %v4320_v2 }
 0x21d   : > { %4009 = vmatpush.msk.msrb.mxu1 %vm1337_vm12, %v4320_v2 }
 0x21e   : > { %4001 = vmatpush.msk.msrb.mxu0 %vm1328_vm10, %v4320_v2 }
 0x21f   : > { %4010 = vmatpush.msk.msrb.mxu1 %vm1333_vm5, %v4320_v2 }
 0x220   : > { %4002 = vmatpush.msk.msrb.mxu0 %vm1324_vm7, %v4320_v2  ;;  %4131 = vset.pattern.permute.xlu2 %v7721_v17 }
 0x221   : > { %4011 = vmatpush.msk.msrb.mxu1 %vm1329_vm13, %v4320_v2  ;;  %4132 = vset.pattern.permute.xlu1 %v7724_v58 }
 0x222   : > { %4003 = vmatpush.msk.msrb.mxu0 %vm1320_vm14, %v4320_v2  ;;  %1759 = vperm.xlu1 %4132, %v5425_v10  }
 0x223   : > { %4012 = vmatpush.msk.msrb.mxu1 %vm1325_vm15, %v4320_v2  ;;  %4004 = vmatmul.msk.f32.vlgmr.msrb.gmra.mxu0 %vm1418_vm11, %v1416_v50 }
 0x224   : > { %4134 = vset.pattern.permute.xlu0 %v7723_v18  ;;  %1747 = vperm.xlu2 %4131, %v5411_v24  }
 0x225   : > { %4013 = vmatpush.msk.msrb.mxu1 %vm1321_vm9, %v4320_v2  ;;  %1782 = vperm.xlu0 %4134, %v5425_v10  }
 0x226   : > { %4014 = vmatmul.msk.f32.vlgmr.msrb.gmra.mxu1 %vm1418_vm11, %v1416_v50 }
 0x22a   : > { %4135 = vset.pattern.permute.xlu1 %v7723_v18 }
 0x22b   : > { %4005 = vmatmul.msk.f32.gmra.mxu0 %vm1418_vm11, %v1417_v1  ;;  %1786 = vperm.xlu1 %4135, %v5411_v24  }
 0x22c   : > { %4133 = vset.pattern.permute.xlu2 %v7724_v58 }
 0x22d   : > { %4136 = vset.pattern.permute.xlu0 %v7725_v57  ;;  %1763 = vperm.xlu2 %4133, %v5411_v24  }
 0x22e   : > { %4015 = vmatmul.msk.f32.gmra.mxu1 %vm1418_vm11, %v1417_v1  ;;  %vm1636_vm11 = vweird.f32 %v4193_v45 }
 0x22f   : > { %v5477_v5 = vsel %vm1636_vm11, %v4193_v45, %v1635_v39 }
 0x230   : > { %7732 = vst [vmem:[#allocation7_spill] sm:$0xff] %v5477_v5 }
 0x233   : > { %4137 = vset.pattern.permute.xlu1 %v7725_v57 }
 0x235   : > { %4138 = vset.pattern.permute.xlu2 %v7720_v38 }
 0x272   : > { %v1537_v44 = vpop.permute.xlu2 %1536 }
 0x28d   : > { %v1542_v8 = vpop.permute.xlu0 %1541 }
 0x290   : > { %v1488_v7 = vpop.f32.mrf.mxu2  ;;  %v1511_v54 = vpop.f32.mrf.mxu3 }
 0x291   : > { %1519 = vst [vmem:[%s5419_s15 + $0x10] sm:$0xff] %v1488_v7 }
 0x292   : > { %1520 = vst [vmem:[%s5419_s15 + $0x18] sm:$0xff] %v1511_v54 }
 0x298   : > { %v1491_v46 = vpop.f32.mrf.mxu2  ;;  %v1514_v16 = vpop.f32.mrf.mxu3 }
 0x299   : > { %1523 = vst [vmem:[%s5419_s15 + $0x30] sm:$0xff] %v1491_v46  ;;  %v1530_v19 = vpack.c.bf16 %v1491_v46, %v1488_v7  ;;  %v1531_v3 = vpack.c.bf16 %v1514_v16, %v1511_v54 }
 0x29a   : > { %1524 = vst [vmem:[%s5419_s15 + $0x38] sm:$0xff] %v1514_v16 }
 0x29b   : > { %1582 = vmatpush.bf16.msra.mxu2 %v1530_v19  ;;  %1596 = vmatpush.bf16.msra.mxu3 %v1531_v3 }
 0x29e   : > { %4038 = vmatmul.msk.bf16.vlgmr.msra.gmra.mxu2 %vm850_vm8, %v1527_v6  ;;  %4039 = vmatmul.msk.bf16.vlgmr.msra.gmra.mxu3 %vm850_vm8, %v1527_v6 }
 0x2a0   : > { %v1442_v40 = vpop.f32.mrf.mxu0 }
 0x2a1   : > { %1517 = vst [vmem:[%s5419_s15] sm:$0xff] %v1442_v40 }
 0x2a3   : > { %v1465_v37 = vpop.f32.mrf.mxu1 }
 0x2a4   : > { %1518 = vst [vmem:[%s5419_s15 + $0x8] sm:$0xff] %v1465_v37 }
 0x2a8   : > { %v1445_v30 = vpop.f32.mrf.mxu0 }
 0x2a9   : > { %1521 = vst [vmem:[%s5419_s15 + $0x20] sm:$0xff] %v1445_v30  ;;  %v1528_v27 = vpack.c.bf16 %v1445_v30, %v1442_v40 }
 0x2ab   : > { %v1468_v41 = vpop.f32.mrf.mxu1  ;;  %1554 = vmatpush.bf16.msra.mxu0 %v1528_v27 }
 0x2ac   : > { %1522 = vst [vmem:[%s5419_s15 + $0x28] sm:$0xff] %v1468_v41  ;;  %v1529_v51 = vpack.c.bf16 %v1468_v41, %v1465_v37 }
 0x2ae   : > { %1568 = vmatpush.bf16.msra.mxu1 %v1529_v51  ;;  %4036 = vmatmul.msk.bf16.vlgmr.msra.gmra.mxu0 %vm850_vm8, %v1527_v6 }
 0x2b1   : > { %4037 = vmatmul.msk.bf16.vlgmr.msra.gmra.mxu1 %vm850_vm8, %v1527_v6 }
 0x321   : > { %v1584_v21 = vpop.f32.mrf.mxu2  ;;  %v1598_v42 = vpop.f32.mrf.mxu3 }
 0x322   : > { %v5459_v23 = vadd.f32 %v1584_v21, %v1537_v44  ;;  %v5461_v48 = vadd.f32 %v1598_v42, %v1537_v44 }
 0x324   : > { %7726 = vst [vmem:[#allocation17_spill] sm:$0xff] %v5459_v23 }
 0x325   : > { %7727 = vst [vmem:[#allocation9_spill] sm:$0xff] %v5461_v48 }
 0x329   : > { %v1586_v2 = vpop.f32.mrf.mxu2  ;;  %v1600_v14 = vpop.f32.mrf.mxu3 }
 0x32a   : > { %v5463_v34 = vadd.f32 %v1586_v2, %v1542_v8  ;;  %v5465_v33 = vadd.f32 %v1600_v14, %v1542_v8 }
 0x32b   : > { %v1556_v0 = vpop.f32.mrf.mxu0 }
 0x32c   : > { %7728 = vst [vmem:[#allocation4_spill] sm:$0xff] %v5463_v34  ;;  %v1617_v61 = vadd.f32 %v5463_v34, %v5459_v23  ;;  %v1624_v36 = vadd.f32 %v5465_v33, %v5461_v48  ;;  %v5471_v22 = vadd.f32 %v1556_v0, %v1537_v44 }
 0x32d   : > { %7729 = vst [vmem:[#allocation10_spill] sm:$0xff] %v5465_v33 }
 0x32e   : > { %v1618_v56 = vrot.slane %v1617_v61, 4  ;;  %v1625_v52 = vrot.slane %v1624_v36, 4  ;;  %v1570_v28 = vpop.f32.mrf.mxu1  ;;  %7730 = vst [vmem:[#allocation6_spill] sm:$0xff] %v5471_v22 }
 0x32f   : > { %v5479_v59 = vadd.f32 %v1570_v28, %v1537_v44 }
 0x330   : > { %v1619_v60 = vadd.f32 %v1618_v56, %v1617_v61  ;;  %v1626_v32 = vadd.f32 %v1625_v52, %v1624_v36 }
 0x331   : > { %7733 = vst [vmem:[#allocation18_spill] sm:$0xff] %v5479_v59 }
 0x332   : > { %v1620_v53 = vrot.slane %v1619_v60, 2  ;;  %v1627_v31 = vrot.slane %v1626_v32, 2 }
 0x333   : > { %v1558_v20 = vpop.f32.mrf.mxu0 }
 0x334   : > { %v1621_v55 = vadd.f32 %v1620_v53, %v1619_v60  ;;  %v1628_v62 = vadd.f32 %v1627_v31, %v1626_v32  ;;  %v5473_v50 = vadd.f32 %v1558_v20, %v1542_v8 }
 0x336   : > { %7731 = vst [vmem:[#allocation3_spill] sm:$0xff] %v5473_v50  ;;  %v1622_v12 = vrot.slane %v1621_v55, 1  ;;  %v1629_v11 = vrot.slane %v1628_v62, 1  ;;  %v1603_v9 = vadd.f32 %v5473_v50, %v5471_v22  ;;  %v1572_v4 = vpop.f32.mrf.mxu1 }
 0x337   : > { %v5481_v29 = vadd.f32 %v1572_v4, %v1542_v8 }
 0x338   : > { %v1623_v1 = vadd.f32 %v1622_v12, %v1621_v55  ;;  %v1630_v35 = vadd.f32 %v1629_v11, %v1628_v62  ;;  %v1604_v7 = vrot.slane %v1603_v9, 4 }
 0x339   : > { %7734 = vst [vmem:[#allocation14_spill] sm:$0xff] %v5481_v29  ;;  %v1610_v54 = vadd.f32 %v5481_v29, %v5479_v59 }
 0x33a   : > { %v1640_v13 = vmul.f32 %v5477_v5, %v1623_v1  ;;  %v1641_v47 = vmul.f32 %v5477_v5, %v1630_v35  ;;  %v1605_v46 = vadd.f32 %v1604_v7, %v1603_v9 }
 0x33b   : > { %v1611_v16 = vrot.slane %v1610_v54, 4 }
 0x33c   : > { %v5488_v19 = vsub.f32 %v5463_v34, %v1640_v13  ;;  %v5491_v3 = vsub.f32 %v5465_v33, %v1641_v47  ;;  %v1606_v6 = vrot.slane %v1605_v46, 2  ;;  %v5494_v40 = vsub.f32 %v5459_v23, %v1640_v13 }
 0x33d   : > { %v1612_v37 = vadd.f32 %v1611_v16, %v1610_v54  ;;  %v5497_v30 = vsub.f32 %v5461_v48, %v1641_v47 }
 0x33e   : > { %v1656_v27 = vmul.f32 %v5488_v19, %v5488_v19  ;;  %v1657_v41 = vmul.f32 %v5491_v3, %v5491_v3  ;;  %v1607_v51 = vadd.f32 %v1606_v6, %v1605_v46  ;;  %v1652_v15 = vmul.f32 %v5494_v40, %v5494_v40 }
 0x33f   : > { %v1613_v21 = vrot.slane %v1612_v37, 2  ;;  %v1653_v42 = vmul.f32 %v5497_v30, %v5497_v30 }
 0x340   : > { %v1608_v45 = vrot.slane %v1607_v51, 1  ;;  %v1672_v44 = vadd.f32 %v1656_v27, %v1652_v15 }
 0x341   : > { %v1614_v26 = vadd.f32 %v1613_v21, %v1612_v37  ;;  %v1679_v8 = vadd.f32 %v1657_v41, %v1653_v42 }
 0x342   : > { %v1609_v2 = vadd.f32 %v1608_v45, %v1607_v51  ;;  %v1673_v14 = vrot.slane %v1672_v44, 4 }
 0x343   : > { %v1615_v43 = vrot.slane %v1614_v26, 1  ;;  %v1680_v0 = vrot.slane %v1679_v8, 4 }
 0x344   : > { %v1638_v61 = vmul.f32 %v5477_v5, %v1609_v2  ;;  %v1674_v36 = vadd.f32 %v1673_v14, %v1672_v44 }
 0x345   : > { %v1616_v56 = vadd.f32 %v1615_v43, %v1614_v26  ;;  %v1681_v52 = vadd.f32 %v1680_v0, %v1679_v8 }
 0x346   : > { %v5509_v28 = vsub.f32 %v5471_v22, %v1638_v61  ;;  %v5512_v25 = vsub.f32 %v5473_v50, %v1638_v61  ;;  %v1675_v60 = vrot.slane %v1674_v36, 2 }
 0x347   : > { %v1639_v32 = vmul.f32 %v5477_v5, %v1616_v56  ;;  %v1682_v53 = vrot.slane %v1681_v52, 2 }
 0x348   : > { %v1650_v31 = vmul.f32 %v5509_v28, %v5509_v28  ;;  %v1654_v39 = vmul.f32 %v5512_v25, %v5512_v25  ;;  %v1676_v20 = vadd.f32 %v1675_v60, %v1674_v36  ;;  %v5535_v60 = vpop.permute.xlu1 %1743 }
 0x349   : > { %v5520_v55 = vsub.f32 %v5479_v59, %v1639_v32  ;;  %v5523_v62 = vsub.f32 %v5481_v29, %v1639_v32  ;;  %v1683_v12 = vadd.f32 %v1682_v53, %v1681_v52  ;;  %v5537_v53 = vpop.permute.xlu2 %1747 }
 0x34a   : > { %v1658_v11 = vadd.f32 %v1654_v39, %v1650_v31  ;;  %v1677_v9 = vrot.slane %v1676_v20, 1  ;;  %v5542_v31 = vld [vmem:[%s7500_s4 + $0x38] sm:$0xff] }
 0x34b   : > { %v1651_v4 = vmul.f32 %v5520_v55, %v5520_v55  ;;  %v1655_v1 = vmul.f32 %v5523_v62, %v5523_v62  ;;  %v1684_v35 = vrot.slane %v1683_v12, 1  ;;  %1899 = vperm.xlu1 %4137, %v5542_v31  }
 0x34c   : > { %v1659_v7 = vrot.slane %v1658_v11, 4  ;;  %v1678_v54 = vadd.f32 %v1677_v9, %v1676_v20  ;;  %v5549_v20 = vld [vmem:[%s7500_s4 + $0x30] sm:$0xff] }
 0x34d   : > { %v1665_v13 = vadd.f32 %v1655_v1, %v1651_v4  ;;  %v1685_v47 = vadd.f32 %v1684_v35, %v1683_v12  ;;  %1961 = vperm.xlu2 %4138, %v5549_v20   ;;  %1894 = vperm.xlu0 %4136, %v5549_v20  }
 0x34e   : > { %v1660_v46 = vadd.f32 %v1659_v7, %v1658_v11  ;;  %v1688_v16 = vmul.f32 %v1678_v54, %v5477_v5 }
 0x34f   : > { %v1666_v6 = vrot.slane %v1665_v13, 4  ;;  %v1689_v37 = vmul.f32 %v1685_v47, %v5477_v5 }
 0x350   : > { %v1661_v27 = vrot.slane %v1660_v46, 2  ;;  %v1692_v41 = vadd.f32 1e-06, %v1688_v16 }
 0x351   : > { %v1667_v51 = vadd.f32 %v1666_v6, %v1665_v13  ;;  %v1693_v15 = vadd.f32 1e-06, %v1689_v37 }
 0x352   : > { %v1662_v21 = vadd.f32 %v1661_v27, %v1660_v46  ;;  %4194 = vrsqrt.f32 %v1692_v41  ;;  %vm1720_vm10 = vweird.f32 %v1692_v41 }
 0x353   : > { %v1668_v42 = vrot.slane %v1667_v51, 2  ;;  %4196 = vrsqrt.f32 %v1693_v15  ;;  %vm1730_vm7 = vweird.f32 %v1693_v15  ;;  %4139 = vset.pattern.permute.xlu1 %v7720_v38 }
 0x354   : > { %v1663_v45 = vrot.slane %v1662_v21, 1  ;;  %1965 = vperm.xlu1 %4139, %v5542_v31  }
 0x355   : > { %v1669_v44 = vadd.f32 %v1668_v42, %v1667_v51  ;;  %v1764_v42 = vpop.permute.xlu2 %1763  ;;  %4140 = vset.pattern.permute.xlu2 %v7721_v17  ;;  %4141 = vset.pattern.permute.xlu0 %v7721_v17 }
 0x356   : > { %v1664_v26 = vadd.f32 %v1663_v45, %v1662_v21  ;;  %v1760_v21 = vpop.permute.xlu1 %1759  ;;  %2027 = vperm.xlu2 %4140, %v5549_v20   ;;  %2031 = vperm.xlu0 %4141, %v5542_v31  }
 0x357   : > { %v1670_v8 = vrot.slane %v1669_v44, 1 }
 0x358   : > { %v4195_v2 = vpop.eup %4194  ;;  %v1686_v14 = vmul.f32 %v1664_v26, %v5477_v5 }
 0x359   : > { %v4197_v43 = vpop.eup %4196  ;;  %v1671_v0 = vadd.f32 %v1670_v8, %v1669_v44  ;;  %v1715_v61 = vmul.f32 %v4195_v2, %v1692_v41  ;;  %vm1721_vm6 = vweird.f32 %v4195_v2 }
 0x35a   : > { %v5532_v36 = vadd.f32 1e-06, %v1686_v14  ;;  %v1725_v56 = vmul.f32 %v4197_v43, %v1693_v15  ;;  %vm1731_vm12 = vweird.f32 %v4197_v43  ;;  %vm1722_vm5 = vmor %vm1720_vm10, %vm1721_vm6  ;;  %v1775_v14 = vld [vmem:[%s7500_s4 + $0x28] sm:$0xff]  ;;  %vm7794_vm10 = vcmp.lt.s32.totalorder %v4561_v49, 113 }
 0x35b   : > { %v1687_v52 = vmul.f32 %v1671_v0, %v5477_v5  ;;  %v1716_v32 = vmul.f32 %v4195_v2, %v1715_v61  ;;  %vm1732_vm13 = vmor %vm1730_vm7, %vm1731_vm12  ;;  %vm7801_vm7 = vcmp.lt.s32.totalorder %v4561_v49, 112 }
 0x35c   : > { %4198 = vrsqrt.f32 %v5532_v36  ;;  %v1726_v39 = vmul.f32 %v4197_v43, %v1725_v56  ;;  %vm1700_vm15 = vweird.f32 %v5532_v36  ;;  %4142 = vset.pattern.permute.xlu1 %v7724_v58 }
 0x35d   : > { %v5551_v12 = vadd.f32 1e-06, %v1687_v52  ;;  %v1717_v11 = vmul.f32 0.5, %v1716_v32  ;;  %2093 = vperm.xlu1 %4142, %v5549_v20  }
 0x35e   : > { %v1727_v9 = vmul.f32 0.5, %v1726_v39  ;;  %4143 = vset.pattern.permute.xlu2 %v7724_v58 }
 0x35f   : > { %4200 = vrsqrt.f32 %v5551_v12  ;;  %v1718_v4 = vsub.f32 1.5, %v1717_v11  ;;  %vm1710_vm6 = vweird.f32 %v5551_v12  ;;  %2097 = vperm.xlu2 %4143, %v5542_v31  }
 0x360   : > { %v1728_v1 = vsub.f32 1.5, %v1727_v9 }
 0x361   : > { %v1719_v35 = vmul.f32 %v4195_v2, %v1718_v4 }
 0x362   : > { %v4199_v7 = vpop.eup %4198  ;;  %v1729_v54 = vmul.f32 %v4197_v43, %v1728_v1 }
 0x363   : > { %v1695_v13 = vmul.f32 %v4199_v7, %v5532_v36  ;;  %v1723_v47 = vsel %vm1722_vm5, %v4195_v2, %v1719_v35  ;;  %v1774_v2 = vld [vmem:[%s7500_s4 + $0x20] sm:$0xff]  ;;  %vm1701_vm14 = vweird.f32 %v4199_v7  ;;  %vm7796_vm5 = vmmov %vm7794_vm10 }
 0x364   : > { %v1733_v46 = vsel %vm1732_vm13, %v4197_v43, %v1729_v54  ;;  %v1736_v16 = vmul.f32 %v1723_v47, %v5494_v40  ;;  %v1740_v6 = vmul.f32 %v1723_v47, %v5488_v19  ;;  %v1776_v11 = vpack.c.bf16 %v1775_v14, %v1774_v2  ;;  %vm1702_vm9 = vmor %vm1700_vm15, %vm1701_vm14 }
 0x365   : > { %v4201_v37 = vpop.eup %4200  ;;  %v1696_v27 = vmul.f32 %v4199_v7, %v1695_v13  ;;  %v1737_v51 = vmul.f32 %v1733_v46, %v5497_v30  ;;  %v1741_v41 = vmul.f32 %v1733_v46, %v5491_v3  ;;  %4144 = vset.pattern.permute.xlu1 %v7723_v18  ;;  %vm7803_vm13 = vmmov %vm7801_vm7  ;;  %vm7811_vm14 = vcmp.lt.s32.totalorder %v4561_v49, 111 }
 0x366   : > { %v1705_v15 = vmul.f32 %v4201_v37, %v5551_v12  ;;  %v1752_v40 = vmul.f32 %v5535_v60, %v1736_v16  ;;  %v1756_v19 = vmul.f32 %v5537_v53, %v1740_v6  ;;  %vm1711_vm11 = vweird.f32 %v4201_v37  ;;  %2117 = vperm.xlu1 %4144, %v5549_v20   ;;  %vm7813_vm15 = vmmov %vm7811_vm14 }
 0x367   : > { %v1697_v45 = vmul.f32 0.5, %v1696_v27  ;;  %v1753_v30 = vmul.f32 %v5535_v60, %v1737_v51  ;;  %v1757_v3 = vmul.f32 %v5537_v53, %v1741_v41  ;;  %vm1712_vm12 = vmor %vm1710_vm6, %vm1711_vm11  ;;  %4145 = vset.pattern.permute.xlu2 %v7723_v18 }
 0x368   : > { %v1706_v44 = vmul.f32 %v4201_v37, %v1705_v15  ;;  %v1768_v26 = vadd.f32 %v1760_v21, %v1752_v40  ;;  %v1772_v8 = vadd.f32 %v1764_v42, %v1756_v19  ;;  %2121 = vperm.xlu2 %4145, %v5542_v31   ;;  %vm7823_vm11 = vmmov %vm7801_vm7 }
 0x369   : > { %v1698_v43 = vsub.f32 1.5, %v1697_v45  ;;  %v1769_v0 = vadd.f32 %v1760_v21, %v1753_v30  ;;  %v1773_v61 = vadd.f32 %v1764_v42, %v1757_v3  ;;  %vm7826_vm6 = vmmov %vm7796_vm5 }
 0x36a   : > { %v1707_v56 = vmul.f32 0.5, %v1706_v44  ;;  %v1779_v52 = vpack.c.bf16 %v1772_v8, %v1768_v26 }
 0x36b   : > { %v1699_v32 = vmul.f32 %v4199_v7, %v1698_v43  ;;  %v1780_v39 = vpack.c.bf16 %v1773_v61, %v1769_v0 }
 0x36c   : > { %v1708_v9 = vsub.f32 1.5, %v1707_v56  ;;  %1827 = vmatpush.bf16.msrb.mxu2 %v1779_v52 }
 0x36d   : > { %v1703_v4 = vsel %vm1702_vm9, %v4199_v7, %v1699_v32  ;;  %1841 = vmatpush.bf16.msrb.mxu3 %v1780_v39  ;;  %vm7818_vm9 = vmmov %vm7796_vm5 }
 0x36e   : > { %v1734_v1 = vmul.f32 %v1703_v4, %v5509_v28  ;;  %v1738_v35 = vmul.f32 %v1703_v4, %v5512_v25  ;;  %v1709_v54 = vmul.f32 %v4201_v37, %v1708_v9  ;;  %v7735_v28 = vmov 7  }
 0x36f   : > { %4042 = vmatmul.msk.bf16.vlgmr.msrb.gmra.mxu2 %vm850_vm8, %v1776_v11  ;;  %4148 = vset.pattern.permute.xlu0 %v7735_v28 }
 0x370   : > { %v1713_v36 = vsel %vm1712_vm12, %v4201_v37, %v1709_v54  ;;  %v1750_v7 = vmul.f32 %v5535_v60, %v1734_v1  ;;  %v1754_v13 = vmul.f32 %v5537_v53, %v1738_v35  ;;  %4043 = vmatmul.msk.bf16.vlgmr.msrb.gmra.mxu3 %vm850_vm8, %v1776_v11  ;;  %2315 = vperm.xlu0 %4148, %v5549_v20   ;;  %vm7828_vm12 = vmmov %vm7801_vm7 }
 0x371   : > { %v1735_v25 = vmul.f32 %v1713_v36, %v5520_v55  ;;  %v1739_v12 = vmul.f32 %v1713_v36, %v5523_v62  ;;  %v7736_v55 = vmov 5   ;;  %v7737_v62 = vmov 8  }
 0x372   : > { %v1766_v47 = vadd.f32 %v1760_v21, %v1750_v7  ;;  %v1770_v46 = vadd.f32 %v1764_v42, %v1754_v13  ;;  %4146 = vset.pattern.permute.xlu1 %v7736_v55  ;;  %4151 = vset.pattern.permute.xlu2 %v7737_v62 }
 0x373   : > { %v1751_v16 = vmul.f32 %v5535_v60, %v1735_v25  ;;  %v1755_v6 = vmul.f32 %v5537_v53, %v1739_v12  ;;  %2187 = vperm.xlu1 %4146, %v5542_v31   ;;  %2381 = vperm.xlu2 %4151, %v5549_v20   ;;  %v7738_v60 = vmov 6  }
 0x374   : > { %v1777_v37 = vpack.c.bf16 %v1770_v46, %v1766_v47 }
 0x375   : > { %v1767_v27 = vadd.f32 %v1760_v21, %v1751_v16  ;;  %v1771_v51 = vadd.f32 %v1764_v42, %v1755_v6  ;;  %v1787_v42 = vpop.permute.xlu1 %1786 }
 0x376   : > { %1799 = vmatpush.bf16.msrb.mxu0 %v1777_v37 }
 0x377   : > { %v1778_v41 = vpack.c.bf16 %v1771_v51, %v1767_v27 }
 0x378   : > { %4149 = vset.pattern.permute.xlu0 %v7736_v55 }
 0x379   : > { %1813 = vmatpush.bf16.msrb.mxu1 %v1778_v41  ;;  %4040 = vmatmul.msk.bf16.vlgmr.msrb.gmra.mxu0 %vm850_vm8, %v1776_v11 }
 0x37a   : > { %2183 = vperm.xlu0 %4149, %v5549_v20  }
 0x37b   : > { %4147 = vset.pattern.permute.xlu1 %v7738_v60  ;;  %4153 = vset.pattern.permute.xlu2 %v7736_v55  ;;  %v5827_v55 = vld [vmem:[%s7497_s1 + $0x2] ss:$8 sm:$0xf] }
 0x37c   : > { %4041 = vmatmul.msk.bf16.vlgmr.msrb.gmra.mxu1 %vm850_vm8, %v1776_v11  ;;  %2253 = vperm.xlu1 %4147, %v5542_v31   ;;  %v5836_v17 = vperm.slane %v5827_v55, 1 }
 0x37d   : > { %2405 = vperm.xlu2 %4153, %v5425_v10  }
 0x37e   : > { %7757 = vst [vmem:[#allocation29_spill] sm:$0xff] %v5836_v17 }
 0x382   : > { %2409 = vperm.xlu0 %4149, %v5411_v24   ;;  %v1783_v24 = vpop.permute.xlu0 %1782 }
 0x384   : > { %4150 = vset.pattern.permute.xlu1 %v7735_v28 }
 0x385   : > { %2319 = vperm.xlu1 %4150, %v5542_v31   ;;  %4156 = vset.pattern.permute.xlu2 %v7738_v60 }
 0x38a   : > { %4154 = vset.pattern.permute.xlu0 %v7738_v60 }
 0x38b   : > { %2249 = vperm.xlu0 %4154, %v5549_v20  }
 0x38d   : > { %4152 = vset.pattern.permute.xlu1 %v7737_v62 }
 0x38e   : > { %2385 = vperm.xlu1 %4152, %v5542_v31  }
 0x396   : > { %4155 = vset.pattern.permute.xlu1 %v7738_v60 }
 0x3a7   : > { %v5653_v40 = vpop.permute.xlu2 %1961 }
 0x3b0   : > { %v5669_v3 = vpop.permute.xlu2 %2027 }
 0x3b9   : > { %v5681_v14 = vpop.permute.xlu2 %2097 }
 0x3ba   : > { %7739 = vst [vmem:[#allocation8_spill] sm:$0xff] %v5681_v14 }
 0x3bd   : > { %v5659_v19 = vpop.permute.xlu1 %1899 }
 0x3bf   : > { %v5689_v61 = vpop.permute.xlu0 %1894 }
 0x3c2   : > { %v5697_v52 = vpop.permute.xlu2 %2121 }
 0x3c6   : > { %v5671_v44 = vpop.permute.xlu1 %1965 }
 0x3c8   : > { %v5707_v11 = vpop.permute.xlu0 %2031 }
 0x3cd   : > { %v5711_v9 = vpop.permute.xlu2 %2381 }
 0x3ce   : > { %7740 = vst [vmem:[#allocation5_spill] sm:$0xff] %v5711_v9 }
 0x3cf   : > { %v5683_v43 = vpop.permute.xlu1 %2093 }
 0x3d7   : > { %v5727_v35 = vpop.permute.xlu2 %2405 }
 0x3d8   : > { %v5701_v39 = vpop.permute.xlu1 %2117  ;;  %7743 = vst [vmem:[#allocation11_spill] sm:$0xff] %v5727_v35 }
 0x3e2   : > { %v5719_v1 = vpop.permute.xlu0 %2315 }
 0x3e3   : > { %7742 = vst [vmem:[#allocation2_spill] sm:$0xff] %v5719_v1 }
 0x3e5   : > { %v5713_v4 = vpop.permute.xlu1 %2187 }
 0x3e6   : > { %7741 = vst [vmem:[#allocation12_spill] sm:$0xff] %v5713_v4 }
 0x3ec   : > { %v5731_v7 = vpop.permute.xlu0 %2183 }
 0x3ed   : > { %7745 = vst [vmem:[#allocation16_spill] sm:$0xff] %v5731_v7 }
 0x3ee   : > { %v5729_v54 = vpop.permute.xlu1 %2253 }
 0x3ef   : > { %7744 = vst [vmem:[#allocation13_spill] sm:$0xff] %v5729_v54 }
 0x3f2   : > { %v1829_v2 = vpop.f32.mrf.mxu2 }
 0x3f3   : > { %v1843_v26 = vpop.f32.mrf.mxu3  ;;  %v5687_v0 = vadd.f32 %v1829_v2, %v1783_v24 }
 0x3f4   : > { %v5675_v8 = vadd.f32 %v1843_v26, %v1783_v24  ;;  %v5747_v47 = vpop.permute.xlu0 %2409 }
 0x3f5   : > { %7747 = vst [vmem:[#allocation19_spill] sm:$0xff] %v5747_v47 }
 0x3f6   : > { %v1801_v53 = vpop.f32.mrf.mxu0 }
 0x3f7   : > { %v5621_v21 = vadd.f32 %v1801_v53, %v1783_v24  ;;  %v5743_v12 = vpop.permute.xlu1 %2319 }
 0x3f8   : > { %7746 = vst [vmem:[#allocation20_spill] sm:$0xff] %v5743_v12 }
 0x3f9   : > { %v1815_v10 = vpop.f32.mrf.mxu1  ;;  %2140 = vrot.lane.b32.xlu1 %v5621_v21, %s4309_s19 }
 0x3fa   : > { %v5625_v20 = vadd.f32 %v1815_v10, %v1783_v24  ;;  %v1831_v56 = vpop.f32.mrf.mxu2 }
 0x3fb   : > { %v5699_v32 = vadd.f32 %v1831_v56, %v1787_v42  ;;  %v1845_v36 = vpop.f32.mrf.mxu3 }
 0x3fc   : > { %1922 = vrot.lane.b32.xlu0 %v5625_v20, %s4305_s12  ;;  %1854 = vrot.lane.b32.xlu2 %v5625_v20, %s4304_s11  ;;  %v5735_v13 = vadd.f32 %v1845_v36, %v1787_v42 }
 0x3fd   : > { %v5763_v6 = vpop.permute.xlu0 %2249 }
 0x3fe   : > { %v1803_v45 = vpop.f32.mrf.mxu0  ;;  %7749 = vst [vmem:[#allocation21_spill] sm:$0xff] %v5763_v6 }
 0x3ff   : > { %v5663_v30 = vadd.f32 %v1803_v45, %v1787_v42 }
 0x400   : > { %v5757_v16 = vpop.permute.xlu1 %2385 }
 0x401   : > { %1918 = vrot.lane.b32.xlu1 %v5621_v21, %s4305_s12  ;;  %v1817_v31 = vpop.f32.mrf.mxu1  ;;  %7748 = vst [vmem:[#allocation15_spill] sm:$0xff] %v5757_v16 }
 0x402   : > { %v5643_v15 = vadd.f32 %v1817_v31, %v1787_v42  ;;  %v5792_v31 = vld [vmem:[%s7497_s1] ss:$8 sm:$0xf]  ;;  %v5797_v42 = vld [vmem:[%s7497_s1 + $0x1] ss:$8 sm:$0xf] }
 0x403   : > { %v5806_v26 = vperm.slane %v5792_v31, 1  ;;  %v5809_v2 = vperm.slane %v5797_v42, 1  ;;  %v5888_v62 = vperm.slane %v5792_v31, 2 }
 0x404   : > { %1988 = vrot.lane.b32.xlu0 %v5625_v20, %s4306_s13  ;;  %2054 = vrot.lane.b32.xlu2 %v5625_v20, %s4307_s14 }
 0x405   : > { %7753 = vst [vmem:[#allocation25_spill] sm:$0xff] %v5806_v26 }
 0x406   : > { %7754 = vst [vmem:[#allocation26_spill] sm:$0xff] %v5809_v2 }
 0x407   : > { %7761 = vst [vmem:[#allocation33_spill] sm:$0xff] %v5888_v62 }
 0x409   : > { %2050 = vrot.lane.b32.xlu1 %v5621_v21, %s4307_s14 }
 0x40c   : > { %2272 = vrot.lane.b32.xlu2 %v5621_v21, %s4314_s21  ;;  %2206 = vrot.lane.b32.xlu0 %v5621_v21, %s4311_s20 }
 0x411   : > { %1856 = vrot.lane.b32.xlu1 %v5643_v15, %s4304_s11 }
 0x414   : > { %2338 = vrot.lane.b32.xlu2 %v5621_v21, %s4317_s22  ;;  %1984 = vrot.lane.b32.xlu0 %v5621_v21, %s4306_s13 }
 0x419   : > { %1924 = vrot.lane.b32.xlu1 %v5643_v15, %s4305_s12 }
 0x41c   : > { %1850 = vrot.lane.b32.xlu2 %v5621_v21, %s4304_s11  ;;  %2056 = vrot.lane.b32.xlu0 %v5643_v15, %s4307_s14 }
 0x421   : > { %1990 = vrot.lane.b32.xlu1 %v5643_v15, %s4306_s13 }
 0x424   : > { %2142 = vrot.lane.b32.xlu2 %v5663_v30, %s4309_s19  ;;  %1852 = vrot.lane.b32.xlu0 %v5663_v30, %s4304_s11 }
 0x429   : > { %2208 = vrot.lane.b32.xlu1 %v5663_v30, %s4311_s20 }
 0x42c   : > { %1920 = vrot.lane.b32.xlu2 %v5663_v30, %s4305_s12  ;;  %2062 = vrot.lane.b32.xlu0 %v5675_v8, %s4307_s14 }
 0x431   : > { %2274 = vrot.lane.b32.xlu1 %v5663_v30, %s4314_s21 }
 0x434   : > { %2052 = vrot.lane.b32.xlu2 %v5663_v30, %s4307_s14  ;;  %2148 = vrot.lane.b32.xlu0 %v5687_v0, %s4309_s19 }
 0x439   : > { %2340 = vrot.lane.b32.xlu1 %v5663_v30, %s4317_s22 }
 0x43c   : > { %1858 = vrot.lane.b32.xlu2 %v5687_v0, %s4304_s11  ;;  %1860 = vrot.lane.b32.xlu0 %v5699_v32, %s4304_s11 }
 0x441   : > { %1986 = vrot.lane.b32.xlu1 %v5663_v30, %s4306_s13 }
 0x444   : > { %1926 = vrot.lane.b32.xlu2 %v5687_v0, %s4305_s12  ;;  %1928 = vrot.lane.b32.xlu0 %v5699_v32, %s4305_s12 }
 0x449   : > { %1862 = vrot.lane.b32.xlu1 %v5675_v8, %s4304_s11 }
 0x44c   : > { %1992 = vrot.lane.b32.xlu2 %v5687_v0, %s4306_s13  ;;  %1994 = vrot.lane.b32.xlu0 %v5699_v32, %s4306_s13 }
 0x451   : > { %1930 = vrot.lane.b32.xlu1 %v5675_v8, %s4305_s12 }
 0x454   : > { %2152 = vrot.lane.b32.xlu2 %v5675_v8, %s4309_s19  ;;  %2154 = vrot.lane.b32.xlu0 %v5735_v13, %s4309_s19 }
 0x456   : > { %v5741_v25 = vpop.permute.xlu2 %1854 }
 0x459   : > { %1996 = vrot.lane.b32.xlu1 %v5675_v8, %s4306_s13 }
 0x45c   : > { %2214 = vrot.lane.b32.xlu2 %v5687_v0, %s4311_s20  ;;  %2216 = vrot.lane.b32.xlu0 %v5699_v32, %s4311_s20 }
 0x45e   : > { %v5753_v46 = vpop.permute.xlu2 %2054 }
 0x461   : > { %2058 = vrot.lane.b32.xlu1 %v5687_v0, %s4307_s14 }
 0x464   : > { %2280 = vrot.lane.b32.xlu2 %v5687_v0, %s4314_s21  ;;  %2282 = vrot.lane.b32.xlu0 %v5699_v32, %s4314_s21 }
 0x466   : > { %v5765_v37 = vpop.permute.xlu2 %2272 }
 0x467   : > { %7750 = vst [vmem:[#allocation22_spill] sm:$0xff] %v5765_v37 }
 0x469   : > { %2218 = vrot.lane.b32.xlu1 %v5675_v8, %s4311_s20 }
 0x46b   : > { %v5769_v27 = vpop.permute.xlu1 %2140 }
 0x46c   : > { %7751 = vst [vmem:[#allocation23_spill] sm:$0xff] %v5769_v27  ;;  %2346 = vrot.lane.b32.xlu2 %v5687_v0, %s4317_s22  ;;  %2348 = vrot.lane.b32.xlu0 %v5699_v32, %s4317_s22 }
 0x46e   : > { %v1923_v51 = vpop.permute.xlu0 %1922  ;;  %v5775_v41 = vpop.permute.xlu2 %2338 }
 0x46f   : > { %7752 = vst [vmem:[#allocation24_spill] sm:$0xff] %v5775_v41 }
 0x471   : > { %2284 = vrot.lane.b32.xlu1 %v5675_v8, %s4314_s21 }
 0x473   : > { %v5779_v24 = vpop.permute.xlu1 %1918 }
 0x474   : > { %1864 = vrot.lane.b32.xlu2 %v5735_v13, %s4304_s11  ;;  %2210 = vrot.lane.b32.xlu0 %v5625_v20, %s4311_s20  ;;  %v1938_v60 = vsel %vm406_vm1, %v5779_v24, %v1923_v51 }
 0x475   : > { %v1953_v18 = vmul.f32 %v5809_v2, %v1938_v60 }
 0x476   : > { %v1989_v53 = vpop.permute.xlu0 %1988  ;;  %v5785_v10 = vpop.permute.xlu2 %1850 }
 0x477   : > { %v1870_v63 = vsel %vm349_vm0, %v5785_v10, %v5741_v25  ;;  %v1969_v29 = vmul.f32 %v5653_v40, %v1953_v18 }
 0x478   : > { %v1885_v58 = vmul.f32 %v5806_v26, %v1870_v63 }
 0x479   : > { %2350 = vrot.lane.b32.xlu1 %v5675_v8, %s4317_s22 }
 0x47a   : > { %v1903_v57 = vmul.f32 %v5689_v61, %v1885_v58 }
 0x47b   : > { %v5799_v45 = vpop.permute.xlu1 %2050 }
 0x47c   : > { %1932 = vrot.lane.b32.xlu2 %v5735_v13, %s4305_s12  ;;  %2278 = vrot.lane.b32.xlu0 %v5643_v15, %s4314_s21  ;;  %v1977_v22 = vadd.f32 %v1969_v29, %v1903_v57 }
 0x47e   : > { %v5811_v56 = vpop.permute.xlu2 %2142  ;;  %v5813_v36 = vpop.permute.xlu0 %2206 }
 0x47f   : > { %7755 = vst [vmem:[#allocation27_spill] sm:$0xff] %v5811_v56 }
 0x480   : > { %7756 = vst [vmem:[#allocation28_spill] sm:$0xff] %v5813_v36 }
 0x481   : > { %2064 = vrot.lane.b32.xlu1 %v5735_v13, %s4307_s14 }
 0x483   : > { %v5831_v38 = vpop.permute.xlu1 %1856 }
 0x484   : > { %1998 = vrot.lane.b32.xlu2 %v5735_v13, %s4306_s13 }
 0x486   : > { %v5840_v50 = vpop.permute.xlu2 %1920  ;;  %v5842_v59 = vpop.permute.xlu0 %1984 }
 0x487   : > { %v2004_v63 = vsel %vm462_vm2, %v5842_v59, %v1989_v53 }
 0x488   : > { %v2019_v60 = vmul.f32 %v5836_v17, %v2004_v63 }
 0x489   : > { %2150 = vrot.lane.b32.xlu1 %v5699_v32, %s4309_s19 }
 0x48a   : > { %v2035_v5 = vmul.f32 %v5669_v3, %v2019_v60 }
 0x48b   : > { %v5851_v33 = vpop.permute.xlu1 %1924 }
 0x48c   : > { %v5853_v58 = vadd.f32 %v2035_v5, %v1977_v22  ;;  %2060 = vrot.lane.b32.xlu2 %v5699_v32, %s4307_s14  ;;  %v5878_v5 = vperm.slane %v5797_v42, 2 }
 0x48e   : > { %7758 = vst [vmem:[#allocation30_spill] sm:$0xff] %v5853_v58  ;;  %v5857_v18 = vpop.permute.xlu2 %2052  ;;  %v5859_v34 = vpop.permute.xlu0 %2056  ;;  %v2124_v58 = vmul.f32 %v5701_v39, %v5621_v21 }
 0x48f   : > { %7760 = vst [vmem:[#allocation32_spill] sm:$0xff] %v5878_v5 }
 0x491   : > { %2144 = vrot.lane.b32.xlu1 %v5625_v20, %s4309_s19 }
 0x493   : > { %v5863_v63 = vpop.permute.xlu1 %1990 }
 0x494   : > { %2220 = vrot.lane.b32.xlu2 %v5735_v13, %s4311_s20 }
 0x496   : > { %v5867_v57 = vpop.permute.xlu2 %1858  ;;  %v5869_v29 = vpop.permute.xlu0 %1852 }
 0x497   : > { %v1868_v28 = vsel %vm349_vm0, %v5741_v25, %v5867_v57 }
 0x498   : > { %v1886_v12 = vmul.f32 %v5888_v62, %v1868_v28 }
 0x499   : > { %2212 = vrot.lane.b32.xlu1 %v5643_v15, %s4311_s20 }
 0x49b   : > { %v5873_v22 = vpop.permute.xlu1 %2208 }
 0x49c   : > { %7759 = vst [vmem:[#allocation31_spill] sm:$0xff] %v5873_v22  ;;  %2286 = vrot.lane.b32.xlu2 %v5735_v13, %s4314_s21 }
 0x49e   : > { %v5880_v60 = vpop.permute.xlu2 %1926  ;;  %v5885_v23 = vpop.permute.xlu0 %2062 }
 0x49f   : > { %v1936_v48 = vsel %vm406_vm1, %v1923_v51, %v5880_v60  ;;  %v5903_v51 = vperm.slane %v5827_v55, 2 }
 0x4a0   : > { %v1954_v47 = vmul.f32 %v5878_v5, %v1936_v48  ;;  %v1904_v48 = vmul.f32 %v5689_v61, %v1886_v12 }
 0x4a1   : > { %2342 = vrot.lane.b32.xlu1 %v5625_v20, %s4317_s22  ;;  %7763 = vst [vmem:[#allocation35_spill] sm:$0xff] %v5903_v51 }
 0x4a2   : > { %v1970_v54 = vmul.f32 %v5653_v40, %v1954_v47 }
 0x4a3   : > { %v5897_v16 = vpop.permute.xlu1 %2274 }
 0x4a4   : > { %7762 = vst [vmem:[#allocation34_spill] sm:$0xff] %v5897_v16  ;;  %2352 = vrot.lane.b32.xlu2 %v5735_v13, %s4317_s22  ;;  %v1978_v28 = vadd.f32 %v1970_v54, %v1904_v48 }
 0x4a6   : > { %v5906_v4 = vpop.permute.xlu2 %1992  ;;  %v5913_v35 = vpop.permute.xlu0 %2148 }
 0x4a7   : > { %v2002_v25 = vsel %vm462_vm2, %v1989_v53, %v5906_v4  ;;  %7764 = vst [vmem:[#allocation36_spill] sm:$0xff] %v5913_v35 }
 0x4a8   : > { %v2020_v16 = vmul.f32 %v5903_v51, %v2002_v25  ;;  %v5939_v25 = vperm.slane %v5797_v42, 0 }
 0x4aa   : > { %v2036_v22 = vmul.f32 %v5669_v3, %v2020_v16  ;;  %7769 = vst [vmem:[#allocation41_spill] sm:$0xff] %v5939_v25 }
 0x4ab   : > { %v5916_v9 = vpop.permute.xlu1 %2340 }
 0x4ac   : > { %7765 = vst [vmem:[#allocation37_spill] sm:$0xff] %v5916_v9  ;;  %v5918_v56 = vadd.f32 %v2036_v22, %v1978_v28  ;;  %2146 = vrot.lane.b32.xlu2 %v5643_v15, %s4309_s19  ;;  %v5945_v9 = vperm.slane %v5792_v31, 0 }
 0x4ae   : > { %7766 = vst [vmem:[#allocation38_spill] sm:$0xff] %v5918_v56  ;;  %v5922_v47 = vpop.permute.xlu2 %2152  ;;  %v5924_v1 = vpop.permute.xlu0 %1860 }
 0x4af   : > { %7770 = vst [vmem:[#allocation42_spill] sm:$0xff] %v5945_v9 }
 0x4b3   : > { %v5926_v53 = vpop.permute.xlu1 %1986 }
 0x4b4   : > { %2276 = vrot.lane.b32.xlu2 %v5625_v20, %s4314_s21 }
 0x4b6   : > { %v5930_v12 = vpop.permute.xlu2 %2214  ;;  %v5934_v16 = vpop.permute.xlu0 %1928 }
 0x4b7   : > { %7767 = vst [vmem:[#allocation39_spill] sm:$0xff] %v5930_v12  ;;  %v5962_v12 = vperm.slane %v5827_v55, 0 }
 0x4b9   : > { %7774 = vst [vmem:[#allocation46_spill] sm:$0xff] %v5962_v12 }
 0x4bb   : > { %v1863_v54 = vpop.permute.xlu1 %1862 }
 0x4bc   : > { %2344 = vrot.lane.b32.xlu2 %v5643_v15, %s4317_s22  ;;  %v1872_v41 = vsel %vm349_vm0, %v1863_v54, %v5785_v10  ;;  %v2072_v10 = vsel %vm518_vm3, %v5885_v23, %v5799_v45 }
 0x4be   : > { %v5936_v22 = vpop.permute.xlu2 %2280  ;;  %v5952_v51 = vpop.permute.xlu0 %1994 }
 0x4bf   : > { %7768 = vst [vmem:[#allocation40_spill] sm:$0xff] %v5936_v22  ;;  %v4046_v22 = vld [vmem:[%s7497_s1 + $0x3] ss:$8 sm:$0xf] }
 0x4c0   : > { %7772 = vst [vmem:[#allocation44_spill] sm:$0xff] %v5952_v51  ;;  %v5958_v36 = vperm.slane %v4046_v22, 0 }
 0x4c2   : > { %7773 = vst [vmem:[#allocation45_spill] sm:$0xff] %v5958_v36 }
 0x4c3   : > { %v1931_v48 = vpop.permute.xlu1 %1930 }
 0x4c4   : > { %v1940_v28 = vsel %vm406_vm1, %v1931_v48, %v5779_v24  ;;  %v1884_v24 = vmul.f32 %v5945_v9, %v1872_v41 }
 0x4c5   : > { %v1952_v37 = vmul.f32 %v5939_v25, %v1940_v28  ;;  %v2084_v25 = vmul.f32 %v5958_v36, %v2072_v10 }
 0x4c6   : > { %v5950_v6 = vpop.permute.xlu2 %2346  ;;  %v1902_v56 = vmul.f32 %v5689_v61, %v1884_v24  ;;  %v5979_v14 = vpop.permute.xlu0 %2154  ;;  %v2070_v24 = vsel %vm518_vm3, %v5799_v45, %v5753_v46  ;;  %v6007_v45 = vmul.f32 %v5701_v39, %v5625_v20 }
 0x4c7   : > { %7771 = vst [vmem:[#allocation43_spill] sm:$0xff] %v5950_v6  ;;  %v1968_v6 = vmul.f32 %v5653_v40, %v1952_v37  ;;  %v2100_v62 = vmul.f32 %v5683_v43, %v2084_v25  ;;  %v6033_v25 = vperm.slane %v4046_v22, 2 }
 0x4c8   : > { %7778 = vst [vmem:[#allocation50_spill] sm:$0xff] %v6007_v45  ;;  %v6178_v45 = vld [vmem:[%s7497_s1 + $0x20] ss:$8 sm:$0xf] }
 0x4c9   : > { %v1976_v5 = vadd.f32 %v1968_v6, %v1902_v56  ;;  %v5990_v6 = vperm.slane %v5797_v42, 3  ;;  %v5994_v56 = vmul.f32 %v5701_v39, %v5687_v0  ;;  %v1871_v0 = vsel %vm349_vm0, %v5869_v29, %v5831_v38 }
 0x4ca   : > { %v6019_v42 = vperm.slane %v5792_v31, 3 }
 0x4cb   : > { %v1997_v51 = vpop.permute.xlu1 %1996  ;;  %7776 = vst [vmem:[#allocation48_spill] sm:$0xff] %v5990_v6 }
 0x4cc   : > { %v2006_v28 = vsel %vm462_vm2, %v1997_v51, %v5842_v59  ;;  %v5983_v59 = vperm.slane %v4046_v22, 1  ;;  %7780 = vst [vmem:[#allocation52_spill] sm:$0xff] %v6019_v42 }
 0x4cd   : > { %v2018_v41 = vmul.f32 %v5962_v12, %v2006_v28 }
 0x4ce   : > { %v5975_v9 = vpop.permute.xlu2 %1864  ;;  %7775 = vst [vmem:[#allocation47_spill] sm:$0xff] %v5983_v59  ;;  %v2085_v20 = vmul.f32 %v5983_v59, %v2070_v24  ;;  %v2156_v24 = vsel %vm598_vm4, %v5913_v35, %v5922_v47 }
 0x4cf   : > { %v2034_v7 = vmul.f32 %v5669_v3, %v2018_v41 }
 0x4d1   : > { %v2042_v37 = vadd.f32 %v2034_v7, %v1976_v5  ;;  %v5998_v7 = vmul.f32 %v5701_v39, %v5675_v8  ;;  %v6016_v8 = vld [vmem:[%s7497_s1 + $0x5] ss:$8 sm:$0xf]  ;;  %v1866_v39 = vsel %vm349_vm0, %v5867_v57, %v1863_v54  ;;  %v1889_v57 = vmul.f32 %v5806_v26, %v1871_v0 }
 0x4d2   : > { %7779 = vst [vmem:[#allocation51_spill] sm:$0xff] %v6016_v8  ;;  %v6047_v54 = vperm.slane %v6016_v8, 2  ;;  %v1887_v41 = vmul.f32 %v6019_v42, %v1866_v39  ;;  %v6079_v39 = vmul.f32 %v5697_v52, %v5663_v30 }
 0x4d3   : > { %v2108_v10 = vadd.f32 %v2100_v62, %v2042_v37  ;;  %v2059_v36 = vpop.permute.xlu1 %2058  ;;  %v1934_v62 = vsel %vm406_vm1, %v5880_v60, %v1931_v48  ;;  %v2000_v60 = vsel %vm462_vm2, %v5906_v4, %v1997_v51  ;;  %v6040_v48 = vperm.slane %v4046_v22, 3 }
 0x4d4   : > { %v1955_v31 = vmul.f32 %v5990_v6, %v1934_v62  ;;  %v2068_v28 = vsel %vm518_vm3, %v5753_v46, %v2059_v36  ;;  %v2005_v4 = vsel %vm462_vm2, %v5926_v53, %v5863_v63  ;;  %v2066_v51 = vsel %vm518_vm3, %v2059_v36, %v5885_v23  ;;  %v6074_v36 = vpop.permute.xlu0 %2216 }
 0x4d5   : > { %v6003_v21 = vadd.f32 %v2124_v58, %v2108_v10  ;;  %v6022_v58 = vperm.slane %v5827_v55, 3  ;;  %v1939_v55 = vsel %vm406_vm1, %v5840_v50, %v5851_v33  ;;  %v2071_v22 = vsel %vm518_vm3, %v5857_v18, %v5859_v34 }
 0x4d6   : > { %v6024_v5 = vpop.permute.xlu2 %1932  ;;  %v6061_v46 = vperm.slane %v6016_v8, 3  ;;  %v1957_v10 = vmul.f32 %v5809_v2, %v1939_v55  ;;  %v2162_v23 = vsel %vm598_vm4, %v5922_v47, %v5769_v27  ;;  %v2086_v62 = vmul.f32 %v6033_v25, %v2068_v28 }
 0x4d7   : > { %7777 = vst [vmem:[#allocation49_spill] sm:$0xff] %v6003_v21  ;;  %v2021_v37 = vmul.f32 %v6022_v58, %v2000_v60  ;;  %v2023_v60 = vmul.f32 %v5836_v17, %v2005_v4  ;;  %v1971_v55 = vmul.f32 %v5653_v40, %v1955_v31  ;;  %v2087_v26 = vmul.f32 %v6040_v48, %v2066_v51 }
 0x4d8   : > { %7781 = vst [vmem:[#allocation53_spill] sm:$0xff] %v6022_v58  ;;  %v2089_v2 = vmul.f32 %v5983_v59, %v2071_v22  ;;  %v1907_v21 = vmul.f32 %v5659_v19, %v1889_v57  ;;  %v1869_v47 = vsel %vm349_vm0, %v5831_v38, %v5924_v1  ;;  %v6092_v28 = vmul.f32 %v5697_v52, %v5735_v13  ;;  %v6130_v59 = vld [vmem:[%s7497_s1 + $0x7] ss:$8 sm:$0xf] }
 0x4d9   : > { %v2176_v30 = vmul.f32 %v6047_v54, %v2156_v24  ;;  %v2177_v4 = vmul.f32 %v6061_v46, %v2162_v23  ;;  %v1905_v40 = vmul.f32 %v5689_v61, %v1887_v41  ;;  %v2037_v31 = vmul.f32 %v5669_v3, %v2021_v37  ;;  %v7786_v24 = vld [vmem:[#allocation8_spill] sm:$0xff] }
 0x4da   : > { %v2101_v57 = vmul.f32 %v5683_v43, %v2085_v20  ;;  %v1973_v22 = vmul.f32 %v5671_v44, %v1957_v10  ;;  %v2102_v17 = vmul.f32 %v5683_v43, %v2086_v62  ;;  %v6103_v38 = vmul.f32 %v5697_v52, %v5699_v32  ;;  %v6114_v20 = vld [vmem:[%s7497_s1 + $0x6] ss:$8 sm:$0xf] }
 0x4db   : > { %v2219_v0 = vpop.permute.xlu1 %2218  ;;  %v1937_v13 = vsel %vm406_vm1, %v5851_v33, %v5934_v16  ;;  %v2039_v61 = vmul.f32 %v5707_v11, %v2023_v60  ;;  %v1979_v41 = vadd.f32 %v1971_v55, %v1905_v40  ;;  %v2103_v3 = vmul.f32 %v5683_v43, %v2087_v26  ;;  %v7784_v32 = vld [vmem:[#allocation30_spill] sm:$0xff]  ;;  %v7787_v33 = vld [vmem:[#allocation33_spill] sm:$0xff]  ;;  %v7788_v55 = vld [vmem:[#allocation16_spill] sm:$0xff] }
 0x4dc   : > { %7782 = vst [vmem:[#allocation54_spill] sm:$0xff] %v6103_v38  ;;  %v6118_v37 = vmul.f32 %v5697_v52, %v5643_v15  ;;  %v6121_v10 = vadd.f32 %v2101_v57, %v7784_v32  ;;  %v2105_v23 = vmul.f32 %v7786_v24, %v2089_v2  ;;  %v1890_v62 = vmul.f32 %v7787_v33, %v1869_v47  ;;  %v7789_v15 = vld [vmem:[#allocation32_spill] sm:$0xff]  ;;  %v7802_v33 = vld [vmem:[#allocation22_spill] sm:$0xff] }
 0x4dd   : > { %v1981_v60 = vadd.f32 %v1973_v22, %v1907_v21  ;;  %v2192_v40 = vmul.f32 %v7788_v55, %v2176_v30  ;;  %v2193_v43 = vmul.f32 %v7788_v55, %v2177_v4  ;;  %v2045_v26 = vadd.f32 %v2037_v31, %v1979_v41  ;;  %v7793_v4 = vld [vmem:[#allocation39_spill] sm:$0xff]  ;;  %v7795_v22 = vld [vmem:[#allocation28_spill] sm:$0xff] }
 0x4de   : > { %v1999_v51 = vpop.permute.xlu2 %1998  ;;  %7783 = vst [vmem:[#allocation55_spill] sm:$0xff] %v6118_v37  ;;  %v1958_v52 = vmul.f32 %v7789_v15, %v1937_v13  ;;  %v7790_v37 = vld [vmem:[#allocation38_spill] sm:$0xff]  ;;  %v6135_v32 = vperm.slane %v6114_v20, 2  ;;  %v6138_v2 = vperm.slane %v6114_v20, 3  ;;  %v2222_v31 = vsel %vm7794_vm10, %v7793_v4, %v2219_v0  ;;  %v6151_v15 = vpop.permute.xlu0 %2282  ;;  %vm7829_vm10 = vmmov %vm7796_vm5 }
 0x4df   : > { %7785 = vst [vmem:[#allocation30_spill] sm:$0xff] %v6121_v10  ;;  %v2110_v57 = vadd.f32 %v2102_v17, %v7790_v37  ;;  %v2047_v47 = vadd.f32 %v2039_v61, %v1981_v60  ;;  %v2111_v30 = vadd.f32 %v2103_v3, %v2045_v26  ;;  %v2228_v41 = vsel %vm7796_vm5, %v2219_v0, %v7795_v22  ;;  %v7797_v17 = vld [vmem:[#allocation44_spill] sm:$0xff] }
 0x4e0   : > { %7791 = vst [vmem:[#allocation8_spill] sm:$0xff] %v6135_v32  ;;  %v1908_v13 = vmul.f32 %v5659_v19, %v1890_v62  ;;  %v2003_v37 = vsel %vm462_vm2, %v5863_v63, %v7797_v17  ;;  %v6154_v61 = vperm.slane %v6130_v59, 2  ;;  %v6157_v3 = vperm.slane %v6130_v59, 3  ;;  %v7800_v63 = vld [vmem:[#allocation40_spill] sm:$0xff] }
 0x4e1   : > { %7792 = vst [vmem:[#allocation38_spill] sm:$0xff] %v6138_v2  ;;  %v1873_v0 = vsel %vm349_vm0, %v5975_v9, %v5869_v29  ;;  %v1935_v62 = vsel %vm406_vm1, %v5934_v16, %v6024_v5  ;;  %v1941_v29 = vsel %vm406_vm1, %v6024_v5, %v5840_v50  ;;  %v2134_v16 = vadd.f32 %v5994_v56, %v2110_v57  ;;  %v7808_v57 = vld [vmem:[#allocation41_spill] sm:$0xff] }
 0x4e2   : > { %7798 = vst [vmem:[#allocation39_spill] sm:$0xff] %v6154_v61  ;;  %v2242_v10 = vmul.f32 %v6135_v32, %v2222_v31  ;;  %v1974_v27 = vmul.f32 %v5671_v44, %v1958_v52  ;;  %v6188_v35 = vadd.f32 %v2105_v23, %v2047_v47  ;;  %v2135_v8 = vadd.f32 %v5998_v7, %v2111_v30  ;;  %v7807_v23 = vld [vmem:[#allocation42_spill] sm:$0xff]  ;;  %v7809_v31 = vld [vmem:[#allocation21_spill] sm:$0xff] }
 0x4e3   : > { %v2285_v21 = vpop.permute.xlu1 %2284  ;;  %7799 = vst [vmem:[#allocation44_spill] sm:$0xff] %v6157_v3  ;;  %v6195_v50 = vperm.slane %v6178_v45, 2  ;;  %v6198_v56 = vperm.slane %v6178_v45, 3  ;;  %v1867_v5 = vsel %vm349_vm0, %v5924_v1, %v5975_v9  ;;  %v1888_v52 = vmul.f32 %v7807_v23, %v1873_v0  ;;  %v7810_v0 = vld [vmem:[#allocation43_spill] sm:$0xff] }
 0x4e4   : > { %v2288_v26 = vsel %vm7801_vm7, %v7800_v63, %v2285_v21  ;;  %v2294_v55 = vsel %vm7803_vm13, %v2285_v21, %v7802_v33  ;;  %v2243_v63 = vmul.f32 %v6138_v2, %v2228_v41  ;;  %v7804_v21 = vld [vmem:[#allocation35_spill] sm:$0xff]  ;;  %v1956_v47 = vmul.f32 %v7808_v57, %v1941_v29  ;;  %vm7834_vm7 = vmmov %vm7811_vm14 }
 0x4e5   : > { %v2024_v33 = vmul.f32 %v7804_v21, %v2003_v37  ;;  %v2308_v38 = vmul.f32 %v6154_v61, %v2288_v26  ;;  %v2309_v22 = vmul.f32 %v6157_v3, %v2294_v55  ;;  %7805 = vst [vmem:[#allocation56_spill] sm:$0xff] %v6195_v50  ;;  %v1959_v7 = vmul.f32 %v5990_v6, %v1935_v62  ;;  %v7812_v62 = vld [vmem:[#allocation24_spill] sm:$0xff]  ;;  %v7815_v21 = vld [vmem:[#allocation27_spill] sm:$0xff]  ;;  %vm7836_vm13 = vmmov %vm7834_vm7 }
 0x4e6   : > { %v6167_v60 = vpop.permute.xlu2 %2060  ;;  %7806 = vst [vmem:[#allocation57_spill] sm:$0xff] %v6198_v56  ;;  %v2007_v55 = vsel %vm462_vm2, %v1999_v51, %v5926_v53  ;;  %v2200_v30 = vadd.f32 %v2192_v40, %v2134_v16  ;;  %v2258_v41 = vmul.f32 %v7809_v31, %v2242_v10  ;;  %v2259_v37 = vmul.f32 %v7809_v31, %v2243_v63  ;;  %v7814_v53 = vld [vmem:[#allocation2_spill] sm:$0xff]  ;;  %v6233_v23 = vpop.permute.xlu0 %2348 }
 0x4e7   : > { %v2001_v9 = vsel %vm462_vm2, %v7797_v17, %v1999_v51  ;;  %v2201_v1 = vadd.f32 %v2193_v43, %v2135_v8  ;;  %v2324_v40 = vmul.f32 %v7814_v53, %v2308_v38  ;;  %v2325_v10 = vmul.f32 %v7814_v53, %v2309_v22 }
 0x4e8   : > { %v2163_v8 = vsel %vm598_vm4, %v5979_v14, %v7815_v21  ;;  %v1891_v51 = vmul.f32 %v6019_v42, %v1867_v5  ;;  %v1972_v43 = vmul.f32 %v5671_v44, %v1956_v47  ;;  %v2022_v17 = vmul.f32 %v5962_v12, %v2007_v55  ;;  %v7816_v12 = vld [vmem:[#allocation5_spill] sm:$0xff] }
 0x4e9   : > { %v2025_v38 = vmul.f32 %v6022_v58, %v2001_v9  ;;  %v2266_v22 = vadd.f32 %v2258_v41, %v2200_v30  ;;  %v1982_v57 = vadd.f32 %v1974_v27, %v1908_v13  ;;  %v1906_v5 = vmul.f32 %v5659_v19, %v1888_v52 }
 0x4ea   : > { %v1975_v47 = vmul.f32 %v5671_v44, %v1959_v7  ;;  %v2181_v30 = vmul.f32 %v6061_v46, %v2163_v8  ;;  %v1909_v41 = vmul.f32 %v5659_v19, %v1891_v51 }
 0x4eb   : > { %v2351_v26 = vpop.permute.xlu1 %2350  ;;  %v2332_v55 = vadd.f32 %v2324_v40, %v2266_v22  ;;  %v1980_v27 = vadd.f32 %v1972_v43, %v1906_v5  ;;  %v7821_v43 = vld [vmem:[#allocation12_spill] sm:$0xff] }
 0x4ec   : > { %v2354_v29 = vsel %vm7811_vm14, %v7810_v0, %v2351_v26  ;;  %v2360_v6 = vsel %vm7813_vm15, %v2351_v26, %v7812_v62  ;;  %v2040_v62 = vmul.f32 %v5707_v11, %v2024_v33  ;;  %v2041_v33 = vmul.f32 %v5707_v11, %v2025_v38  ;;  %vm7843_vm14 = vmmov %vm7823_vm11 }
 0x4ed   : > { %v2374_v63 = vmul.f32 %v6195_v50, %v2354_v29  ;;  %v2375_v16 = vmul.f32 %v6198_v56, %v2360_v6  ;;  %v2267_v29 = vadd.f32 %v2259_v37, %v2201_v1  ;;  %v2069_v6 = vsel %vm518_vm3, %v5859_v34, %v6167_v60  ;;  %v7817_v1 = vld [vmem:[#allocation31_spill] sm:$0xff]  ;;  %vm7845_vm15 = vmmov %vm7823_vm11 }
 0x4ee   : > { %v2221_v26 = vpop.permute.xlu2 %2220  ;;  %v2038_v37 = vmul.f32 %v5707_v11, %v2022_v17  ;;  %v2090_v34 = vmul.f32 %v6033_v25, %v2069_v6  ;;  %v1983_v7 = vadd.f32 %v1975_v47, %v1909_v41  ;;  %v2048_v51 = vadd.f32 %v2040_v62, %v1982_v57  ;;  %v7822_v6 = vld [vmem:[#allocation34_spill] sm:$0xff] }
 0x4ef   : > { %v2333_v42 = vadd.f32 %v2325_v10, %v2267_v29  ;;  %v2390_v9 = vmul.f32 %v7816_v12, %v2374_v63  ;;  %v2391_v58 = vmul.f32 %v7816_v12, %v2375_v16  ;;  %v2229_v40 = vsel %vm7818_vm9, %v2221_v26, %v7817_v1  ;;  %v7819_v63 = vld [vmem:[#allocation11_spill] sm:$0xff]  ;;  %vm7850_vm9 = vmmov %vm7796_vm5 }
 0x4f0   : > { %v2197_v17 = vmul.f32 %v7821_v43, %v2181_v30  ;;  %v2046_v38 = vadd.f32 %v2038_v37, %v1980_v27  ;;  %v2049_v29 = vadd.f32 %v2041_v33, %v1983_v7  ;;  %v6277_v57 = vperm.slane %v6114_v20, 1  ;;  %v2211_v30 = vpop.permute.xlu0 %2210 }
 0x4f1   : > { %v2398_v13 = vadd.f32 %v2390_v9, %v2332_v55  ;;  %v2399_v52 = vadd.f32 %v2391_v58, %v2333_v42  ;;  %v7820_v42 = vld [vmem:[#allocation45_spill] sm:$0xff]  ;;  %v6274_v55 = vperm.slane %v6114_v20, 0  ;;  %v2223_v62 = vsel %vm7826_vm6, %v6074_v36, %v2221_v26  ;;  %vm7855_vm6 = vmmov %vm7828_vm12 }
 0x4f2   : > { %7825 = vst [vmem:[#allocation43_spill] sm:$0xff] %v6277_v57  ;;  %v2247_v9 = vmul.f32 %v6138_v2, %v2229_v40  ;;  %v6286_v33 = vperm.slane %v6130_v59, 0 }
 0x4f3   : > { %v2065_v44 = vpop.permute.xlu1 %2064  ;;  %v6259_v16 = vadd.f32 %v7819_v63, %v2398_v13  ;;  %v6262_v11 = vadd.f32 %v7819_v63, %v2399_v52  ;;  %7824 = vst [vmem:[#allocation21_spill] sm:$0xff] %v6274_v55 }
 0x4f4   : > { %v2067_v10 = vsel %vm518_vm3, %v6167_v60, %v2065_v44  ;;  %v2073_v19 = vsel %vm518_vm3, %v2065_v44, %v5857_v18  ;;  %v2106_v60 = vmul.f32 %v7786_v24, %v2090_v34  ;;  %7827 = vst [vmem:[#allocation2_spill] sm:$0xff] %v6286_v33 }
 0x4f5   : > { %v2088_v58 = vmul.f32 %v7820_v42, %v2073_v19  ;;  %v2091_v8 = vmul.f32 %v6040_v48, %v2067_v10  ;;  %v2430_v34 = vmul.f32 0.044715, %v6259_v16  ;;  %v2431_v27 = vmul.f32 0.044715, %v6262_v11 }
 0x4f6   : > { %v2287_v22 = vpop.permute.xlu2 %2286  ;;  %v2224_v10 = vsel %vm7829_vm10, %v2211_v30, %v7793_v4  ;;  %v2246_v19 = vmul.f32 %v6135_v32, %v2223_v62  ;;  %v7833_v62 = vld [vmem:[#allocation54_spill] sm:$0xff]  ;;  %vm7859_vm10 = vmmov %vm7834_vm7 }
 0x4f7   : > { %v2295_v18 = vsel %vm7823_vm11, %v2287_v22, %v7822_v6  ;;  %v2104_v5 = vmul.f32 %v7786_v24, %v2088_v58  ;;  %v2107_v47 = vmul.f32 %v7786_v24, %v2091_v8  ;;  %v2114_v24 = vadd.f32 %v2106_v60, %v2048_v51  ;;  %v7830_v58 = vld [vmem:[#allocation13_spill] sm:$0xff]  ;;  %vm7852_vm11 = vmmov %vm7796_vm5 }
 0x4f8   : > { %v2289_v20 = vsel %vm7828_vm12, %v6151_v15, %v2287_v22  ;;  %v2313_v13 = vmul.f32 %v6157_v3, %v2295_v18  ;;  %v2438_v7 = vmul.f32 %v2430_v34, %v6259_v16  ;;  %v2439_v40 = vmul.f32 %v2431_v27, %v6262_v11  ;;  %v7831_v22 = vld [vmem:[#allocation28_spill] sm:$0xff]  ;;  %v7837_v27 = vld [vmem:[#allocation51_spill] sm:$0xff]  ;;  %vm7857_vm12 = vmmov %vm7855_vm6 }
 0x4f9   : > { %v2112_v41 = vadd.f32 %v2104_v5, %v2046_v38  ;;  %v2115_v37 = vadd.f32 %v2107_v47, %v2049_v29  ;;  %v2263_v8 = vmul.f32 %v7830_v58, %v2247_v9  ;;  %v2226_v29 = vsel %vm7796_vm5, %v7831_v22, %v2211_v30  ;;  %v7832_v18 = vld [vmem:[#allocation20_spill] sm:$0xff]  ;;  %vm7861_vm5 = vmmov %vm7834_vm7 }
 0x4fa   : > { %v2446_v38 = vmul.f32 %v2438_v7, %v6259_v16  ;;  %v2447_v60 = vmul.f32 %v2439_v40, %v6262_v11  ;;  %v2312_v4 = vmul.f32 %v6154_v61, %v2289_v20  ;;  %v2329_v5 = vmul.f32 %v7832_v18, %v2313_v13 }
 0x4fb   : > { %v2139_v26 = vadd.f32 %v6092_v28, %v2115_v37  ;;  %v2151_v52 = vpop.permute.xlu1 %2150  ;;  %v6294_v44 = vadd.f32 %v6079_v39, %v2112_v41  ;;  %v2138_v9 = vadd.f32 %v7833_v62, %v2114_v24  ;;  %v6324_v20 = vperm.slane %v7837_v27, 1 }
 0x4fc   : > { %v2157_v28 = vsel %vm598_vm4, %v2151_v52, %v5979_v14  ;;  %v2454_v13 = vadd.f32 %v2446_v38, %v6259_v16  ;;  %v2455_v24 = vadd.f32 %v2447_v60, %v6262_v11  ;;  %v6332_v22 = vperm.slane %v7837_v27, 0  ;;  %v2279_v38 = vpop.permute.xlu0 %2278 }
 0x4fd   : > { %v2205_v51 = vadd.f32 %v2197_v17, %v2139_v26  ;;  %v2180_v39 = vmul.f32 %v6047_v54, %v2157_v28  ;;  %v7835_v17 = vld [vmem:[#allocation37_spill] sm:$0xff]  ;;  %v2262_v26 = vmul.f32 %v7830_v58, %v2246_v19  ;;  %v7838_v28 = vld [vmem:[#allocation15_spill] sm:$0xff]  ;;  %v2240_v62 = vmul.f32 %v6274_v55, %v2226_v29 }
 0x4fe   : > { %v2353_v47 = vpop.permute.xlu2 %2352  ;;  %7839 = vst [vmem:[#allocation27_spill] sm:$0xff] %v6332_v22  ;;  %v2328_v60 = vmul.f32 %v7832_v18, %v2312_v4  ;;  %v6346_v4 = vperm.slane %v6130_v59, 1  ;;  %v2293_v27 = vsel %vm7843_vm14, %v7822_v6, %v2279_v38  ;;  %v7846_v59 = vld [vmem:[#allocation30_spill] sm:$0xff] }
 0x4ff   : > { %v2271_v41 = vadd.f32 %v2263_v8, %v2205_v51  ;;  %v2355_v14 = vsel %vm7834_vm7, %v6233_v23, %v2353_v47  ;;  %v2361_v37 = vsel %vm7836_vm13, %v2353_v47, %v7835_v17  ;;  %v2196_v34 = vmul.f32 %v7821_v43, %v2180_v39  ;;  %vm7862_vm7 = vmmov %vm7861_vm5 }
 0x500   : > { %v2379_v30 = vmul.f32 %v6198_v56, %v2361_v37  ;;  %v2378_v40 = vmul.f32 %v6195_v50, %v2355_v14  ;;  %v2462_v39 = vmul.f32 0.7978846, %v2454_v13  ;;  %v2463_v47 = vmul.f32 0.7978846, %v2455_v24  ;;  %v7841_v14 = vld [vmem:[#allocation23_spill] sm:$0xff]  ;;  %7842 = vst [vmem:[#allocation5_spill] sm:$0xff] %v6346_v4  ;;  %vm7863_vm13 = vmmov %vm7861_vm5 }
 0x501   : > { %v2337_v7 = vadd.f32 %v2329_v5, %v2271_v41  ;;  %v2204_v8 = vadd.f32 %v2196_v34, %v2138_v9  ;;  %v2241_v37 = vmul.f32 %v6277_v57, %v2224_v10  ;;  %v7840_v41 = vld [vmem:[#allocation36_spill] sm:$0xff]  ;;  %v7844_v13 = vld [vmem:[#allocation19_spill] sm:$0xff] }
 0x502   : > { %v2395_v51 = vmul.f32 %v7838_v28, %v2379_v30  ;;  %4202 = vtanh.f32 %v2462_v39  ;;  %v2394_v30 = vmul.f32 %v7838_v28, %v2378_v40 }
 0x503   : > { %v2270_v56 = vadd.f32 %v2262_v26, %v2204_v8  ;;  %v2145_v19 = vpop.permute.xlu1 %2144  ;;  %4204 = vtanh.f32 %v2463_v47  ;;  %v7848_v47 = vld [vmem:[#allocation55_spill] sm:$0xff] }
 0x504   : > { %v2403_v5 = vadd.f32 %v2395_v51, %v2337_v7  ;;  %v2158_v9 = vsel %vm598_vm4, %v2145_v19, %v7840_v41  ;;  %v2160_v34 = vsel %vm598_vm4, %v7841_v14, %v2145_v19  ;;  %v7847_v51 = vld [vmem:[#allocation50_spill] sm:$0xff]  ;;  %v2137_v6 = vadd.f32 %v7848_v47, %v6188_v35 }
 0x505   : > { %v2336_v29 = vadd.f32 %v2328_v60, %v2270_v56  ;;  %v2175_v10 = vmul.f32 %v6324_v20, %v2158_v9  ;;  %v2174_v7 = vmul.f32 %v6332_v22, %v2160_v34  ;;  %v2291_v56 = vsel %vm7845_vm15, %v2279_v38, %v6151_v15 }
 0x506   : > { %v6352_v24 = vadd.f32 %v7844_v13, %v2403_v5  ;;  %v2147_v26 = vpop.permute.xlu2 %2146  ;;  %v2133_v39 = vadd.f32 %v7847_v51, %v7846_v59  ;;  %v7849_v5 = vld [vmem:[#allocation16_spill] sm:$0xff]  ;;  %v2256_v15 = vmul.f32 %v7809_v31, %v2240_v62  ;;  %v2257_v38 = vmul.f32 %v7809_v31, %v2241_v37 }
 0x507   : > { %v2402_v40 = vadd.f32 %v2394_v30, %v2336_v29  ;;  %v2159_v8 = vsel %vm598_vm4, %v2147_v26, %v2151_v52  ;;  %v2161_v60 = vsel %vm598_vm4, %v7815_v21, %v2147_v26  ;;  %v2191_v41 = vmul.f32 %v7849_v5, %v2175_v10 }
 0x508   : > { %v2179_v19 = vmul.f32 %v6324_v20, %v2159_v8  ;;  %v2310_v52 = vmul.f32 %v6286_v33, %v2293_v27  ;;  %v4203_v14 = vpop.eup %4202  ;;  %v2311_v35 = vmul.f32 %v6346_v4, %v2291_v56  ;;  %v2190_v34 = vmul.f32 %v7849_v5, %v2174_v7 }
 0x509   : > { %v6373_v9 = vadd.f32 %v7844_v13, %v2402_v40  ;;  %v2199_v30 = vadd.f32 %v2191_v41, %v2133_v39  ;;  %v2435_v21 = vmul.f32 0.044715, %v6352_v24  ;;  %v4205_v29 = vpop.eup %4204  ;;  %v2178_v10 = vmul.f32 %v6332_v22, %v2161_v60  ;;  %v7853_v39 = vld [vmem:[#allocation49_spill] sm:$0xff]  ;;  %v7854_v41 = vld [vmem:[#allocation40_spill] sm:$0xff] }
 0x50a   : > { %v2422_v62 = vmul.f32 0.5, %v6259_v16  ;;  %v2478_v31 = vadd.f32 1.0, %v4203_v14  ;;  %v2195_v27 = vmul.f32 %v7821_v43, %v2179_v19  ;;  %v2423_v7 = vmul.f32 0.5, %v6262_v11  ;;  %v7856_v14 = vld [vmem:[#allocation22_spill] sm:$0xff] }
 0x50b   : > { %v2213_v26 = vpop.permute.xlu1 %2212  ;;  %v2434_v37 = vmul.f32 0.044715, %v6373_v9  ;;  %v6387_v40 = vperm.slane %v6178_v45, 0  ;;  %v2479_v59 = vadd.f32 1.0, %v4205_v29  ;;  %v2198_v47 = vadd.f32 %v2190_v34, %v7853_v39 }
 0x50c   : > { %v2225_v56 = vsel %vm7850_vm9, %v2213_v26, %v6074_v36  ;;  %v2227_v8 = vsel %vm7852_vm11, %v7817_v1, %v2213_v26  ;;  %v6393_v51 = vmul.f32 %v2478_v31, %v2422_v62  ;;  %v2443_v11 = vmul.f32 %v2435_v21, %v6352_v24 }
 0x50d   : > { %7851 = vst [vmem:[#allocation31_spill] sm:$0xff] %v6387_v40  ;;  %v2245_v16 = vmul.f32 %v6277_v57, %v2225_v56  ;;  %v2244_v19 = vmul.f32 %v6274_v55, %v2227_v8  ;;  %v2442_v36 = vmul.f32 %v2434_v37, %v6373_v9  ;;  %v2194_v5 = vmul.f32 %v7821_v43, %v2178_v10 }
 0x50e   : > { %v2277_v60 = vpop.permute.xlu2 %2276  ;;  %v6406_v26 = vmul.f32 %v2479_v59, %v2423_v7  ;;  %v2203_v37 = vadd.f32 %v2195_v27, %v2137_v6  ;;  %v6415_v10 = vperm.slane %v6178_v45, 1  ;;  %v2451_v56 = vmul.f32 %v2443_v11, %v6352_v24 }
 0x50f   : > { %v2290_v1 = vsel %vm7855_vm6, %v2277_v60, %v7854_v41  ;;  %v2292_v29 = vsel %vm7857_vm12, %v7856_v14, %v2277_v60  ;;  %v2261_v31 = vmul.f32 %v7830_v58, %v2245_v16  ;;  %v2450_v21 = vmul.f32 %v2442_v36, %v6373_v9 }
 0x510   : > { %v2306_v34 = vmul.f32 %v6286_v33, %v2292_v29  ;;  %v2307_v62 = vmul.f32 %v6346_v4, %v2290_v1  ;;  %v2561_v43 = vadd.f32 %v6406_v26, %v6393_v51  ;;  %7858 = vst [vmem:[#allocation11_spill] sm:$0xff] %v6415_v10  ;;  %v2260_v59 = vmul.f32 %v7830_v58, %v2244_v19  ;;  %v7860_v58 = vld [vmem:[#allocation24_spill] sm:$0xff] }
 0x511   : > { %v2458_v39 = vadd.f32 %v2450_v21, %v6373_v9  ;;  %v2326_v16 = vmul.f32 %v7832_v18, %v2310_v52  ;;  %v2327_v6 = vmul.f32 %v7832_v18, %v2311_v35  ;;  %v2264_v27 = vadd.f32 %v2256_v15, %v2198_v47 }
 0x512   : > { %v2322_v7 = vmul.f32 %v7814_v53, %v2306_v34  ;;  %v2323_v8 = vmul.f32 %v7814_v53, %v2307_v62  ;;  %2562 = vadd.xlane.f32.xlu0 %v2561_v43  ;;  %v2459_v45 = vadd.f32 %v2451_v56, %v6352_v24  ;;  %v2202_v36 = vadd.f32 %v2194_v5, %v6294_v44 }
 0x513   : > { %v2343_v60 = vpop.permute.xlu1 %2342  ;;  %v2265_v11 = vadd.f32 %v2257_v38, %v2199_v30  ;;  %v2269_v41 = vadd.f32 %v2261_v31, %v2203_v37  ;;  %v2466_v18 = vmul.f32 0.7978846, %v2458_v39  ;;  %vm2514_vm15 = vcmask 64512  }
 0x514   : > { %v2356_v53 = vsel %vm7859_vm10, %v2343_v60, %v7810_v0  ;;  %v2358_v19 = vsel %vm7861_vm5, %v7860_v58, %v2343_v60  ;;  %v2467_v15 = vmul.f32 0.7978846, %v2459_v45  ;;  %v2330_v35 = vadd.f32 %v2322_v7, %v2264_v27 }
 0x515   : > { %v2373_v52 = vmul.f32 %v6415_v10, %v2356_v53  ;;  %v2331_v47 = vadd.f32 %v2323_v8, %v2265_v11  ;;  %v2268_v1 = vadd.f32 %v2260_v59, %v2202_v36  ;;  %v2372_v44 = vmul.f32 %v6387_v40, %v2358_v19 }
 0x516   : > { %v2345_v14 = vpop.permute.xlu2 %2344  ;;  %4206 = vtanh.f32 %v2466_v18  ;;  %v2335_v62 = vadd.f32 %v2327_v6, %v2269_v41  ;;  %v2427_v45 = vmul.f32 0.5, %v6352_v24 }
 0x517   : > { %v2357_v38 = vsel %vm7862_vm7, %v2345_v14, %v6233_v23  ;;  %v2359_v0 = vsel %vm7863_vm13, %v7835_v17, %v2345_v14  ;;  %v2389_v30 = vmul.f32 %v7816_v12, %v2373_v52  ;;  %v2388_v34 = vmul.f32 %v7816_v12, %v2372_v44 }
 0x518   : > { %v2376_v5 = vmul.f32 %v6387_v40, %v2359_v0  ;;  %v2377_v29 = vmul.f32 %v6415_v10, %v2357_v38  ;;  %4208 = vtanh.f32 %v2467_v15  ;;  %v2334_v21 = vadd.f32 %v2326_v16, %v2268_v1 }
 0x519   : > { %v2397_v31 = vadd.f32 %v2389_v30, %v2331_v47  ;;  %v2396_v43 = vadd.f32 %v2388_v34, %v2330_v35  ;;  %v2426_v16 = vmul.f32 0.5, %v6373_v9  ;;  %v7875_v10 = vmov 0  }
 0x51a   : > { %v2392_v37 = vmul.f32 %v7838_v28, %v2376_v5  ;;  %v2393_v23 = vmul.f32 %v7838_v28, %v2377_v29 }
 0x51b   : > { %v2413_v17 = vadd.f32 %v7819_v63, %v2397_v31  ;;  %v2412_v8 = vadd.f32 %v7819_v63, %v2396_v43 }
 0x51c   : > { %v2400_v56 = vadd.f32 %v2392_v37, %v2334_v21  ;;  %v2401_v7 = vadd.f32 %v2393_v23, %v2335_v62  ;;  %v4207_v59 = vpop.eup %4206 }
 0x51d   : > { %v2429_v39 = vmul.f32 0.044715, %v2413_v17  ;;  %v2482_v60 = vadd.f32 1.0, %v4207_v59  ;;  %v2428_v36 = vmul.f32 0.044715, %v2412_v8  ;;  %v2421_v34 = vmul.f32 0.5, %v2413_v17 }
 0x51e   : > { %v4209_v27 = vpop.eup %4208  ;;  %v2416_v12 = vadd.f32 %v7844_v13, %v2400_v56  ;;  %v2417_v6 = vadd.f32 %v7844_v13, %v2401_v7  ;;  %v2420_v37 = vmul.f32 0.5, %v2412_v8 }
 0x51f   : > { %v2483_v28 = vadd.f32 1.0, %v4209_v27  ;;  %v2437_v11 = vmul.f32 %v2429_v39, %v2413_v17  ;;  %v6452_v41 = vmul.f32 %v2482_v60, %v2426_v16  ;;  %v2436_v63 = vmul.f32 %v2428_v36, %v2412_v8 }
 0x520   : > { %v2432_v53 = vmul.f32 0.044715, %v2416_v12  ;;  %v2433_v52 = vmul.f32 0.044715, %v2417_v6  ;;  %v2424_v16 = vmul.f32 0.5, %v2416_v12  ;;  %v2425_v60 = vmul.f32 0.5, %v2417_v6 }
 0x521   : > { %v6454_v58 = vmul.f32 %v2483_v28, %v2427_v45  ;;  %v2445_v19 = vmul.f32 %v2437_v11, %v2413_v17  ;;  %v2444_v15 = vmul.f32 %v2436_v63, %v2412_v8  ;;  %v4322_v28 = vmov 256.0  }
 0x522   : > { %v2440_v18 = vmul.f32 %v2432_v53, %v2416_v12  ;;  %v2441_v35 = vmul.f32 %v2433_v52, %v2417_v6 }
 0x523   : > { %v2564_v13 = vadd.f32 %v6454_v58, %v6452_v41  ;;  %v2453_v9 = vadd.f32 %v2445_v19, %v2413_v17  ;;  %v2452_v24 = vadd.f32 %v2444_v15, %v2412_v8 }
 0x524   : > { %v2448_v47 = vmul.f32 %v2440_v18, %v2416_v12  ;;  %v2449_v14 = vmul.f32 %v2441_v35, %v2417_v6 }
 0x525   : > { %2565 = vadd.xlane.f32.xlu1 %v2564_v13  ;;  %v2461_v1 = vmul.f32 0.7978846, %v2453_v9  ;;  %v2460_v38 = vmul.f32 0.7978846, %v2452_v24  ;;  %v2493_v13 = vld [vmem:[%s7500_s4 + $0x48] sm:$0xff] }
 0x526   : > { %v2456_v44 = vadd.f32 %v2448_v47, %v2416_v12  ;;  %v2457_v0 = vadd.f32 %v2449_v14, %v2417_v6  ;;  %v2492_v6 = vld [vmem:[%s7500_s4 + $0x40] sm:$0xff] }
 0x527   : > { %4210 = vtanh.f32 %v2461_v1 }
 0x528   : > { %v2464_v30 = vmul.f32 0.7978846, %v2456_v44  ;;  %4212 = vtanh.f32 %v2460_v38  ;;  %v2465_v5 = vmul.f32 0.7978846, %v2457_v0 }
 0x52a   : > { %4214 = vtanh.f32 %v2464_v30 }
 0x52b   : > { %4216 = vtanh.f32 %v2465_v5 }
 0x52c   : > { %4218 = vrcp.f32 %v4322_v28 }
 0x52d   : > { %v4211_v29 = vpop.eup %4210 }
 0x52e   : > { %v2477_v62 = vadd.f32 1.0, %v4211_v29  ;;  %v4213_v31 = vpop.eup %4212 }
 0x52f   : > { %v2476_v23 = vadd.f32 1.0, %v4213_v31 }
 0x530   : > { %v4215_v21 = vpop.eup %4214  ;;  %v6458_v43 = vmul.f32 %v2477_v62, %v2421_v34  ;;  %v2494_v34 = vld [vmem:[%s7500_s4 + $0x50] sm:$0x1] }
 0x531   : > { %v4217_v56 = vpop.eup %4216  ;;  %v6460_v7 = vmul.f32 %v2476_v23, %v2420_v37  ;;  %v2480_v39 = vadd.f32 1.0, %v4215_v21  ;;  %v2496_v23 = vld [vmem:[%s7500_s4 + $0x60] sm:$0xff] }
 0x532   : > { %v2481_v27 = vadd.f32 1.0, %v4217_v56  ;;  %v4219_v36 = vpop.eup %4218  ;;  %v2495_v56 = vld [vmem:[%s7500_s4 + $0x58] sm:$0xff] }
 0x533   : > { %v2497_v59 = vadd.f32 %v6458_v43, %v6460_v7  ;;  %v6464_v45 = vmul.f32 %v2480_v39, %v2424_v16  ;;  %v2504_v11 = vmul.f32 256.0, %v4219_v36  ;;  %vm2508_vm14 = vweird.f32 %v4219_v36 }
 0x534   : > { %v6466_v17 = vmul.f32 %v2481_v27, %v2425_v60 }
 0x535   : > { %2498 = vadd.xlane.f32.xlu2 %v2497_v59  ;;  %v2505_v53 = vsub.f32 1.0, %v2504_v11 }
 0x536   : > { %v2500_v8 = vadd.f32 %v6466_v17, %v6464_v45 }
 0x537   : > { %v2506_v63 = vmul.f32 %v4219_v36, %v2505_v53 }
 0x539   : > { %v2507_v19 = vadd.f32 %v4219_v36, %v2506_v63 }
 0x53b   : > { %v2509_v52 = vsel %vm2508_vm14, %v4219_v36, %v2507_v19 }
 0x53d   : > { %2501 = vadd.xlane.f32.xlu2 %v2500_v8 }
 0x585   : > { %v2563_v18 = vpop.xlane.xlu0 %2562 }
 0x586   : > { %v2567_v12 = vmul.f32 %v2563_v18, %v2509_v52 }
 0x588   : > { %v2569_v9 = vmul.f32 %v2567_v12, %v2492_v6 }
 0x58a   : > { %v2571_v24 = vsel %vm2514_vm15, %v2569_v9, 0.0 }
 0x598   : > { %v2566_v15 = vpop.xlane.xlu1 %2565 }
 0x599   : > { %v2568_v35 = vmul.f32 %v2566_v15, %v2509_v52 }
 0x59b   : > { %v2570_v47 = vmul.f32 %v2568_v35, %v2493_v13 }
 0x59d   : > { %v2572_v1 = vsel %vm2514_vm15, %v2570_v47, 0.0 }
 0x59e   : > { %v2573_v14 = vadd.f32 %v2572_v1, %v2571_v24 }
 0x5a0   : > { %v2574_v44 = vrot.slane %v2573_v14, 4 }
 0x5a2   : > { %v2575_v38 = vadd.f32 %v2574_v44, %v2573_v14 }
 0x5a4   : > { %v2576_v0 = vrot.slane %v2575_v38, 2 }
 0x5a6   : > { %v2577_v30 = vadd.f32 %v2576_v0, %v2575_v38 }
 0x5a8   : > { %v2578_v5 = vrot.slane %v2577_v30, 1  ;;  %v2499_v29 = vpop.xlane.xlu2 %2498 }
 0x5a9   : > { %v2510_v21 = vmul.f32 %v2509_v52, %v2499_v29  ;;  %v6502_v29 = vld [vmem:[%s7501_s5] sm:$0xff] }
 0x5aa   : > { %v2579_v62 = vadd.f32 %v2578_v5, %v2577_v30  ;;  %v6496_v30 = vld [vmem:[%s7501_s5 + $0x8] sm:$0xff] }
 0x5ab   : > { %v2512_v27 = vmul.f32 %v2510_v21, %v2492_v6 }
 0x5ac   : > { %v2580_v31 = vadd.f32 %v2579_v62, %v2494_v34 }
 0x5ad   : > { %v2515_v53 = vsel %vm2514_vm15, %v2512_v27, 0.0 }
 0x5ae   : > { %v2581_v37 = vmax.f32 %v2580_v31, 0.0 }
 0x5b0   : > { %v2582_v59 = vperm.slane %v2581_v37, 0  ;;  %v2502_v39 = vpop.xlane.xlu2 %2501 }
 0x5b1   : > { %v2511_v16 = vmul.f32 %v2509_v52, %v2502_v39 }
 0x5b2   : > { %v2584_v60 = vmul.f32 %v2582_v59, %v2496_v23  ;;  %v2583_v8 = vmul.f32 %v2582_v59, %v2495_v56 }
 0x5b3   : > { %v2513_v28 = vmul.f32 %v2511_v16, %v2493_v13 }
 0x5b4   : > { %v2588_v36 = vsel %vm2514_vm15, %v2584_v60, 0.0  ;;  %v2585_v11 = vsel %vm2514_vm15, %v2583_v8, 0.0 }
 0x5b5   : > { %2589 = vadd.xlane.f32.xlu1 %v2588_v36  ;;  %2586 = vadd.xlane.f32.xlu0 %v2585_v11  ;;  %v2516_v63 = vsel %vm2514_vm15, %v2513_v28, 0.0 }
 0x5b6   : > { %v2517_v19 = vadd.f32 %v2516_v63, %v2515_v53 }
 0x5b8   : > { %v2518_v18 = vrot.slane %v2517_v19, 4 }
 0x5ba   : > { %v2519_v12 = vadd.f32 %v2518_v18, %v2517_v19  ;;  %v7864_v18 = vmov 7  }
 0x5bc   : > { %v2520_v15 = vrot.slane %v2519_v12, 2 }
 0x5be   : > { %v2521_v9 = vadd.f32 %v2520_v15, %v2519_v12 }
 0x5c0   : > { %v2522_v6 = vrot.slane %v2521_v9, 1 }
 0x5c2   : > { %v2523_v52 = vadd.f32 %v2522_v6, %v2521_v9 }
 0x5c4   : > { %v2524_v35 = vadd.f32 %v2523_v52, %v2494_v34  ;;  %v7865_v52 = vmov 8  }
 0x5c6   : > { %v2525_v47 = vmax.f32 %v2524_v35, 0.0 }
 0x5c8   : > { %v2526_v13 = vperm.slane %v2525_v47, 0 }
 0x5ca   : > { %v2528_v24 = vmul.f32 %v2526_v13, %v2496_v23  ;;  %v2527_v1 = vmul.f32 %v2526_v13, %v2495_v56 }
 0x5cc   : > { %v2532_v14 = vsel %vm2514_vm15, %v2528_v24, 0.0  ;;  %v2529_v44 = vsel %vm2514_vm15, %v2527_v1, 0.0 }
 0x5cd   : > { %2533 = vadd.xlane.f32.xlu0 %v2532_v14  ;;  %2530 = vadd.xlane.f32.xlu2 %v2529_v44 }
 0x628   : > { %v2590_v38 = vpop.xlane.xlu1 %2589  ;;  %v2587_v0 = vpop.xlane.xlu0 %2586 }
 0x629   : > { %v2592_v5 = vadd.f32 %v6496_v30, %v2590_v38  ;;  %v2591_v34 = vadd.f32 %v6502_v29, %v2587_v0  ;;  %v2617_v0 = vld [vmem:[%s7500_s4 + $0x68] sm:$0xff] }
 0x62b   : > { %v2594_v62 = vsub.f32 0.0, %v2592_v5  ;;  %v2593_v31 = vsub.f32 0.0, %v2591_v34  ;;  %v2618_v5 = vld [vmem:[%s7500_s4 + $0x70] sm:$0xff]  ;;  %v4323_v34 = vmov 9  }
 0x62d   : > { %v2597_v21 = vmul.f32 1.442695, %v2594_v62  ;;  %v2595_v37 = vmul.f32 1.442695, %v2593_v31  ;;  %v4324_v62 = vmov 10  }
 0x62f   : > { %4220 = vpow2.f32 %v2597_v21 }
 0x630   : > { %4222 = vpow2.f32 %v2595_v37 }
 0x635   : > { %v4221_v23 = vpop.eup %4220 }
 0x636   : > { %v4223_v56 = vpop.eup %4222  ;;  %v2600_v59 = vadd.f32 1.0, %v4221_v23 }
 0x637   : > { %v2599_v39 = vadd.f32 1.0, %v4223_v56 }
 0x638   : > { %4224 = vrcp.f32 %v2600_v59 }
 0x639   : > { %4226 = vrcp.f32 %v2599_v39 }
 0x63e   : > { %v4225_v27 = vpop.eup %4224 }
 0x63f   : > { %v4227_v16 = vpop.eup %4226  ;;  %2610 = vperm.xlu2 %4156, %v4225_v27  }
 0x640   : > { %2605 = vperm.xlu1 %4155, %v4227_v16   ;;  %v2534_v60 = vpop.xlane.xlu0 %2533  ;;  %v2531_v8 = vpop.xlane.xlu2 %2530 }
 0x641   : > { %v2536_v28 = vadd.f32 %v6496_v30, %v2534_v60  ;;  %v2535_v36 = vadd.f32 %v6502_v29, %v2531_v8 }
 0x643   : > { %v2538_v11 = vsub.f32 0.0, %v2536_v28  ;;  %v2537_v53 = vsub.f32 0.0, %v2535_v36 }
 0x645   : > { %v2541_v63 = vmul.f32 1.442695, %v2538_v11  ;;  %v2539_v19 = vmul.f32 1.442695, %v2537_v53 }
 0x647   : > { %4157 = vset.pattern.permute.xlu2 %v7864_v18  ;;  %4228 = vpow2.f32 %v2541_v63 }
 0x648   : > { %2625 = vperm.xlu2 %4157, %v6502_v29   ;;  %4230 = vpow2.f32 %v2539_v19 }
 0x64d   : > { %v4229_v12 = vpop.eup %4228 }
 0x64e   : > { %v4231_v15 = vpop.eup %4230  ;;  %v2544_v9 = vadd.f32 1.0, %v4229_v12 }
 0x64f   : > { %v2543_v6 = vadd.f32 1.0, %v4231_v15 }
 0x650   : > { %4159 = vset.pattern.permute.xlu2 %v7865_v52  ;;  %4232 = vrcp.f32 %v2544_v9  ;;  %v7866_v9 = vld [vmem:[#allocation17_spill] sm:$0xff] }
 0x651   : > { %2692 = vperm.xlu2 %4159, %v6502_v29   ;;  %4234 = vrcp.f32 %v2543_v6 }
 0x656   : > { %v4233_v35 = vpop.eup %4232 }
 0x657   : > { %v4235_v47 = vpop.eup %4234  ;;  %2554 = vperm.xlu1 %4155, %v4233_v35   ;;  %v7867_v35 = vld [vmem:[#allocation9_spill] sm:$0xff] }
 0x658   : > { %2549 = vperm.xlu0 %4154, %v4235_v47  }
 0x659   : > { %4161 = vset.pattern.permute.xlu2 %v4323_v34 }
 0x65a   : > { %2848 = vperm.xlu2 %4161, %v6502_v29  }
 0x65f   : > { %4158 = vset.pattern.permute.xlu1 %v7864_v18 }
 0x660   : > { %2629 = vperm.xlu1 %4158, %v6496_v30   ;;  %4162 = vset.pattern.permute.xlu0 %v4323_v34 }
 0x661   : > { %2852 = vperm.xlu0 %4162, %v6496_v30  }
 0x662   : > { %4164 = vset.pattern.permute.xlu2 %v4324_v62 }
 0x663   : > { %2868 = vperm.xlu2 %4164, %v6496_v30  }
 0x668   : > { %4160 = vset.pattern.permute.xlu1 %v7865_v52 }
 0x669   : > { %2696 = vperm.xlu1 %4160, %v6496_v30  }
 0x671   : > { %4163 = vset.pattern.permute.xlu1 %v4324_v62 }
 0x672   : > { %2864 = vperm.xlu1 %4163, %v6502_v29  }
 0x699   : > { %v2611_v13 = vpop.permute.xlu2 %2610 }
 0x69a   : > { %v2615_v24 = vmul.f32 %v2611_v13, %v6452_v41  ;;  %v2616_v1 = vmul.f32 %v2611_v13, %v6454_v58  ;;  %v7868_v13 = vld [vmem:[#allocation4_spill] sm:$0xff] }
 0x6a2   : > { %v2626_v27 = vpop.permute.xlu2 %2625 }
 0x6b2   : > { %v2606_v14 = vpop.permute.xlu1 %2605 }
 0x6b3   : > { %v2613_v44 = vmul.f32 %v2606_v14, %v6393_v51  ;;  %v2614_v38 = vmul.f32 %v2606_v14, %v6406_v26  ;;  %v2619_v51 = vpack.c.bf16 %v2618_v5, %v2617_v0 }
 0x6b5   : > { %v2622_v41 = vpack.c.bf16 %v2615_v24, %v2613_v44  ;;  %v2623_v31 = vpack.c.bf16 %v2616_v1, %v2614_v38  ;;  %v7869_v1 = vld [vmem:[#allocation10_spill] sm:$0xff] }
 0x6b7   : > { %2670 = vmatpush.bf16.msra.mxu2 %v2622_v41  ;;  %2684 = vmatpush.bf16.msra.mxu3 %v2623_v31 }
 0x6ba   : > { %4053 = vmatmul.msk.bf16.vlgmr.msra.gmra.mxu2 %vm850_vm8, %v2619_v51  ;;  %4054 = vmatmul.msk.bf16.vlgmr.msra.gmra.mxu3 %vm850_vm8, %v2619_v51 }
 0x6c9   : > { %v2555_v26 = vpop.permute.xlu1 %2554 }
 0x6ca   : > { %v2559_v58 = vmul.f32 %v2555_v26, %v6464_v45  ;;  %v2560_v21 = vmul.f32 %v2555_v26, %v6466_v17  ;;  %v2550_v37 = vpop.permute.xlu0 %2549  ;;  %v2693_v17 = vpop.permute.xlu2 %2692 }
 0x6cb   : > { %v2557_v23 = vmul.f32 %v2550_v37, %v6460_v7  ;;  %v2558_v56 = vmul.f32 %v2550_v37, %v6458_v43 }
 0x6cd   : > { %v2620_v59 = vpack.c.bf16 %v2559_v58, %v2557_v23  ;;  %v2621_v39 = vpack.c.bf16 %v2560_v21, %v2558_v56 }
 0x6cf   : > { %2642 = vmatpush.bf16.msra.mxu0 %v2620_v59  ;;  %2656 = vmatpush.bf16.msra.mxu1 %v2621_v39 }
 0x6d2   : > { %4051 = vmatmul.msk.bf16.vlgmr.msra.gmra.mxu0 %vm850_vm8, %v2619_v51  ;;  %4052 = vmatmul.msk.bf16.vlgmr.msra.gmra.mxu1 %vm850_vm8, %v2619_v51  ;;  %v2630_v16 = vpop.permute.xlu1 %2629 }
 0x6db   : > { %v2697_v36 = vpop.permute.xlu1 %2696 }
 0x73d   : > { %v2672_v60 = vpop.f32.mrf.mxu2  ;;  %v2686_v8 = vpop.f32.mrf.mxu3 }
 0x73e   : > { %v2673_v45 = vadd.f32 %v2672_v60, %v2626_v27  ;;  %v2687_v28 = vadd.f32 %v2686_v8, %v2626_v27 }
 0x740   : > { %v2701_v53 = vmul.f32 %v2693_v17, %v2673_v45  ;;  %v2702_v43 = vmul.f32 %v2693_v17, %v2687_v28 }
 0x742   : > { %v6538_v6 = vadd.f32 %v2701_v53, %v7866_v9  ;;  %v6541_v47 = vadd.f32 %v2702_v43, %v7867_v35  ;;  %v7870_v43 = vld [vmem:[#allocation7_spill] sm:$0xff] }
 0x745   : > { %v2674_v11 = vpop.f32.mrf.mxu2  ;;  %v2688_v7 = vpop.f32.mrf.mxu3 }
 0x746   : > { %v2675_v63 = vadd.f32 %v2674_v11, %v2630_v16  ;;  %v2689_v19 = vadd.f32 %v2688_v7, %v2630_v16 }
 0x748   : > { %v2705_v12 = vmul.f32 %v2697_v36, %v2675_v63  ;;  %v2706_v15 = vmul.f32 %v2697_v36, %v2689_v19 }
 0x74a   : > { %v6544_v24 = vadd.f32 %v2705_v12, %v7868_v13  ;;  %v6547_v14 = vadd.f32 %v2706_v15, %v7869_v1  ;;  %v7872_v1 = vld [vmem:[#allocation18_spill] sm:$0xff] }
 0x74c   : > { %v2729_v44 = vadd.f32 %v6544_v24, %v6538_v6  ;;  %v2736_v38 = vadd.f32 %v6547_v14, %v6541_v47 }
 0x74e   : > { %v2730_v0 = vrot.slane %v2729_v44, 4  ;;  %v2737_v5 = vrot.slane %v2736_v38, 4 }
 0x74f   : > { %v2644_v41 = vpop.f32.mrf.mxu0  ;;  %v2658_v31 = vpop.f32.mrf.mxu1 }
 0x750   : > { %v2731_v34 = vadd.f32 %v2730_v0, %v2729_v44  ;;  %v2738_v62 = vadd.f32 %v2737_v5, %v2736_v38  ;;  %v2645_v37 = vadd.f32 %v2644_v41, %v2626_v27  ;;  %v2659_v23 = vadd.f32 %v2658_v31, %v2626_v27  ;;  %v7873_v38 = vld [vmem:[#allocation3_spill] sm:$0xff]  ;;  %v7874_v0 = vld [vmem:[#allocation14_spill] sm:$0xff] }
 0x752   : > { %v2732_v51 = vrot.slane %v2731_v34, 2  ;;  %v2739_v26 = vrot.slane %v2738_v62, 2  ;;  %v2699_v28 = vmul.f32 %v2693_v17, %v2645_v37  ;;  %v2700_v11 = vmul.f32 %v2693_v17, %v2659_v23  ;;  %v7871_v17 = vld [vmem:[#allocation6_spill] sm:$0xff] }
 0x754   : > { %v2733_v58 = vadd.f32 %v2732_v51, %v2731_v34  ;;  %v2740_v21 = vadd.f32 %v2739_v26, %v2738_v62  ;;  %v6571_v44 = vadd.f32 %v2700_v11, %v7872_v1 }
 0x756   : > { %v2734_v56 = vrot.slane %v2733_v58, 1  ;;  %v2741_v59 = vrot.slane %v2740_v21, 1 }
 0x757   : > { %v2646_v8 = vpop.f32.mrf.mxu0  ;;  %v2660_v45 = vpop.f32.mrf.mxu1 }
 0x758   : > { %v2735_v39 = vadd.f32 %v2734_v56, %v2733_v58  ;;  %v2742_v60 = vadd.f32 %v2741_v59, %v2740_v21  ;;  %v2647_v7 = vadd.f32 %v2646_v8, %v2630_v16  ;;  %v2661_v53 = vadd.f32 %v2660_v45, %v2630_v16 }
 0x759   : > { %v6568_v16 = vadd.f32 %v2699_v28, %v7871_v17 }
 0x75a   : > { %v2745_v63 = vmul.f32 %v2735_v39, %v7870_v43  ;;  %v2746_v19 = vmul.f32 %v2742_v60, %v7870_v43  ;;  %v2703_v12 = vmul.f32 %v2697_v36, %v2647_v7  ;;  %v2704_v15 = vmul.f32 %v2697_v36, %v2661_v53 }
 0x75c   : > { %v6556_v9 = vsub.f32 %v6544_v24, %v2745_v63  ;;  %v6559_v27 = vsub.f32 %v6547_v14, %v2746_v19  ;;  %v6562_v35 = vsub.f32 %v6538_v6, %v2745_v63  ;;  %v6565_v13 = vsub.f32 %v6541_v47, %v2746_v19 }
 0x75d   : > { %v6574_v36 = vadd.f32 %v2703_v12, %v7873_v38  ;;  %v6577_v5 = vadd.f32 %v2704_v15, %v7874_v0 }
 0x75e   : > { %v2761_v34 = vmul.f32 %v6556_v9, %v6556_v9  ;;  %v2762_v62 = vmul.f32 %v6559_v27, %v6559_v27  ;;  %v2757_v41 = vmul.f32 %v6562_v35, %v6562_v35  ;;  %v2758_v31 = vmul.f32 %v6565_v13, %v6565_v13 }
 0x75f   : > { %v2715_v51 = vadd.f32 %v6574_v36, %v6568_v16  ;;  %v2722_v26 = vadd.f32 %v6577_v5, %v6571_v44 }
 0x760   : > { %v2777_v58 = vadd.f32 %v2761_v34, %v2757_v41  ;;  %v2784_v21 = vadd.f32 %v2762_v62, %v2758_v31 }
 0x761   : > { %v2716_v37 = vrot.slane %v2715_v51, 4  ;;  %v2723_v23 = vrot.slane %v2722_v26, 4 }
 0x762   : > { %v2778_v56 = vrot.slane %v2777_v58, 4  ;;  %v2785_v59 = vrot.slane %v2784_v21, 4 }
 0x763   : > { %v2717_v39 = vadd.f32 %v2716_v37, %v2715_v51  ;;  %v2724_v60 = vadd.f32 %v2723_v23, %v2722_v26 }
 0x764   : > { %v2779_v8 = vadd.f32 %v2778_v56, %v2777_v58  ;;  %v2786_v45 = vadd.f32 %v2785_v59, %v2784_v21 }
 0x765   : > { %v2718_v28 = vrot.slane %v2717_v39, 2  ;;  %v2725_v11 = vrot.slane %v2724_v60, 2 }
 0x766   : > { %v2780_v7 = vrot.slane %v2779_v8, 2  ;;  %v2787_v53 = vrot.slane %v2786_v45, 2 }
 0x767   : > { %v2719_v63 = vadd.f32 %v2718_v28, %v2717_v39  ;;  %v2726_v19 = vadd.f32 %v2725_v11, %v2724_v60 }
 0x768   : > { %v2781_v12 = vadd.f32 %v2780_v7, %v2779_v8  ;;  %v2788_v15 = vadd.f32 %v2787_v53, %v2786_v45 }
 0x769   : > { %v2720_v17 = vrot.slane %v2719_v63, 1  ;;  %v2727_v1 = vrot.slane %v2726_v19, 1 }
 0x76a   : > { %v2782_v38 = vrot.slane %v2781_v12, 1  ;;  %v2789_v0 = vrot.slane %v2788_v15, 1 }
 0x76b   : > { %v2721_v34 = vadd.f32 %v2720_v17, %v2719_v63  ;;  %v2728_v62 = vadd.f32 %v2727_v1, %v2726_v19 }
 0x76c   : > { %v2783_v41 = vadd.f32 %v2782_v38, %v2781_v12  ;;  %v2790_v31 = vadd.f32 %v2789_v0, %v2788_v15 }
 0x76d   : > { %v2743_v51 = vmul.f32 %v2721_v34, %v7870_v43  ;;  %v2744_v26 = vmul.f32 %v2728_v62, %v7870_v43 }
 0x76e   : > { %v2793_v58 = vmul.f32 %v2783_v41, %v7870_v43  ;;  %v2794_v21 = vmul.f32 %v2790_v31, %v7870_v43 }
 0x76f   : > { %v6596_v37 = vsub.f32 %v6574_v36, %v2743_v51  ;;  %v6599_v23 = vsub.f32 %v6577_v5, %v2744_v26  ;;  %v6602_v56 = vsub.f32 %v6568_v16, %v2743_v51  ;;  %v6605_v59 = vsub.f32 %v6571_v44, %v2744_v26  ;;  %v6615_v26 = vpop.permute.xlu2 %2848 }
 0x770   : > { %v2797_v39 = vadd.f32 1e-06, %v2793_v58  ;;  %v2798_v60 = vadd.f32 1e-06, %v2794_v21 }
 0x771   : > { %v2759_v8 = vmul.f32 %v6596_v37, %v6596_v37  ;;  %v2760_v45 = vmul.f32 %v6599_v23, %v6599_v23  ;;  %v2755_v28 = vmul.f32 %v6602_v56, %v6602_v56  ;;  %v2756_v11 = vmul.f32 %v6605_v59, %v6605_v59 }
 0x772   : > { %4236 = vrsqrt.f32 %v2797_v39  ;;  %vm2825_vm6 = vweird.f32 %v2797_v39  ;;  %vm2835_vm10 = vweird.f32 %v2798_v60 }
 0x773   : > { %v2763_v7 = vadd.f32 %v2759_v8, %v2755_v28  ;;  %v2770_v53 = vadd.f32 %v2760_v45, %v2756_v11  ;;  %4238 = vrsqrt.f32 %v2798_v60 }
 0x775   : > { %v2764_v63 = vrot.slane %v2763_v7, 4  ;;  %v2771_v19 = vrot.slane %v2770_v53, 4 }
 0x777   : > { %v2765_v12 = vadd.f32 %v2764_v63, %v2763_v7  ;;  %v2772_v15 = vadd.f32 %v2771_v19, %v2770_v53 }
 0x778   : > { %v4237_v17 = vpop.eup %4236 }
 0x779   : > { %v4239_v1 = vpop.eup %4238  ;;  %v2766_v38 = vrot.slane %v2765_v12, 2  ;;  %v2773_v0 = vrot.slane %v2772_v15, 2  ;;  %v2820_v34 = vmul.f32 %v4237_v17, %v2797_v39  ;;  %vm2826_vm9 = vweird.f32 %v4237_v17 }
 0x77a   : > { %v2830_v62 = vmul.f32 %v4239_v1, %v2798_v60  ;;  %vm2836_vm11 = vweird.f32 %v4239_v1  ;;  %vm2827_vm12 = vmor %vm2825_vm6, %vm2826_vm9  ;;  %v2865_v60 = vpop.permute.xlu1 %2864  ;;  %vm7901_vm6 = vcmp.lt.s32.totalorder %v4561_v49, 112 }
 0x77b   : > { %v2767_v41 = vadd.f32 %v2766_v38, %v2765_v12  ;;  %v2774_v31 = vadd.f32 %v2773_v0, %v2772_v15  ;;  %v2821_v51 = vmul.f32 %v4237_v17, %v2820_v34  ;;  %vm2837_vm5 = vmor %vm2835_vm10, %vm2836_vm11 }
 0x77c   : > { %v2831_v58 = vmul.f32 %v4239_v1, %v2830_v62  ;;  %v6619_v62 = vpop.permute.xlu0 %2852 }
 0x77d   : > { %v2768_v21 = vrot.slane %v2767_v41, 1  ;;  %v2775_v8 = vrot.slane %v2774_v31, 1  ;;  %v2822_v45 = vmul.f32 0.5, %v2821_v51 }
 0x77e   : > { %v2832_v28 = vmul.f32 0.5, %v2831_v58 }
 0x77f   : > { %v2769_v11 = vadd.f32 %v2768_v21, %v2767_v41  ;;  %v2776_v50 = vadd.f32 %v2775_v8, %v2774_v31  ;;  %v2823_v7 = vsub.f32 1.5, %v2822_v45  ;;  %v2889_v41 = vld [vmem:[%s7501_s5] sm:$0xff] }
 0x780   : > { %v2833_v53 = vsub.f32 1.5, %v2832_v28  ;;  %v2880_v28 = vld [vmem:[%s7500_s4 + $0x80] sm:$0xff] }
 0x781   : > { %v2791_v63 = vmul.f32 %v2769_v11, %v7870_v43  ;;  %v2792_v19 = vmul.f32 %v2776_v50, %v7870_v43  ;;  %v2824_v12 = vmul.f32 %v4237_v17, %v2823_v7  ;;  %v4325_v43 = vmov 11  }
 0x782   : > { %v2834_v15 = vmul.f32 %v4239_v1, %v2833_v53  ;;  %4165 = vset.pattern.permute.xlu1 %v4325_v43  ;;  %4167 = vset.pattern.permute.xlu0 %v4325_v43 }
 0x783   : > { %v2795_v38 = vadd.f32 1e-06, %v2791_v63  ;;  %v2796_v0 = vadd.f32 1e-06, %v2792_v19  ;;  %v2828_v34 = vsel %vm2827_vm12, %v4237_v17, %v2824_v12  ;;  %v2869_v17 = vpop.permute.xlu2 %2868  ;;  %2895 = vperm.xlu1 %4165, %v2889_v41   ;;  %4166 = vset.pattern.permute.xlu2 %v4325_v43  ;;  %vm7918_vm12 = vcmp.lt.s32.totalorder %v4561_v49, 113 }
 0x784   : > { %v2838_v31 = vsel %vm2837_vm5, %v4239_v1, %v2834_v15  ;;  %v2841_v51 = vmul.f32 %v2828_v34, %v6562_v35  ;;  %v2845_v50 = vmul.f32 %v2828_v34, %v6556_v9  ;;  %vm7919_vm10 = vmmov %vm7918_vm12 }
 0x785   : > { %4240 = vrsqrt.f32 %v2795_v38  ;;  %v2842_v39 = vmul.f32 %v2838_v31, %v6565_v13  ;;  %v2846_v21 = vmul.f32 %v2838_v31, %v6559_v27  ;;  %v2879_v13 = vld [vmem:[%s7500_s4 + $0x78] sm:$0xff]  ;;  %vm2805_vm14 = vweird.f32 %v2795_v38  ;;  %vm7926_vm5 = vmmov %vm7919_vm10 }
 0x786   : > { %4242 = vrsqrt.f32 %v2796_v0  ;;  %v2857_v58 = vmul.f32 %v6615_v26, %v2841_v51  ;;  %v2861_v1 = vmul.f32 %v6619_v62, %v2845_v50  ;;  %v2883_v63 = vpack.c.bf16 %v2880_v28, %v2879_v13 }
 0x787   : > { %v2858_v35 = vmul.f32 %v6615_v26, %v2842_v39  ;;  %v2862_v9 = vmul.f32 %v6619_v62, %v2846_v21  ;;  %v2891_v21 = vld [vmem:[%s7501_s5 + $0x10] sm:$0xff]  ;;  %vm2815_vm9 = vweird.f32 %v2796_v0 }
 0x788   : > { %v2873_v8 = vadd.f32 %v2865_v60, %v2857_v58  ;;  %v2877_v45 = vadd.f32 %v2869_v17, %v2861_v1  ;;  %v2892_v58 = vld [vmem:[%s7501_s5 + $0x18] sm:$0xff]  ;;  %v2890_v1 = vld [vmem:[%s7501_s5 + $0x8] sm:$0xff]  ;;  %2905 = vperm.xlu0 %4167, %v2891_v21  }
 0x789   : > { %v2874_v11 = vadd.f32 %v2865_v60, %v2858_v35  ;;  %v2878_v7 = vadd.f32 %v2869_v17, %v2862_v9  ;;  %2900 = vperm.xlu2 %4166, %v2890_v1  }
 0x78a   : > { %v2887_v53 = vpack.c.bf16 %v2877_v45, %v2873_v8 }
 0x78b   : > { %v4241_v27 = vpop.eup %4240  ;;  %v2888_v15 = vpack.c.bf16 %v2878_v7, %v2874_v11  ;;  %2910 = vperm.xlu1 %4165, %v2892_v58  }
 0x78c   : > { %v4243_v19 = vpop.eup %4242  ;;  %v2800_v12 = vmul.f32 %v4241_v27, %v2795_v38  ;;  %2964 = vmatpush.bf16.msrb.mxu2 %v2887_v53  ;;  %vm2806_vm7 = vweird.f32 %v4241_v27  ;;  %v2881_v38 = vld [vmem:[%s7500_s4 + $0x88] sm:$0xff] }
 0x78d   : > { %v2810_v34 = vmul.f32 %v4243_v19, %v2796_v0  ;;  %2983 = vmatpush.bf16.msrb.mxu3 %v2888_v15  ;;  %vm2816_vm13 = vweird.f32 %v4243_v19  ;;  %vm2807_vm15 = vmor %vm2805_vm14, %vm2806_vm7  ;;  %v2882_v0 = vld [vmem:[%s7500_s4 + $0x90] sm:$0xff] }
 0x78e   : > { %v2801_v41 = vmul.f32 %v4241_v27, %v2800_v12  ;;  %vm2817_vm11 = vmor %vm2815_vm9, %vm2816_vm13  ;;  %v2884_v12 = vpack.c.bf16 %v2882_v0, %v2881_v38 }
 0x78f   : > { %v2811_v31 = vmul.f32 %v4243_v19, %v2810_v34  ;;  %4059 = vmatmul.msk.bf16.vlgmr.msrb.gmra.mxu2 %vm850_vm8, %v2883_v63  ;;  %vm7927_vm7 = vmmov %vm7926_vm5 }
 0x790   : > { %v2802_v51 = vmul.f32 0.5, %v2801_v41  ;;  %4061 = vmatmul.msk.bf16.vlgmr.msrb.gmra.mxu3 %vm850_vm8, %v2883_v63  ;;  %vm7931_vm13 = vmmov %vm7901_vm6 }
 0x791   : > { %v2812_v50 = vmul.f32 0.5, %v2811_v31  ;;  %vm7933_vm14 = vmmov %vm7901_vm6 }
 0x792   : > { %v2803_v43 = vsub.f32 1.5, %v2802_v51 }
 0x793   : > { %v2813_v39 = vsub.f32 1.5, %v2812_v50 }
 0x794   : > { %v2804_v35 = vmul.f32 %v4241_v27, %v2803_v43 }
 0x795   : > { %v2814_v9 = vmul.f32 %v4243_v19, %v2813_v39 }
 0x796   : > { %v2808_v8 = vsel %vm2807_vm15, %v4241_v27, %v2804_v35 }
 0x797   : > { %v2818_v45 = vsel %vm2817_vm11, %v4243_v19, %v2814_v9  ;;  %v2839_v13 = vmul.f32 %v2808_v8, %v6602_v56  ;;  %v2843_v28 = vmul.f32 %v2808_v8, %v6596_v37 }
 0x798   : > { %v2840_v11 = vmul.f32 %v2818_v45, %v6605_v59  ;;  %v2844_v7 = vmul.f32 %v2818_v45, %v6599_v23 }
 0x799   : > { %v2855_v53 = vmul.f32 %v6615_v26, %v2839_v13  ;;  %v2859_v27 = vmul.f32 %v6619_v62, %v2843_v28 }
 0x79a   : > { %v2856_v56 = vmul.f32 %v6615_v26, %v2840_v11  ;;  %v2860_v37 = vmul.f32 %v6619_v62, %v2844_v7 }
 0x79b   : > { %v2871_v19 = vadd.f32 %v2865_v60, %v2855_v53  ;;  %v2875_v59 = vadd.f32 %v2869_v17, %v2859_v27 }
 0x79c   : > { %v2872_v23 = vadd.f32 %v2865_v60, %v2856_v56  ;;  %v2876_v15 = vadd.f32 %v2869_v17, %v2860_v37 }
 0x79d   : > { %v2885_v34 = vpack.c.bf16 %v2875_v59, %v2871_v19 }
 0x79e   : > { %v2886_v41 = vpack.c.bf16 %v2876_v15, %v2872_v23 }
 0x79f   : > { %4060 = vmatmul.msk.bf16.gmra.mxu2 %vm850_vm8, %v2884_v12  ;;  %2926 = vmatpush.bf16.msrb.mxu0 %v2885_v34 }
 0x7a0   : > { %2945 = vmatpush.bf16.msrb.mxu1 %v2886_v41  ;;  %4062 = vmatmul.msk.bf16.gmra.mxu3 %vm850_vm8, %v2884_v12 }
 0x7a2   : > { %4055 = vmatmul.msk.bf16.vlgmr.msrb.gmra.mxu0 %vm850_vm8, %v2883_v63 }
 0x7a3   : > { %4057 = vmatmul.msk.bf16.vlgmr.msrb.gmra.mxu1 %vm850_vm8, %v2883_v63 }
 0x7b2   : > { %4056 = vmatmul.msk.bf16.gmra.mxu0 %vm850_vm8, %v2884_v12 }
 0x7b3   : > { %4058 = vmatmul.msk.bf16.gmra.mxu1 %vm850_vm8, %v2884_v12  ;;  %vm3158_vm8 = vcmask 261120  }
 0x7e3   : > { %v6669_v43 = vpop.permute.xlu2 %2900 }
 0x7f5   : > { %v2896_v26 = vpop.permute.xlu1 %2895 }
 0x7fa   : > { %v6673_v7 = vpop.permute.xlu0 %2905 }
 0x812   : > { %v2966_v62 = vpop.f32.mrf.mxu2 }
 0x813   : > { %v2967_v60 = vadd.f32 %v2966_v62, %v2896_v26  ;;  %v2985_v17 = vpop.f32.mrf.mxu3 }
 0x814   : > { %v2986_v31 = vadd.f32 %v2985_v17, %v2896_v26 }
 0x815   : > { %v3013_v51 = vmul.f32 0.044715, %v2967_v60 }
 0x816   : > { %v3014_v39 = vmul.f32 0.044715, %v2986_v31 }
 0x817   : > { %v3029_v50 = vmul.f32 %v3013_v51, %v2967_v60 }
 0x818   : > { %v3030_v9 = vmul.f32 %v3014_v39, %v2986_v31 }
 0x819   : > { %v3045_v1 = vmul.f32 %v3029_v50, %v2967_v60  ;;  %v4326_v50 = vmov 12  }
 0x81a   : > { %v2968_v58 = vpop.f32.mrf.mxu2  ;;  %v3046_v38 = vmul.f32 %v3030_v9, %v2986_v31  ;;  %4169 = vset.pattern.permute.xlu1 %v4326_v50  ;;  %4168 = vset.pattern.permute.xlu2 %v4326_v50 }
 0x81b   : > { %v2969_v21 = vadd.f32 %v2968_v58, %v6669_v43  ;;  %v2987_v35 = vpop.f32.mrf.mxu3  ;;  %v3061_v28 = vadd.f32 %v3045_v1, %v2967_v60  ;;  %3155 = vperm.xlu1 %4169, %v6496_v30   ;;  %3151 = vperm.xlu2 %4168, %v6502_v29  }
 0x81c   : > { %v2988_v8 = vadd.f32 %v2987_v35, %v6669_v43  ;;  %v3062_v15 = vadd.f32 %v3046_v38, %v2986_v31  ;;  %v6686_v35 = vpop.permute.xlu1 %2910 }
 0x81d   : > { %v3017_v63 = vmul.f32 0.044715, %v2969_v21  ;;  %v3077_v19 = vmul.f32 0.7978846, %v3061_v28  ;;  %v6699_v50 = vmul.f32 0.5, %v2969_v21 }
 0x81e   : > { %v3018_v27 = vmul.f32 0.044715, %v2988_v8 }
 0x81f   : > { %v2928_v45 = vpop.f32.mrf.mxu0  ;;  %v3033_v13 = vmul.f32 %v3017_v63, %v2969_v21  ;;  %4244 = vtanh.f32 %v3077_v19 }
 0x820   : > { %v2947_v11 = vpop.f32.mrf.mxu1  ;;  %v6675_v0 = vadd.f32 %v2928_v45, %v2896_v26  ;;  %v3034_v34 = vmul.f32 %v3018_v27, %v2988_v8  ;;  %v3078_v45 = vmul.f32 0.7978846, %v3062_v15  ;;  %v6701_v15 = vmul.f32 0.5, %v2986_v31 }
 0x821   : > { %v3049_v37 = vmul.f32 %v3033_v13, %v2969_v21  ;;  %v6691_v13 = vadd.f32 %v2947_v11, %v2896_v26  ;;  %v6703_v26 = vmul.f32 0.5, %v2988_v8 }
 0x822   : > { %v2971_v53 = vpop.f32.mrf.mxu2  ;;  %v3011_v41 = vmul.f32 0.044715, %v6675_v0  ;;  %v3050_v38 = vmul.f32 %v3034_v34, %v2988_v8  ;;  %4246 = vtanh.f32 %v3078_v45 }
 0x823   : > { %v2972_v56 = vadd.f32 %v2971_v53, %v6673_v7  ;;  %v2990_v59 = vpop.f32.mrf.mxu3  ;;  %v3065_v39 = vadd.f32 %v3049_v37, %v2969_v21  ;;  %v3012_v45 = vmul.f32 0.044715, %v6691_v13  ;;  %4172 = vset.pattern.permute.xlu1 %v7875_v10 }
 0x824   : > { %v6679_v12 = vadd.f32 %v2990_v59, %v6673_v7  ;;  %v3027_v27 = vmul.f32 %v3011_v41, %v6675_v0 }
 0x825   : > { %v3021_v23 = vmul.f32 0.044715, %v2972_v56  ;;  %v4245_v11 = vpop.eup %4244 }
 0x826   : > { %v3022_v17 = vmul.f32 0.044715, %v6679_v12  ;;  %v3043_v31 = vmul.f32 %v3027_v27, %v6675_v0 }
 0x827   : > { %v2930_v62 = vpop.f32.mrf.mxu0  ;;  %v3037_v51 = vmul.f32 %v3021_v23, %v2972_v56  ;;  %v3081_v23 = vmul.f32 0.7978846, %v3065_v39 }
 0x828   : > { %v2949_v58 = vpop.f32.mrf.mxu1  ;;  %v6684_v1 = vadd.f32 %v2930_v62, %v6669_v43  ;;  %v3038_v9 = vmul.f32 %v3022_v17, %v6679_v12 }
 0x829   : > { %v3053_v63 = vmul.f32 %v3037_v51, %v2972_v56  ;;  %v2997_v51 = vmul.f32 0.5, %v2967_v60  ;;  %v6714_v60 = vld [vmem:[%s7500_s4 + $0xa8] sm:$0xff]  ;;  %4248 = vtanh.f32 %v3081_v23 }
 0x82a   : > { %v2973_v28 = vpop.f32.mrf.mxu2  ;;  %v3015_v53 = vmul.f32 0.044715, %v6684_v1  ;;  %v3054_v59 = vmul.f32 %v3038_v9, %v6679_v12  ;;  %v3066_v9 = vadd.f32 %v3050_v38, %v2988_v8  ;;  %v6723_v8 = vmul.f32 0.5, %v2972_v56  ;;  %3279 = vperm.xlu1 %4172, %v6714_v60  }
 0x82b   : > { %v6696_v37 = vadd.f32 %v2973_v28, %v6686_v35  ;;  %v3069_v19 = vadd.f32 %v3053_v63, %v2972_v56  ;;  %v2992_v62 = vpop.f32.mrf.mxu3 }
 0x82c   : > { %v6707_v41 = vadd.f32 %v2992_v62, %v6686_v35  ;;  %v3031_v17 = vmul.f32 %v3015_v53, %v6684_v1  ;;  %v3070_v39 = vadd.f32 %v3054_v59, %v6679_v12  ;;  %v3109_v59 = vadd.f32 1.0, %v4245_v11  ;;  %v4247_v11 = vpop.eup %4246 }
 0x82d   : > { %v3025_v34 = vmul.f32 0.044715, %v6696_v37  ;;  %v3085_v63 = vmul.f32 0.7978846, %v3069_v19  ;;  %v3082_v56 = vmul.f32 0.7978846, %v3066_v9 }
 0x82e   : > { %v3026_v28 = vmul.f32 0.044715, %v6707_v41  ;;  %v3086_v38 = vmul.f32 0.7978846, %v3070_v39  ;;  %v3047_v23 = vmul.f32 %v3031_v17, %v6684_v1  ;;  %v3059_v39 = vadd.f32 %v3043_v31, %v6675_v0 }
 0x82f   : > { %v3041_v21 = vmul.f32 %v3025_v34, %v6696_v37  ;;  %v2933_v62 = vpop.f32.mrf.mxu0  ;;  %4250 = vtanh.f32 %v3085_v63  ;;  %v4249_v63 = vpop.eup %4248  ;;  %v6749_v4 = vmul.f32 %v3109_v59, %v2997_v51 }
 0x830   : > { %v6721_v53 = vadd.f32 %v2933_v62, %v6673_v7  ;;  %v2952_v19 = vpop.f32.mrf.mxu1  ;;  %v3042_v34 = vmul.f32 %v3026_v28, %v6707_v41  ;;  %4252 = vtanh.f32 %v3086_v38  ;;  %v3113_v59 = vadd.f32 1.0, %v4249_v63 }
 0x831   : > { %v3057_v27 = vmul.f32 %v3041_v21, %v6696_v37  ;;  %v6729_v61 = vadd.f32 %v2952_v19, %v6673_v7  ;;  %v6739_v7 = vmul.f32 0.5, %v6679_v12  ;;  %v6742_v19 = vadd.f32 %v2949_v58, %v6669_v43 }
 0x832   : > { %v3019_v62 = vmul.f32 0.044715, %v6721_v53  ;;  %v3058_v21 = vmul.f32 %v3042_v34, %v6707_v41  ;;  %v3063_v34 = vadd.f32 %v3047_v23, %v6684_v1  ;;  %4254 = vtanh.f32 %v3082_v56 }
 0x833   : > { %v3073_v40 = vadd.f32 %v3057_v27, %v6696_v37  ;;  %v3020_v28 = vmul.f32 0.044715, %v6729_v61  ;;  %v4327_v27 = vmov 13   ;;  %v3075_v43 = vmul.f32 0.7978846, %v3059_v39 }
 0x834   : > { %v3035_v17 = vmul.f32 %v3019_v62, %v6721_v53  ;;  %v3074_v31 = vadd.f32 %v3058_v21, %v6707_v41  ;;  %4170 = vset.pattern.permute.xlu2 %v4327_v27  ;;  %4171 = vset.pattern.permute.xlu0 %v4327_v27  ;;  %v6754_v62 = vadd.f32 1.0, %v4247_v11  ;;  %v7876_v39 = vmov 2  }
 0x835   : > { %v3089_v9 = vmul.f32 0.7978846, %v3073_v40  ;;  %v3036_v3 = vmul.f32 %v3020_v28, %v6729_v61  ;;  %3219 = vperm.xlu2 %4170, %v6502_v29   ;;  %3223 = vperm.xlu0 %4171, %v6496_v30   ;;  %v4251_v21 = vpop.eup %4250  ;;  %v3016_v29 = vmul.f32 0.044715, %v6742_v19 }
 0x836   : > { %v3051_v12 = vmul.f32 %v3035_v17, %v6721_v53  ;;  %v3090_v40 = vmul.f32 0.7978846, %v3074_v31  ;;  %4176 = vset.pattern.permute.xlu1 %v7876_v39  ;;  %v4253_v11 = vpop.eup %4252  ;;  %v3028_v31 = vmul.f32 %v3012_v45, %v6691_v13  ;;  %v6779_v45 = vld [vmem:[%s7500_s4 + $0xb0] sm:$0xff] }
 0x837   : > { %v3052_v58 = vmul.f32 %v3036_v3, %v6729_v61  ;;  %v2935_v38 = vpop.f32.mrf.mxu0  ;;  %4256 = vtanh.f32 %v3089_v9  ;;  %v3079_v3 = vmul.f32 0.7978846, %v3063_v34  ;;  %v3009_v9 = vmul.f32 0.5, %v6696_v37  ;;  %3392 = vperm.xlu1 %4176, %v6714_v60  }
 0x838   : > { %v3067_v23 = vadd.f32 %v3051_v12, %v6721_v53  ;;  %v6758_v28 = vadd.f32 %v2935_v38, %v6686_v35  ;;  %v2954_v51 = vpop.f32.mrf.mxu1  ;;  %4258 = vtanh.f32 %v3090_v40  ;;  %v3117_v12 = vadd.f32 1.0, %v4251_v21  ;;  %v4255_v40 = vpop.eup %4254 }
 0x839   : > { %v3068_v56 = vadd.f32 %v3052_v58, %v6729_v61  ;;  %v6763_v30 = vadd.f32 %v2954_v51, %v6686_v35  ;;  %4260 = vtanh.f32 %v3075_v43  ;;  %v3010_v35 = vmul.f32 0.5, %v6707_v41 }
 0x83a   : > { %v3023_v17 = vmul.f32 0.044715, %v6758_v28  ;;  %v3083_v63 = vmul.f32 0.7978846, %v3067_v23  ;;  %v3129_v58 = vmul.f32 %v3113_v59, %v6699_v50  ;;  %v3032_v38 = vmul.f32 %v3016_v29, %v6742_v19 }
 0x83b   : > { %v3024_v27 = vmul.f32 0.044715, %v6763_v30  ;;  %v3044_v37 = vmul.f32 %v3028_v31, %v6691_v13  ;;  %v3084_v23 = vmul.f32 0.7978846, %v3068_v56  ;;  %v3118_v51 = vadd.f32 1.0, %v4253_v11 }
 0x83c   : > { %v3039_v34 = vmul.f32 %v3023_v17, %v6758_v28  ;;  %4262 = vtanh.f32 %v3079_v3  ;;  %v3048_v50 = vmul.f32 %v3032_v38, %v6742_v19  ;;  %v7877_v29 = vmov 1  }
 0x83d   : > { %v4257_v43 = vpop.eup %4256  ;;  %v3040_v21 = vmul.f32 %v3024_v27, %v6763_v30  ;;  %v3060_v59 = vadd.f32 %v3044_v37, %v6691_v13  ;;  %4173 = vset.pattern.permute.xlu2 %v7875_v10  ;;  %4175 = vset.pattern.permute.xlu0 %v7877_v29  ;;  %v3133_v56 = vmul.f32 %v3117_v12, %v6723_v8  ;;  %v3114_v2 = vadd.f32 1.0, %v4255_v40 }
 0x83e   : > { %v3055_v41 = vmul.f32 %v3039_v34, %v6758_v28  ;;  %v3121_v17 = vadd.f32 1.0, %v4257_v43  ;;  %v4259_v31 = vpop.eup %4258  ;;  %4264 = vtanh.f32 %v3083_v63  ;;  %3284 = vperm.xlu2 %4173, %v6779_v45   ;;  %3340 = vperm.xlu0 %4175, %v6779_v45   ;;  %v3064_v10 = vadd.f32 %v3048_v50, %v6742_v19 }
 0x83f   : > { %v3056_v33 = vmul.f32 %v3040_v21, %v6763_v30  ;;  %v4261_v3 = vpop.eup %4260  ;;  %v3122_v34 = vadd.f32 1.0, %v4259_v31  ;;  %v3134_v37 = vmul.f32 %v3118_v51, %v6739_v7  ;;  %4266 = vtanh.f32 %v3084_v23  ;;  %v3139_v23 = vld [vmem:[%s7500_s4 + $0x98] sm:$0xff] }
 0x840   : > { %v3071_v11 = vadd.f32 %v3055_v41, %v6758_v28  ;;  %v3137_v27 = vmul.f32 %v3121_v17, %v3009_v9  ;;  %v3076_v43 = vmul.f32 0.7978846, %v3060_v59  ;;  %v3080_v40 = vmul.f32 0.7978846, %v3064_v10 }
 0x841   : > { %v3072_v38 = vadd.f32 %v3056_v33, %v6763_v30  ;;  %v3138_v63 = vmul.f32 %v3122_v34, %v3010_v35  ;;  %v7878_v21 = vmov 4   ;;  %v3126_v33 = vmul.f32 %v6754_v62, %v6701_v15  ;;  %v3140_v35 = vld [vmem:[%s7500_s4 + $0xa0] sm:$0xff] }
 0x842   : > { %v3087_v8 = vmul.f32 0.7978846, %v3071_v11  ;;  %v3148_v12 = vpack.c.bf16 %v3137_v27, %v3133_v56  ;;  %4180 = vset.pattern.permute.xlu1 %v7878_v21  ;;  %v4263_v55 = vpop.eup %4262  ;;  %4268 = vtanh.f32 %v3076_v43  ;;  %v3130_v7 = vmul.f32 %v3114_v2, %v6703_v26 }
 0x843   : > { %v3088_v22 = vmul.f32 0.7978846, %v3072_v38  ;;  %3472 = vperm.xlu1 %4180, %v6714_v60   ;;  %v3149_v9 = vpack.c.bf16 %v3138_v63, %v3134_v37  ;;  %v3144_v41 = vpack.c.bf16 %v3129_v58, %v6749_v4  ;;  %v3141_v50 = vpack.c.bf16 %v3140_v35, %v3139_v23 }
 0x844   : > { %3196 = vmatpush.bf16.msra.mxu2 %v3148_v12  ;;  %4270 = vtanh.f32 %v3087_v8  ;;  %v4265_v51 = vpop.eup %4264  ;;  %v7879_v2 = vmov 3   ;;  %v3145_v15 = vpack.c.bf16 %v3130_v7, %v3126_v33  ;;  %v3003_v58 = vmul.f32 0.5, %v6721_v53 }
 0x845   : > { %4272 = vtanh.f32 %v3088_v22  ;;  %3210 = vmatpush.bf16.msra.mxu3 %v3149_v9  ;;  %v4267_v17 = vpop.eup %4266  ;;  %v3115_v62 = vadd.f32 1.0, %v4265_v51  ;;  %v3111_v56 = vadd.f32 1.0, %v4263_v55  ;;  %v7880_v11 = vmov 5  }
 0x846   : > { %4274 = vtanh.f32 %v3080_v40  ;;  %4174 = vset.pattern.permute.xlu2 %v7877_v29  ;;  %4179 = vset.pattern.permute.xlu0 %v7879_v2  ;;  %v3116_v59 = vadd.f32 1.0, %v4267_v17  ;;  %v3007_v29 = vmul.f32 0.5, %v6758_v28  ;;  %v3004_v34 = vmul.f32 0.5, %v6729_v61 }
 0x847   : > { %3336 = vperm.xlu2 %4174, %v6714_v60   ;;  %3452 = vperm.xlu0 %4179, %v6779_v45   ;;  %v3008_v10 = vmul.f32 0.5, %v6763_v30  ;;  %v2999_v37 = vmul.f32 0.5, %v6684_v1  ;;  %v3131_v43 = vmul.f32 %v3115_v62, %v3003_v58  ;;  %v3107_v8 = vadd.f32 1.0, %v4261_v3 }
 0x848   : > { %3197 = vmatpush.bf16.msra.mxu2 %v3144_v41  ;;  %v4269_v26 = vpop.eup %4268  ;;  %v3132_v12 = vmul.f32 %v3116_v59, %v3004_v34  ;;  %v3000_v63 = vmul.f32 0.5, %v6742_v19  ;;  %v2995_v61 = vmul.f32 0.5, %v6675_v0  ;;  %v2996_v1 = vmul.f32 0.5, %v6691_v13 }
 0x849   : > { %3211 = vmatpush.bf16.msra.mxu3 %v3145_v15  ;;  %v3108_v40 = vadd.f32 1.0, %v4269_v26  ;;  %v3127_v30 = vmul.f32 %v3111_v56, %v2999_v37  ;;  %v7881_v0 = vmov 6  }
 0x84a   : > { %v4271_v22 = vpop.eup %4270  ;;  %v3123_v23 = vmul.f32 %v3107_v8, %v2995_v61 }
 0x84b   : > { %v4273_v4 = vpop.eup %4272  ;;  %4065 = vmatmul.msk.bf16.vlgmr.msra.gmra.mxu2 %vm3158_vm8, %v3141_v50  ;;  %v3119_v31 = vadd.f32 1.0, %v4271_v22  ;;  %4183 = vset.pattern.permute.xlu1 %v7880_v11  ;;  %v3124_v3 = vmul.f32 %v3108_v40, %v2996_v1 }
 0x84c   : > { %v4275_v27 = vpop.eup %4274  ;;  %v3120_v38 = vadd.f32 1.0, %v4273_v4  ;;  %3532 = vperm.xlu1 %4183, %v6779_v45   ;;  %4066 = vmatmul.msk.bf16.vlgmr.msra.gmra.mxu3 %vm3158_vm8, %v3141_v50  ;;  %v3142_v19 = vpack.c.bf16 %v3127_v30, %v3123_v23 }
 0x84d   : > { %v3135_v53 = vmul.f32 %v3119_v31, %v3007_v29  ;;  %v3112_v28 = vadd.f32 1.0, %v4275_v27 }
 0x84e   : > { %v3136_v55 = vmul.f32 %v3120_v38, %v3008_v10 }
 0x84f   : > { %v3146_v9 = vpack.c.bf16 %v3135_v53, %v3131_v43  ;;  %v3128_v7 = vmul.f32 %v3112_v28, %v3000_v63  ;;  %4177 = vset.pattern.permute.xlu2 %v7876_v39  ;;  %4182 = vset.pattern.permute.xlu0 %v7880_v11 }
 0x850   : > { %v3147_v33 = vpack.c.bf16 %v3136_v55, %v3132_v12  ;;  %3396 = vperm.xlu2 %4177, %v6779_v45   ;;  %3528 = vperm.xlu0 %4182, %v6714_v60  }
 0x851   : > { %3168 = vmatpush.bf16.msra.mxu0 %v3146_v9  ;;  %v3143_v35 = vpack.c.bf16 %v3128_v7, %v3124_v3 }
 0x852   : > { %3182 = vmatpush.bf16.msra.mxu1 %v3147_v33 }
 0x854   : > { %4187 = vset.pattern.permute.xlu1 %v7864_v18 }
 0x855   : > { %3169 = vmatpush.bf16.msra.mxu0 %v3142_v19 }
 0x856   : > { %3183 = vmatpush.bf16.msra.mxu1 %v3143_v35 }
 0x858   : > { %4063 = vmatmul.msk.bf16.vlgmr.msra.gmra.mxu0 %vm3158_vm8, %v3141_v50  ;;  %4178 = vset.pattern.permute.xlu2 %v7879_v2 }
 0x859   : > { %4064 = vmatmul.msk.bf16.vlgmr.msra.gmra.mxu1 %vm3158_vm8, %v3141_v50  ;;  %3448 = vperm.xlu2 %4178, %v6714_v60  }
 0x85a   : > { %4185 = vset.pattern.permute.xlu0 %v7881_v0 }
 0x85b   : > { %3588 = vperm.xlu0 %4185, %v6779_v45  }
 0x861   : > { %4181 = vset.pattern.permute.xlu2 %v7878_v21 }
 0x862   : > { %3476 = vperm.xlu2 %4181, %v6779_v45  }
 0x863   : > { %4186 = vset.pattern.permute.xlu0 %v7864_v18 }
 0x86a   : > { %4184 = vset.pattern.permute.xlu2 %v7881_v0 }
 0x86b   : > { %3584 = vperm.xlu2 %4184, %v6714_v60  }
 0x873   : > { %4188 = vset.pattern.permute.xlu2 %v7865_v52 }
 0x875   : > { %v3152_v13 = vpop.permute.xlu2 %3151 }
 0x88d   : > { %v3156_v2 = vpop.permute.xlu1 %3155 }
 0x88f   : > { %v3220_v17 = vpop.permute.xlu2 %3219 }
 0x898   : > { %v6884_v28 = vpop.permute.xlu2 %3284 }
 0x89c   : > { %v6934_v61 = vpop.permute.xlu1 %3279 }
 0x8a7   : > { %v3224_v26 = vpop.permute.xlu0 %3223 }
 0x8a9   : > { %v6946_v1 = vpop.permute.xlu1 %3392 }
 0x8b5   : > { %v6958_v3 = vpop.permute.xlu1 %3472 }
 0x8be   : > { %v6976_v0 = vpop.permute.xlu1 %3532 }
 0x8ce   : > { %v3199_v39 = vpop.f32.mrf.mxu2 }
 0x8cf   : > { %v3213_v51 = vpop.f32.mrf.mxu3 }
 0x8d0   : > { %v3214_v41 = vadd.f32 %v3213_v51, %v3152_v13 }
 0x8d2   : > { %v3229_v50 = vmul.f32 %v3220_v17, %v3214_v41 }
 0x8d4   : > { %v6914_v40 = vadd.f32 %v3229_v50, %v6541_v47  ;;  %v6932_v47 = vpop.permute.xlu0 %3340 }
 0x8d5   : > { %v3171_v15 = vpop.f32.mrf.mxu0 }
 0x8d6   : > { %v3172_v21 = vadd.f32 %v3171_v15, %v3152_v13  ;;  %v3185_v62 = vpop.f32.mrf.mxu1  ;;  %v3201_v22 = vpop.f32.mrf.mxu2 }
 0x8d7   : > { %v3186_v59 = vadd.f32 %v3185_v62, %v3152_v13  ;;  %v3202_v18 = vadd.f32 %v3201_v22, %v3156_v2  ;;  %v3215_v58 = vpop.f32.mrf.mxu3  ;;  %v7889_v22 = vld [vmem:[#allocation25_spill] sm:$0xff] }
 0x8d8   : > { %v3226_v4 = vmul.f32 %v3220_v17, %v3172_v21  ;;  %v3216_v31 = vadd.f32 %v3215_v58, %v3156_v2 }
 0x8d9   : > { %v3227_v29 = vmul.f32 %v3220_v17, %v3186_v59  ;;  %v6840_v56 = vmul.f32 %v3224_v26, %v3202_v18 }
 0x8da   : > { %v6843_v11 = vadd.f32 %v3226_v4, %v6568_v16  ;;  %v6848_v34 = vmul.f32 %v3224_v26, %v3216_v31 }
 0x8db   : > { %v6846_v27 = vadd.f32 %v3227_v29, %v6571_v44 }
 0x8dc   : > { %3303 = vrot.lane.b32.xlu0 %v6843_v11, %s4305_s12  ;;  %3245 = vrot.lane.b32.xlu1 %v6843_v11, %s4304_s11  ;;  %v6944_v33 = vpop.permute.xlu0 %3452  ;;  %v6970_v35 = vadd.f32 %v6848_v34, %v6547_v14 }
 0x8dd   : > { %3307 = vrot.lane.b32.xlu2 %v6846_v27, %s4305_s12  ;;  %v3173_v44 = vpop.f32.mrf.mxu0 }
 0x8de   : > { %v3187_v16 = vpop.f32.mrf.mxu1  ;;  %v3174_v38 = vadd.f32 %v3173_v44, %v3156_v2  ;;  %7884 = vst [vmem:[#allocation34_spill] sm:$0xff] %v6970_v35 }
 0x8df   : > { %v3188_v10 = vadd.f32 %v3187_v16, %v3156_v2  ;;  %v7888_v2 = vld [vmem:[#allocation26_spill] sm:$0xff] }
 0x8e0   : > { %v3230_v43 = vmul.f32 %v3224_v26, %v3174_v38 }
 0x8e1   : > { %v3231_v37 = vmul.f32 %v3224_v26, %v3188_v10 }
 0x8e2   : > { %v6878_v8 = vadd.f32 %v3230_v43, %v6574_v36  ;;  %v6894_v36 = vpop.permute.xlu2 %3336 }
 0x8e3   : > { %v6875_v53 = vadd.f32 %v3231_v37, %v6577_v5  ;;  %v3200_v5 = vadd.f32 %v3199_v39, %v3152_v13  ;;  %v7892_v37 = vld [vmem:[#allocation47_spill] sm:$0xff] }
 0x8e4   : > { %3415 = vrot.lane.b32.xlu0 %v6843_v11, %s4307_s14  ;;  %3249 = vrot.lane.b32.xlu1 %v6846_v27, %s4304_s11  ;;  %7882 = vst [vmem:[#allocation45_spill] sm:$0xff] %v6878_v8  ;;  %v6956_v23 = vpop.permute.xlu0 %3528 }
 0x8e5   : > { %3419 = vrot.lane.b32.xlu2 %v6846_v27, %s4307_s14  ;;  %v3228_v12 = vmul.f32 %v3220_v17, %v3200_v5  ;;  %v6998_v17 = vadd.f32 %v6840_v56, %v6544_v24  ;;  %v7893_v5 = vld [vmem:[#allocation29_spill] sm:$0xff] }
 0x8e7   : > { %v6905_v63 = vadd.f32 %v3228_v12, %v6538_v6  ;;  %7887 = vst [vmem:[#allocation20_spill] sm:$0xff] %v6998_v17 }
 0x8ea   : > { %v6902_v55 = vpop.permute.xlu2 %3396 }
 0x8ec   : > { %3499 = vrot.lane.b32.xlu0 %v6846_v27, %s4309_s19  ;;  %3359 = vrot.lane.b32.xlu1 %v6843_v11, %s4306_s13  ;;  %v6978_v13 = vpop.permute.xlu0 %3588 }
 0x8ed   : > { %3551 = vrot.lane.b32.xlu2 %v6843_v11, %s4311_s20  ;;  %7885 = vst [vmem:[#allocation13_spill] sm:$0xff] %v6978_v13 }
 0x8f2   : > { %v6916_v9 = vpop.permute.xlu2 %3448 }
 0x8f4   : > { %3667 = vrot.lane.b32.xlu0 %v6846_v27, %s4317_s22  ;;  %3363 = vrot.lane.b32.xlu1 %v6846_v27, %s4306_s13 }
 0x8f5   : > { %3555 = vrot.lane.b32.xlu2 %v6846_v27, %s4311_s20 }
 0x8fa   : > { %v6928_v6 = vpop.permute.xlu2 %3476 }
 0x8fc   : > { %3309 = vrot.lane.b32.xlu0 %v6875_v53, %s4305_s12  ;;  %3495 = vrot.lane.b32.xlu1 %v6843_v11, %s4309_s19 }
 0x8fd   : > { %3247 = vrot.lane.b32.xlu2 %v6878_v8, %s4304_s11 }
 0x902   : > { %v6942_v30 = vpop.permute.xlu2 %3584 }
 0x903   : > { %7883 = vst [vmem:[#allocation12_spill] sm:$0xff] %v6942_v30 }
 0x904   : > { %3421 = vrot.lane.b32.xlu0 %v6875_v53, %s4307_s14  ;;  %3607 = vrot.lane.b32.xlu1 %v6843_v11, %s4314_s21 }
 0x905   : > { %3251 = vrot.lane.b32.xlu2 %v6875_v53, %s4304_s11 }
 0x90c   : > { %3557 = vrot.lane.b32.xlu0 %v6875_v53, %s4311_s20  ;;  %3611 = vrot.lane.b32.xlu1 %v6846_v27, %s4314_s21 }
 0x90d   : > { %3361 = vrot.lane.b32.xlu2 %v6878_v8, %s4306_s13 }
 0x914   : > { %3253 = vrot.lane.b32.xlu0 %v6905_v63, %s4304_s11  ;;  %3663 = vrot.lane.b32.xlu1 %v6843_v11, %s4317_s22 }
 0x915   : > { %3365 = vrot.lane.b32.xlu2 %v6875_v53, %s4306_s13 }
 0x91c   : > { %3315 = vrot.lane.b32.xlu0 %v6914_v40, %s4305_s12  ;;  %3305 = vrot.lane.b32.xlu1 %v6878_v8, %s4305_s12 }
 0x91d   : > { %3497 = vrot.lane.b32.xlu2 %v6878_v8, %s4309_s19 }
 0x924   : > { %3367 = vrot.lane.b32.xlu0 %v6905_v63, %s4306_s13  ;;  %3417 = vrot.lane.b32.xlu1 %v6878_v8, %s4307_s14 }
 0x925   : > { %3609 = vrot.lane.b32.xlu2 %v6878_v8, %s4314_s21 }
 0x92c   : > { %3427 = vrot.lane.b32.xlu0 %v6914_v40, %s4307_s14  ;;  %3501 = vrot.lane.b32.xlu1 %v6875_v53, %s4309_s19 }
 0x92d   : > { %3613 = vrot.lane.b32.xlu2 %v6875_v53, %s4314_s21 }
 0x934   : > { %3563 = vrot.lane.b32.xlu0 %v6914_v40, %s4311_s20  ;;  %3553 = vrot.lane.b32.xlu1 %v6878_v8, %s4311_s20 }
 0x935   : > { %3665 = vrot.lane.b32.xlu2 %v6878_v8, %s4317_s22 }
 0x937   : > { %v6954_v7 = vpop.permute.xlu2 %3307 }
 0x93c   : > { %3615 = vrot.lane.b32.xlu0 %v6905_v63, %s4314_s21  ;;  %3669 = vrot.lane.b32.xlu1 %v6875_v53, %s4317_s22 }
 0x93d   : > { %3257 = vrot.lane.b32.xlu2 %v6914_v40, %s4304_s11 }
 0x93f   : > { %v6966_v19 = vpop.permute.xlu2 %3419 }
 0x944   : > { %3259 = vrot.lane.b32.xlu0 %v6970_v35, %s4304_s11  ;;  %3311 = vrot.lane.b32.xlu1 %v6905_v63, %s4305_s12 }
 0x945   : > { %3371 = vrot.lane.b32.xlu2 %v6914_v40, %s4306_s13 }
 0x947   : > { %v6982_v39 = vpop.permute.xlu2 %3551 }
 0x948   : > { %7886 = vst [vmem:[#allocation28_spill] sm:$0xff] %v6982_v39 }
 0x94c   : > { %3373 = vrot.lane.b32.xlu0 %v6970_v35, %s4306_s13  ;;  %3423 = vrot.lane.b32.xlu1 %v6905_v63, %s4307_s14 }
 0x94d   : > { %3503 = vrot.lane.b32.xlu2 %v6905_v63, %s4309_s19 }
 0x94e   : > { %v6990_v14 = vpop.permute.xlu0 %3303  ;;  %v6992_v51 = vpop.permute.xlu1 %3245 }
 0x94f   : > { %v6994_v41 = vpop.permute.xlu2 %3555  ;;  %v3323_v50 = vsel %vm406_vm1, %v6990_v14, %v6954_v7 }
 0x950   : > { %v3328_v15 = vmul.f32 %v3323_v50, %v7888_v2 }
 0x952   : > { %v3344_v18 = vmul.f32 %v6894_v36, %v3328_v15 }
 0x954   : > { %3505 = vrot.lane.b32.xlu0 %v6998_v17, %s4309_s19  ;;  %3507 = vrot.lane.b32.xlu1 %v6914_v40, %s4309_s19 }
 0x955   : > { %3619 = vrot.lane.b32.xlu2 %v6914_v40, %s4314_s21 }
 0x956   : > { %v7011_v26 = vpop.permute.xlu0 %3415  ;;  %v3250_v24 = vpop.permute.xlu1 %3249 }
 0x957   : > { %v3265_v21 = vsel %vm349_vm0, %v6992_v51, %v3250_v24  ;;  %v7016_v62 = vpop.permute.xlu2 %3247  ;;  %v3435_v34 = vsel %vm518_vm3, %v7011_v26, %v6966_v19 }
 0x958   : > { %v3270_v59 = vmul.f32 %v3265_v21, %v7889_v22  ;;  %v3440_v43 = vmul.f32 %v3435_v34, %v7892_v37  ;;  %v3480_v34 = vmul.f32 %v6958_v3, %v6846_v27 }
 0x95a   : > { %v3288_v4 = vmul.f32 %v6934_v61, %v3270_v59  ;;  %v3456_v15 = vmul.f32 %v6916_v9, %v3440_v43 }
 0x95c   : > { %v3352_v58 = vadd.f32 %v3344_v18, %v3288_v4  ;;  %3621 = vrot.lane.b32.xlu0 %v6970_v35, %s4314_s21  ;;  %3559 = vrot.lane.b32.xlu1 %v6905_v63, %s4311_s20 }
 0x95d   : > { %3671 = vrot.lane.b32.xlu2 %v6905_v63, %s4317_s22 }
 0x95e   : > { %v7027_v29 = vpop.permute.xlu0 %3499  ;;  %v7029_v31 = vpop.permute.xlu1 %3359 }
 0x95f   : > { %v7031_v56 = vpop.permute.xlu2 %3251 }
 0x960   : > { %7890 = vst [vmem:[#allocation54_spill] sm:$0xff] %v7031_v56 }
 0x964   : > { %3673 = vrot.lane.b32.xlu0 %v6998_v17, %s4317_s22  ;;  %3675 = vrot.lane.b32.xlu1 %v6914_v40, %s4317_s22 }
 0x965   : > { %3313 = vrot.lane.b32.xlu2 %v6998_v17, %s4305_s12 }
 0x966   : > { %v7043_v16 = vpop.permute.xlu0 %3667  ;;  %v7045_v44 = vpop.permute.xlu1 %3363 }
 0x967   : > { %7891 = vst [vmem:[#allocation37_spill] sm:$0xff] %v7043_v16  ;;  %v3379_v10 = vsel %vm462_vm2, %v7029_v31, %v7045_v44  ;;  %v7051_v38 = vpop.permute.xlu2 %3361 }
 0x968   : > { %v3384_v12 = vmul.f32 %v3379_v10, %v7893_v5 }
 0x96a   : > { %v3400_v50 = vmul.f32 %v6946_v1, %v3384_v12 }
 0x96c   : > { %v3408_v21 = vadd.f32 %v3400_v50, %v3352_v58  ;;  %3640 = vperm.xlu0 %4186, %v6714_v60   ;;  %3255 = vrot.lane.b32.xlu1 %v6998_v17, %s4304_s11 }
 0x96d   : > { %3425 = vrot.lane.b32.xlu2 %v6998_v17, %s4307_s14 }
 0x96e   : > { %v3464_v59 = vadd.f32 %v3456_v15, %v3408_v21  ;;  %v7062_v18 = vpop.permute.xlu0 %3309  ;;  %v7064_v4 = vpop.permute.xlu1 %3495 }
 0x96f   : > { %7894 = vst [vmem:[#allocation51_spill] sm:$0xff] %v7062_v18  ;;  %v7068_v10 = vpop.permute.xlu2 %3365 }
 0x970   : > { %v7070_v43 = vadd.f32 %v3480_v34, %v3464_v59 }
 0x972   : > { %7895 = vst [vmem:[#allocation15_spill] sm:$0xff] %v7070_v43 }
 0x974   : > { %3317 = vrot.lane.b32.xlu1 %v6970_v35, %s4305_s12 }
 0x975   : > { %3509 = vrot.lane.b32.xlu2 %v6970_v35, %s4309_s19  ;;  %s315_s19 = scalar_lea.vmem %s7502_s6, %s3919_s29 }
 0x976   : > { %v7076_v58 = vpop.permute.xlu0 %3421  ;;  %v7078_v12 = vpop.permute.xlu1 %3607 }
 0x977   : > { %7896 = vst [vmem:[#allocation36_spill] sm:$0xff] %v7076_v58  ;;  %v7080_v50 = vpop.permute.xlu2 %3497 }
 0x978   : > { %7897 = vst [vmem:[#allocation23_spill] sm:$0xff] %v7078_v12 }
 0x979   : > { %7898 = vst [vmem:[#allocation19_spill] sm:$0xff] %v7080_v50 }
 0x97c   : > { %3369 = vrot.lane.b32.xlu1 %v6998_v17, %s4306_s13 }
 0x97d   : > { %3561 = vrot.lane.b32.xlu2 %v6998_v17, %s4311_s20 }
 0x97e   : > { %v7086_v27 = vpop.permute.xlu0 %3557  ;;  %v7088_v15 = vpop.permute.xlu1 %3611 }
 0x97f   : > { %7899 = vst [vmem:[#allocation30_spill] sm:$0xff] %v7086_v27  ;;  %v7094_v21 = vsel %vm7901_vm6, %v7078_v12, %v7088_v15  ;;  %v7096_v59 = vpop.permute.xlu2 %3609 }
 0x980   : > { %7900 = vst [vmem:[#allocation50_spill] sm:$0xff] %v7088_v15  ;;  %v7908_v15 = vld [vmem:[#allocation42_spill] sm:$0xff] }
 0x981   : > { %7902 = vst [vmem:[#allocation55_spill] sm:$0xff] %v7094_v21 }
 0x982   : > { %7903 = vst [vmem:[#allocation16_spill] sm:$0xff] %v7096_v59 }
 0x984   : > { %3429 = vrot.lane.b32.xlu1 %v6970_v35, %s4307_s14 }
 0x985   : > { %3677 = vrot.lane.b32.xlu2 %v6970_v35, %s4317_s22 }
 0x986   : > { %v3254_v34 = vpop.permute.xlu0 %3253  ;;  %v7102_v13 = vpop.permute.xlu1 %3663 }
 0x987   : > { %7904 = vst [vmem:[#allocation49_spill] sm:$0xff] %v7102_v13  ;;  %v3263_v27 = vsel %vm349_vm0, %v3250_v24, %v3254_v34  ;;  %v7106_v16 = vpop.permute.xlu2 %3613 }
 0x988   : > { %7905 = vst [vmem:[#allocation40_spill] sm:$0xff] %v7106_v16  ;;  %v7907_v16 = vld [vmem:[#allocation41_spill] sm:$0xff] }
 0x98c   : > { %3565 = vrot.lane.b32.xlu1 %v6970_v35, %s4311_s20 }
 0x98d   : > { %3696 = vperm.xlu2 %4188, %v6714_v60  }
 0x98e   : > { %v3316_v59 = vpop.permute.xlu0 %3315  ;;  %v7111_v8 = vpop.permute.xlu1 %3305 }
 0x98f   : > { %v3325_v50 = vsel %vm406_vm1, %v3316_v59, %v6990_v14  ;;  %v7116_v21 = vpop.permute.xlu2 %3665 }
 0x990   : > { %7906 = vst [vmem:[#allocation22_spill] sm:$0xff] %v7116_v21  ;;  %v3327_v12 = vmul.f32 %v3325_v50, %v7907_v16 }
 0x992   : > { %v3343_v30 = vmul.f32 %v6894_v36, %v3327_v12  ;;  %v7909_v12 = vld [vmem:[#allocation46_spill] sm:$0xff] }
 0x994   : > { %3617 = vrot.lane.b32.xlu1 %v6998_v17, %s4314_s21 }
 0x996   : > { %v3368_v24 = vpop.permute.xlu0 %3367  ;;  %v7120_v13 = vpop.permute.xlu1 %3417 }
 0x997   : > { %v3258_v35 = vpop.permute.xlu2 %3257 }
 0x998   : > { %v3267_v60 = vsel %vm349_vm0, %v3258_v35, %v6992_v51 }
 0x999   : > { %v3269_v39 = vmul.f32 %v3267_v60, %v7908_v15 }
 0x99b   : > { %v3287_v14 = vmul.f32 %v6934_v61, %v3269_v39 }
 0x99c   : > { %3644 = vperm.xlu1 %4187, %v6779_v45  }
 0x99d   : > { %v3351_v21 = vadd.f32 %v3343_v30, %v3287_v14 }
 0x99e   : > { %v3428_v17 = vpop.permute.xlu0 %3427  ;;  %v7130_v43 = vpop.permute.xlu1 %3501 }
 0x99f   : > { %v3437_v50 = vsel %vm518_vm3, %v3428_v17, %v7011_v26  ;;  %v3372_v16 = vpop.permute.xlu2 %3371 }
 0x9a0   : > { %v3381_v51 = vsel %vm462_vm2, %v3372_v16, %v7029_v31  ;;  %v3439_v60 = vmul.f32 %v3437_v50, %v7820_v42  ;;  %v3479_v31 = vmul.f32 %v6958_v3, %v6843_v11  ;;  %v7912_v11 = vld [vmem:[#allocation33_spill] sm:$0xff] }
 0x9a1   : > { %v3383_v15 = vmul.f32 %v3381_v51, %v7909_v12  ;;  %v4328_v51 = vmov 14  }
 0x9a2   : > { %v3455_v30 = vmul.f32 %v6916_v9, %v3439_v60  ;;  %4190 = vset.pattern.permute.xlu2 %v4328_v51  ;;  %4191 = vset.pattern.permute.xlu0 %v4328_v51  ;;  %v3271_v60 = vmul.f32 %v3263_v27, %v7912_v11 }
 0x9a3   : > { %v3399_v39 = vmul.f32 %v6946_v1, %v3383_v15 }
 0x9a4   : > { %4189 = vset.pattern.permute.xlu1 %v7865_v52 }
 0x9a5   : > { %v3407_v14 = vadd.f32 %v3399_v39, %v3351_v21  ;;  %3700 = vperm.xlu1 %4189, %v6779_v45   ;;  %v3261_v45 = vsel %vm349_vm0, %v3254_v34, %v3258_v35  ;;  %v3324_v21 = vsel %vm406_vm1, %v7111_v8, %v7062_v18  ;;  %v3377_v39 = vsel %vm462_vm2, %v7045_v44, %v3368_v24  ;;  %v7913_v34 = vld [vmem:[#allocation52_spill] sm:$0xff] }
 0x9a6   : > { %v7144_v32 = vpop.permute.xlu0 %3563  ;;  %v7146_v26 = vpop.permute.xlu1 %3553  ;;  %v3266_v35 = vsel %vm349_vm0, %v7016_v62, %v7031_v56  ;;  %v3332_v51 = vmul.f32 %v3324_v21, %v7888_v2  ;;  %v7916_v18 = vld [vmem:[#allocation48_spill] sm:$0xff]  ;;  %v3380_v2 = vsel %vm462_vm2, %v7051_v38, %v7068_v10  ;;  %v3289_v21 = vmul.f32 %v6934_v61, %v3271_v60 }
 0x9a7   : > { %7910 = vst [vmem:[#allocation24_spill] sm:$0xff] %v7146_v26  ;;  %v3463_v57 = vadd.f32 %v3455_v30, %v3407_v14  ;;  %v3272_v30 = vmul.f32 %v3261_v45, %v7913_v34  ;;  %v7915_v26 = vld [vmem:[#allocation32_spill] sm:$0xff]  ;;  %v3274_v45 = vmul.f32 %v3266_v35, %v7889_v22 }
 0x9a8   : > { %v3348_v35 = vmul.f32 %v6932_v47, %v3332_v51 }
 0x9a9   : > { %v7150_v50 = vadd.f32 %v3479_v31, %v3463_v57  ;;  %v3244_v57 = vld [vmem:[%s7501_s5] sm:$0x1] }
 0x9aa   : > { %3749 = vperm.xlu2 %4190, %v3244_v57   ;;  %v7914_v57 = vld [vmem:[#allocation35_spill] sm:$0xff] }
 0x9ae   : > { %v7152_v15 = vpop.permute.xlu0 %3615  ;;  %v7154_v52 = vpop.permute.xlu1 %3669 }
 0x9af   : > { %7911 = vst [vmem:[#allocation17_spill] sm:$0xff] %v7154_v52  ;;  %v3385_v52 = vmul.f32 %v3377_v39, %v7914_v57  ;;  %v3290_v39 = vmul.f32 %v6934_v61, %v3272_v30 }
 0x9b6   : > { %v7174_v14 = vpop.permute.xlu0 %3259  ;;  %v3312_v31 = vpop.permute.xlu1 %3311 }
 0x9b7   : > { %v3319_v27 = vsel %vm406_vm1, %v3312_v31, %v3316_v59  ;;  %v3321_v44 = vsel %vm406_vm1, %v6954_v7, %v3312_v31  ;;  %v3375_v59 = vsel %vm462_vm2, %v3368_v24, %v3372_v16  ;;  %v3436_v7 = vsel %vm518_vm3, %v7120_v13, %v7076_v58 }
 0x9b8   : > { %v3329_v11 = vmul.f32 %v3321_v44, %v7915_v26  ;;  %v3330_v56 = vmul.f32 %v3319_v27, %v7916_v18  ;;  %v3401_v27 = vmul.f32 %v6946_v1, %v3385_v52  ;;  %v7917_v44 = vld [vmem:[#allocation53_spill] sm:$0xff]  ;;  %v3292_v16 = vmul.f32 %v6884_v28, %v3274_v45 }
 0x9b9   : > { %v3386_v60 = vmul.f32 %v3375_v59, %v7917_v44  ;;  %v3388_v24 = vmul.f32 %v3380_v2, %v7893_v5  ;;  %v3444_v58 = vmul.f32 %v3436_v7, %v7892_v37  ;;  %v3504_v2 = vpop.permute.xlu2 %3503 }
 0x9ba   : > { %v3345_v31 = vmul.f32 %v6894_v36, %v3329_v11  ;;  %v3346_v22 = vmul.f32 %v6894_v36, %v3330_v56  ;;  %v3356_v30 = vadd.f32 %v3348_v35, %v3292_v16 }
 0x9bb   : > { %v3402_v52 = vmul.f32 %v6946_v1, %v3386_v60  ;;  %v3404_v37 = vmul.f32 %v6902_v55, %v3388_v24  ;;  %v3460_v45 = vmul.f32 %v6944_v33, %v3444_v58  ;;  %v3481_v1 = vmul.f32 %v6958_v3, %v6905_v63 }
 0x9bc   : > { %v3353_v34 = vadd.f32 %v3345_v31, %v3289_v21  ;;  %v3354_v57 = vadd.f32 %v3346_v22, %v3290_v39  ;;  %v3513_v31 = vsel %vm598_vm4, %v7027_v29, %v3504_v2 }
 0x9bd   : > { %v3412_v59 = vadd.f32 %v3404_v37, %v3356_v30  ;;  %v3520_v24 = vmul.f32 %v3513_v31, %v6324_v20  ;;  %v7923_v31 = vld [vmem:[#allocation12_spill] sm:$0xff] }
 0x9be   : > { %v7206_v18 = vpop.permute.xlu0 %3373  ;;  %v3424_v61 = vpop.permute.xlu1 %3423  ;;  %v3409_v11 = vadd.f32 %v3401_v27, %v3353_v34  ;;  %v3410_v34 = vadd.f32 %v3402_v52, %v3354_v57  ;;  %v3484_v57 = vmul.f32 %v6928_v6, %v6875_v53  ;;  %v3482_v27 = vmul.f32 %v6958_v3, %v6914_v40 }
 0x9bf   : > { %v3431_v36 = vsel %vm518_vm3, %v3424_v61, %v3428_v17  ;;  %v3433_v56 = vsel %vm518_vm3, %v6966_v19, %v3424_v61  ;;  %v3468_v19 = vadd.f32 %v3460_v45, %v3412_v59  ;;  %v3536_v37 = vmul.f32 %v6956_v23, %v3520_v24  ;;  %v7921_v59 = vld [vmem:[#allocation8_spill] sm:$0xff] }
 0x9c0   : > { %v3441_v51 = vmul.f32 %v3433_v56, %v6033_v25  ;;  %v3442_v5 = vmul.f32 %v3431_v36, %v6040_v48 }
 0x9c1   : > { %v3492_v61 = vadd.f32 %v3484_v57, %v3468_v19  ;;  %v7922_v19 = vld [vmem:[#allocation15_spill] sm:$0xff] }
 0x9c2   : > { %v3457_v21 = vmul.f32 %v6916_v9, %v3441_v51  ;;  %v3458_v17 = vmul.f32 %v6916_v9, %v3442_v5  ;;  %v7247_v51 = vpop.permute.xlu2 %3619 }
 0x9c4   : > { %v3465_v7 = vadd.f32 %v3457_v21, %v3409_v11  ;;  %v3466_v39 = vadd.f32 %v3458_v17, %v3410_v34  ;;  %v7920_v21 = vld [vmem:[#allocation43_spill] sm:$0xff] }
 0x9c6   : > { %v7225_v22 = vpop.permute.xlu0 %3505  ;;  %v3508_v58 = vpop.permute.xlu1 %3507  ;;  %v3489_v11 = vadd.f32 %v3481_v1, %v3465_v7  ;;  %v3490_v36 = vadd.f32 %v3482_v27, %v3466_v39  ;;  %v3515_v39 = vsel %vm598_vm4, %v7064_v4, %v7027_v29  ;;  %v3544_v1 = vadd.f32 %v3536_v37, %v7922_v19  ;;  %v7937_v19 = vld [vmem:[#allocation44_spill] sm:$0xff] }
 0x9c7   : > { %v3514_v9 = vsel %vm598_vm4, %v7130_v43, %v7225_v22  ;;  %v3511_v35 = vsel %vm598_vm4, %v3504_v2, %v3508_v58  ;;  %v3517_v63 = vsel %vm598_vm4, %v3508_v58, %v7064_v4 }
 0x9c8   : > { %v3524_v60 = vmul.f32 %v3514_v9, %v6324_v20  ;;  %v3521_v16 = vmul.f32 %v3511_v35, %v6047_v54  ;;  %v3522_v53 = vmul.f32 %v3517_v63, %v6061_v46  ;;  %v7924_v9 = vld [vmem:[#allocation27_spill] sm:$0xff] }
 0x9c9   : > { %v3519_v35 = vmul.f32 %v3515_v39, %v7924_v9 }
 0x9ca   : > { %v3540_v30 = vmul.f32 %v6976_v0, %v3524_v60  ;;  %v3537_v56 = vmul.f32 %v6956_v23, %v3521_v16  ;;  %v3538_v52 = vmul.f32 %v6956_v23, %v3522_v53  ;;  %v7925_v60 = vld [vmem:[#allocation28_spill] sm:$0xff]  ;;  %v7276_v53 = vpop.permute.xlu2 %3671 }
 0x9cb   : > { %v3571_v16 = vsel %vm7926_vm5, %v7925_v60, %v6994_v41  ;;  %v3573_v29 = vsel %vm7927_vm7, %v7144_v32, %v7925_v60 }
 0x9cc   : > { %v7249_v40 = vadd.f32 %v3540_v30, %v3492_v61  ;;  %v3545_v3 = vadd.f32 %v3537_v56, %v3489_v11  ;;  %v3546_v5 = vadd.f32 %v3538_v52, %v3490_v36  ;;  %v7928_v61 = vld [vmem:[#allocation21_spill] sm:$0xff]  ;;  %v3535_v30 = vmul.f32 %v6956_v23, %v3519_v35  ;;  %v7929_v36 = vld [vmem:[#allocation38_spill] sm:$0xff] }
 0x9cd   : > { %v3575_v11 = vmul.f32 %v3571_v16, %v7928_v61  ;;  %v3578_v56 = vmul.f32 %v3573_v29, %v7929_v36  ;;  %v7930_v52 = vld [vmem:[#allocation50_spill] sm:$0xff] }
 0x9ce   : > { %v7252_v45 = vpop.permute.xlu0 %3621  ;;  %v3560_v20 = vpop.permute.xlu1 %3559  ;;  %v3543_v37 = vadd.f32 %v3535_v30, %v7150_v50 }
 0x9cf   : > { %v3567_v2 = vsel %vm7918_vm12, %v3560_v20, %v7144_v32  ;;  %v3569_v34 = vsel %vm7919_vm10, %v6994_v41, %v3560_v20  ;;  %v3625_v41 = vsel %vm7931_vm13, %v7930_v52, %v7152_v15  ;;  %v3591_v20 = vmul.f32 %v7923_v31, %v3575_v11 }
 0x9d0   : > { %v3576_v17 = vmul.f32 %v3569_v34, %v7920_v21  ;;  %v3577_v7 = vmul.f32 %v3567_v2, %v7921_v59  ;;  %v7934_v2 = vld [vmem:[#allocation2_spill] sm:$0xff]  ;;  %v7935_v34 = vld [vmem:[#allocation55_spill] sm:$0xff]  ;;  %v3594_v23 = vmul.f32 %v7923_v31, %v3578_v56 }
 0x9d2   : > { %v3592_v58 = vmul.f32 %v7923_v31, %v3576_v17  ;;  %v3593_v57 = vmul.f32 %v7923_v31, %v3577_v7  ;;  %v3631_v17 = vmul.f32 %v7935_v34, %v7934_v2  ;;  %v7936_v7 = vld [vmem:[#allocation5_spill] sm:$0xff]  ;;  %v3314_v60 = vpop.permute.xlu2 %3313  ;;  %v3602_v16 = vadd.f32 %v3594_v23, %v3546_v5  ;;  %v7939_v34 = vld [vmem:[#allocation42_spill] sm:$0xff] }
 0x9d3   : > { %v3632_v39 = vmul.f32 %v3625_v41, %v7936_v7  ;;  %v3268_v5 = vsel %vm349_vm0, %v7174_v14, %v7016_v62 }
 0x9d4   : > { %v3600_v63 = vadd.f32 %v3592_v58, %v3544_v1  ;;  %v7270_v27 = vadd.f32 %v3593_v57, %v3545_v3  ;;  %v7932_v3 = vld [vmem:[#allocation23_spill] sm:$0xff]  ;;  %v3599_v57 = vadd.f32 %v3591_v20, %v3543_v37 }
 0x9d5   : > { %v3629_v32 = vsel %vm7933_vm14, %v7247_v51, %v7932_v3 }
 0x9d6   : > { %v7282_v4 = vpop.permute.xlu0 %3673  ;;  %v7284_v24 = vpop.permute.xlu1 %3675  ;;  %v3634_v1 = vmul.f32 %v3629_v32, %v7937_v19  ;;  %v7938_v32 = vld [vmem:[#allocation41_spill] sm:$0xff] }
 0x9da   : > { %v3426_v41 = vpop.permute.xlu2 %3425 }
 0x9de   : > { %v7304_v58 = vpop.permute.xlu0 %3640  ;;  %v3256_v35 = vpop.permute.xlu1 %3255 }
 0x9df   : > { %v3647_v29 = vmul.f32 %v7304_v58, %v3631_v17  ;;  %v3648_v50 = vmul.f32 %v7304_v58, %v3632_v39  ;;  %v3650_v11 = vmul.f32 %v7304_v58, %v3634_v1  ;;  %v3273_v17 = vmul.f32 %v3268_v5, %v7939_v34  ;;  %v7941_v5 = vld [vmem:[#allocation54_spill] sm:$0xff] }
 0x9e1   : > { %v7309_v30 = vadd.f32 %v3647_v29, %v3599_v57  ;;  %v7311_v52 = vadd.f32 %v3648_v50, %v3600_v63  ;;  %v7313_v31 = vadd.f32 %v3650_v11, %v3602_v16  ;;  %v3382_v63 = vsel %vm462_vm2, %v7206_v18, %v7051_v38  ;;  %v7940_v57 = vld [vmem:[#allocation19_spill] sm:$0xff] }
 0x9e2   : > { %v3510_v39 = vpop.permute.xlu2 %3509  ;;  %v3387_v1 = vmul.f32 %v3382_v63, %v7909_v12  ;;  %v3516_v62 = vsel %vm598_vm4, %v7940_v57, %v7130_v43  ;;  %v3264_v12 = vsel %vm349_vm0, %v7941_v5, %v3256_v35  ;;  %v7942_v43 = vld [vmem:[#allocation51_spill] sm:$0xff] }
 0x9e3   : > { %v3322_v34 = vsel %vm406_vm1, %v7942_v43, %v3314_v60 }
 0x9e4   : > { %v3403_v38 = vmul.f32 %v6902_v55, %v3387_v1 }
 0x9e6   : > { %v3318_v56 = vpop.permute.xlu1 %3317 }
 0x9e7   : > { %v3326_v3 = vsel %vm406_vm1, %v3318_v56, %v7111_v8  ;;  %v3291_v8 = vmul.f32 %v6884_v28, %v3273_v17  ;;  %v7943_v17 = vld [vmem:[#allocation33_spill] sm:$0xff] }
 0x9e8   : > { %v3331_v37 = vmul.f32 %v3326_v3, %v7938_v32  ;;  %v3523_v3 = vmul.f32 %v3516_v62, %v7924_v9  ;;  %v3275_v9 = vmul.f32 %v3264_v12, %v7943_v17  ;;  %v7950_v17 = vld [vmem:[#allocation49_spill] sm:$0xff] }
 0x9ea   : > { %v3347_v23 = vmul.f32 %v6932_v47, %v3331_v37  ;;  %v3539_v1 = vmul.f32 %v6976_v0, %v3523_v3  ;;  %v3562_v62 = vpop.permute.xlu2 %3561  ;;  %v3293_v43 = vmul.f32 %v6884_v28, %v3275_v9 }
 0x9ec   : > { %v3355_v16 = vadd.f32 %v3347_v23, %v3291_v8  ;;  %v7944_v23 = vld [vmem:[#allocation45_spill] sm:$0xff] }
 0x9ed   : > { %v3483_v8 = vmul.f32 %v6928_v6, %v7944_v23 }
 0x9ee   : > { %v3370_v20 = vpop.permute.xlu1 %3369  ;;  %v3411_v32 = vadd.f32 %v3403_v38, %v3355_v16  ;;  %v3262_v16 = vsel %vm349_vm0, %v3256_v35, %v7174_v14  ;;  %v7946_v38 = vld [vmem:[#allocation35_spill] sm:$0xff]  ;;  %vm7951_vm0 = vcmp.lt.s32.totalorder %v4561_v49, 111 }
 0x9ef   : > { %vm7965_vm9 = vmmov %vm7951_vm0 }
 0x9f0   : > { %vm7973_vm12 = vmmov %vm7951_vm0 }
 0x9f1   : > { %vm7974_vm10 = vmmov %vm7951_vm0 }
 0x9f2   : > { %vm7977_vm13 = vmmov %vm7951_vm0 }
 0x9f3   : > { %vm7980_vm14 = vmmov %vm7951_vm0 }
 0x9f6   : > { %v3430_v29 = vpop.permute.xlu1 %3429 }
 0x9f7   : > { %v3438_v50 = vsel %vm518_vm3, %v3430_v29, %v7120_v13  ;;  %v3320_v13 = vsel %vm406_vm1, %v3314_v60, %v3318_v56  ;;  %v3376_v60 = vsel %vm462_vm2, %v3370_v20, %v7206_v18  ;;  %v3333_v56 = vmul.f32 %v3322_v34, %v7915_v26  ;;  %v7948_v18 = vld [vmem:[#allocation36_spill] sm:$0xff]  ;;  %vm7954_vm1 = vmmov %vm7926_vm5 }
 0x9f8   : > { %v3443_v11 = vmul.f32 %v3438_v50, %v7820_v42  ;;  %v3378_v42 = vsel %vm462_vm2, %v7068_v10, %v3370_v20  ;;  %v7945_v10 = vld [vmem:[#allocation48_spill] sm:$0xff]  ;;  %v3432_v3 = vsel %vm518_vm3, %v3426_v41, %v3430_v29  ;;  %v3390_v14 = vmul.f32 %v3376_v60, %v7917_v44  ;;  %v7952_v44 = vld [vmem:[#allocation30_spill] sm:$0xff]  ;;  %vm7958_vm2 = vmmov %vm7901_vm6 }
 0x9f9   : > { %v3334_v50 = vmul.f32 %v3320_v13, %v7945_v10  ;;  %v3434_v26 = vsel %vm518_vm3, %v7948_v18, %v3426_v41  ;;  %v3349_v20 = vmul.f32 %v6932_v47, %v3333_v56  ;;  %v3446_v29 = vmul.f32 %v3432_v3, %v6040_v48  ;;  %v7956_v60 = vld [vmem:[#allocation40_spill] sm:$0xff]  ;;  %v7959_v3 = vld [vmem:[#allocation34_spill] sm:$0xff]  ;;  %vm7963_vm3 = vmmov %vm7951_vm0  ;;  %v3678_v18 = vpop.permute.xlu2 %3677 }
 0x9fa   : > { %v3459_v37 = vmul.f32 %v6944_v33, %v3443_v11  ;;  %v3389_v11 = vmul.f32 %v3378_v42, %v7946_v38  ;;  %v7949_v42 = vld [vmem:[#allocation37_spill] sm:$0xff]  ;;  %v3445_v41 = vmul.f32 %v3434_v26, %v6033_v25  ;;  %v7957_v56 = vld [vmem:[#allocation16_spill] sm:$0xff]  ;;  %v3486_v25 = vmul.f32 %v6928_v6, %v7959_v3  ;;  %vm7964_vm15 = vmmov %vm7958_vm2 }
 0x9fb   : > { %v3350_v34 = vmul.f32 %v6932_v47, %v3334_v50  ;;  %v3683_v9 = vsel %vm7951_vm0, %v7950_v17, %v7949_v42  ;;  %v3406_v47 = vmul.f32 %v6902_v55, %v3390_v14  ;;  %v3628_v10 = vsel %vm7958_vm2, %v7957_v56, %v7956_v60  ;;  %vm7966_vm11 = vmmov %vm7954_vm1 }
 0x9fc   : > { %v3467_v63 = vadd.f32 %v3459_v37, %v3411_v32  ;;  %v7947_v32 = vld [vmem:[#allocation52_spill] sm:$0xff]  ;;  %v3405_v13 = vmul.f32 %v6902_v55, %v3389_v11  ;;  %v3462_v11 = vmul.f32 %v6944_v33, %v3446_v29  ;;  %v3461_v26 = vmul.f32 %v6944_v33, %v3445_v41  ;;  %vm7968_vm8 = vmmov %vm7954_vm1  ;;  %v7970_v41 = vld [vmem:[#allocation39_spill] sm:$0xff] }
 0x9fd   : > { %v3276_v37 = vmul.f32 %v3262_v16, %v7947_v32  ;;  %v7955_v16 = vld [vmem:[#allocation20_spill] sm:$0xff]  ;;  %v3681_v33 = vsel %vm7965_vm9, %v7949_v42, %v7276_v53  ;;  %vm7972_vm6 = vmmov %vm7958_vm2 }
 0x9fe   : > { %v3491_v5 = vadd.f32 %v3483_v8, %v3467_v63  ;;  %v3566_v12 = vpop.permute.xlu1 %3565  ;;  %v7953_v63 = vld [vmem:[#allocation24_spill] sm:$0xff]  ;;  %v3485_v48 = vmul.f32 %v6928_v6, %v7955_v16  ;;  %v3518_v6 = vsel %vm598_vm4, %v3510_v39, %v7940_v57  ;;  %v7969_v57 = vld [vmem:[#allocation13_spill] sm:$0xff]  ;;  %vm7975_vm5 = vmmov %vm7958_vm2 }
 0x9ff   : > { %v3572_v23 = vsel %vm7954_vm1, %v7953_v63, %v7952_v44  ;;  %v3294_v8 = vmul.f32 %v6884_v28, %v3276_v37  ;;  %v7960_v28 = vld [vmem:[#allocation31_spill] sm:$0xff]  ;;  %v7961_v37 = vld [vmem:[#allocation17_spill] sm:$0xff]  ;;  %v3526_v42 = vmul.f32 %v3518_v6, %v6061_v46  ;;  %vm7976_vm7 = vmmov %vm7958_vm2  ;;  %vm3785_vm2 = vcmask 1042434  }
 0xa00   : > { %v7371_v35 = vadd.f32 %v3539_v1, %v3491_v5  ;;  %v3357_v1 = vadd.f32 %v3349_v20, %v3293_v43  ;;  %v3687_v32 = vmul.f32 %v3683_v9, %v7960_v28  ;;  %v3579_v55 = vmul.f32 %v3572_v23, %v7928_v61  ;;  %v7962_v43 = vld [vmem:[#allocation22_spill] sm:$0xff] }
 0xa01   : > { %v3358_v50 = vadd.f32 %v3350_v34, %v3294_v8  ;;  %v3684_v14 = vsel %vm7963_vm3, %v7962_v43, %v7961_v37  ;;  %v3512_v20 = vsel %vm598_vm4, %v7225_v22, %v3510_v39  ;;  %v3623_v61 = vsel %vm7964_vm15, %v7152_v15, %v7247_v51  ;;  %vm7967_vm4 = vmmov %vm7954_vm1 }
 0xa02   : > { %v3413_v38 = vadd.f32 %v3405_v13, %v3357_v1  ;;  %v3635_v13 = vmul.f32 %v3628_v10, %v7934_v2  ;;  %v3570_v22 = vsel %vm7966_vm11, %v7952_v44, %v3562_v62  ;;  %v3568_v39 = vsel %vm7967_vm4, %v3562_v62, %v3566_v12  ;;  %v7971_v44 = vld [vmem:[#allocation11_spill] sm:$0xff] }
 0xa03   : > { %v3414_v34 = vadd.f32 %v3406_v47, %v3358_v50  ;;  %v3574_v2 = vsel %vm7968_vm8, %v3566_v12, %v7953_v63  ;;  %v3595_v15 = vmul.f32 %v7969_v57, %v3579_v55  ;;  %v3691_v51 = vmul.f32 %v3684_v14, %v7960_v28 }
 0xa04   : > { %v3469_v29 = vadd.f32 %v3461_v26, %v3413_v38  ;;  %v3525_v23 = vmul.f32 %v3512_v20, %v6047_v54  ;;  %v3633_v8 = vmul.f32 %v3623_v61, %v7970_v41  ;;  %v3688_v1 = vmul.f32 %v3681_v33, %v7971_v44 }
 0xa05   : > { %v3470_v9 = vadd.f32 %v3462_v11, %v3414_v34  ;;  %v3630_v62 = vsel %vm7972_vm6, %v7252_v45, %v7957_v56  ;;  %v3580_v47 = vmul.f32 %v3570_v22, %v7920_v21  ;;  %v3679_v12 = vsel %vm7973_vm12, %v7276_v53, %v7284_v24 }
 0xa06   : > { %v3618_v5 = vpop.permute.xlu1 %3617  ;;  %v3685_v54 = vsel %vm7974_vm10, %v7284_v24, %v7950_v17  ;;  %v3581_v46 = vmul.f32 %v3568_v39, %v7921_v59  ;;  %v3582_v63 = vmul.f32 %v3574_v2, %v7929_v36  ;;  %v3493_v10 = vadd.f32 %v3485_v48, %v3469_v29  ;;  %v7978_v36 = vld [vmem:[#allocation56_spill] sm:$0xff]  ;;  %v7979_v48 = vld [vmem:[#allocation57_spill] sm:$0xff] }
 0xa07   : > { %v3494_v16 = vadd.f32 %v3486_v25, %v3470_v9  ;;  %v3624_v21 = vsel %vm7975_vm5, %v3618_v5, %v7252_v45  ;;  %v3626_v56 = vsel %vm7976_vm7, %v7956_v60, %v3618_v5  ;;  %v3638_v50 = vmul.f32 %v3630_v62, %v7937_v19  ;;  %v3697_v5 = vpop.permute.xlu2 %3696 }
 0xa08   : > { %v3541_v38 = vmul.f32 %v6976_v0, %v3525_v23  ;;  %v3542_v24 = vmul.f32 %v6976_v0, %v3526_v42  ;;  %v3682_v59 = vsel %vm7977_vm13, %v7961_v37, %v7282_v4  ;;  %v3689_v17 = vmul.f32 %v3679_v12, %v7978_v36 }
 0xa09   : > { %v3690_v45 = vmul.f32 %v3685_v54, %v7979_v48  ;;  %v3596_v11 = vmul.f32 %v7969_v57, %v3580_v47  ;;  %v3649_v60 = vmul.f32 %v7304_v58, %v3633_v8  ;;  %v3597_v19 = vmul.f32 %v7969_v57, %v3581_v46 }
 0xa0a   : > { %v3598_v3 = vmul.f32 %v7969_v57, %v3582_v63  ;;  %v3636_v0 = vmul.f32 %v3626_v56, %v7936_v7  ;;  %v3637_v25 = vmul.f32 %v3624_v21, %v7970_v41  ;;  %v3680_v28 = vsel %vm7980_vm14, %v7282_v4, %v3678_v18 }
 0xa0b   : > { %v3686_v55 = vsel %vm7951_vm0, %v3678_v18, %v7962_v43  ;;  %v3549_v37 = vadd.f32 %v3541_v38, %v3493_v10  ;;  %v3550_v14 = vadd.f32 %v3542_v24, %v3494_v16  ;;  %v3604_v34 = vadd.f32 %v3596_v11, %v7249_v40 }
 0xa0c   : > { %v3703_v61 = vmul.f32 %v3697_v5, %v3687_v32  ;;  %v3704_v7 = vmul.f32 %v3697_v5, %v3688_v1  ;;  %v3705_v33 = vmul.f32 %v3697_v5, %v3689_v17  ;;  %v3706_v22 = vmul.f32 %v3697_v5, %v3690_v45 }
 0xa0d   : > { %v3605_v29 = vadd.f32 %v3597_v19, %v3549_v37  ;;  %v3606_v9 = vadd.f32 %v3598_v3, %v3550_v14  ;;  %v3603_v4 = vadd.f32 %v3595_v15, %v7371_v35  ;;  %v3692_v39 = vmul.f32 %v3682_v59, %v7971_v44 }
 0xa0e   : > { %v3645_v53 = vpop.permute.xlu1 %3644  ;;  %v3657_v49 = vadd.f32 %v3649_v60, %v7270_v27  ;;  %v3693_v43 = vmul.f32 %v3680_v28, %v7978_v36  ;;  %v3694_v18 = vmul.f32 %v3686_v55, %v7979_v48  ;;  %v3711_v1 = vadd.f32 %v3703_v61, %v7309_v30 }
 0xa0f   : > { %v3651_v58 = vmul.f32 %v3645_v53, %v3635_v13  ;;  %v3652_v26 = vmul.f32 %v3645_v53, %v3636_v0  ;;  %v3653_v20 = vmul.f32 %v3645_v53, %v3637_v25  ;;  %v3654_v6 = vmul.f32 %v3645_v53, %v3638_v50  ;;  %v3750_v3 = vpop.permute.xlu2 %3749 }
 0xa10   : > { %v3712_v35 = vadd.f32 %v3704_v7, %v7311_v52  ;;  %v3713_v15 = vadd.f32 %v3705_v33, %v3657_v49  ;;  %v3714_v27 = vadd.f32 %v3706_v22, %v7313_v31  ;;  %vm3783_vm1 = vcmask 1040384  }
 0xa11   : > { %v3659_v2 = vadd.f32 %v3651_v58, %v3603_v4  ;;  %v3660_v57 = vadd.f32 %v3652_v26, %v3604_v34  ;;  %v3661_v40 = vadd.f32 %v3653_v20, %v3605_v29  ;;  %v3662_v32 = vadd.f32 %v3654_v6, %v3606_v9 }
 0xa12   : > { %vm3787_vm3 = vcmask 1041408  }
 0xa17   : > { %v3701_v13 = vpop.permute.xlu1 %3700 }
 0xa18   : > { %v3707_v23 = vmul.f32 %v3701_v13, %v3691_v51  ;;  %v3708_v42 = vmul.f32 %v3701_v13, %v3692_v39  ;;  %v3709_v41 = vmul.f32 %v3701_v13, %v3693_v43  ;;  %v3710_v8 = vmul.f32 %v3701_v13, %v3694_v18 }
 0xa1a   : > { %v3715_v44 = vadd.f32 %v3707_v23, %v3659_v2  ;;  %v3716_v62 = vadd.f32 %v3708_v42, %v3660_v57  ;;  %v3717_v47 = vadd.f32 %v3709_v41, %v3661_v40  ;;  %v3718_v12 = vadd.f32 %v3710_v8, %v3662_v32 }
 0xa1c   : > { %v3719_v54 = vadd.f32 %v3715_v44, %v3711_v1  ;;  %v3726_v46 = vadd.f32 %v3716_v62, %v3712_v35  ;;  %v3733_v63 = vadd.f32 %v3717_v47, %v3713_v15  ;;  %v3740_v16 = vadd.f32 %v3718_v12, %v3714_v27 }
 0xa1d   : > { %v7981_v35 = vlaneseq }
 0xa1e   : > { %v3720_v10 = vrot.slane %v3719_v54, 4  ;;  %v3727_v51 = vrot.slane %v3726_v46, 4  ;;  %v3734_v21 = vrot.slane %v3733_v63, 4  ;;  %v3741_v56 = vrot.slane %v3740_v16, 4 }
 0xa1f   : > { %vm3792_vm15 = vcmp.lt.s32.totalorder %v7981_v35, 512 }
 0xa20   : > { %v3721_v53 = vadd.f32 %v3720_v10, %v3719_v54  ;;  %v3728_v50 = vadd.f32 %v3727_v51, %v3726_v46  ;;  %v3735_v30 = vadd.f32 %v3734_v21, %v3733_v63  ;;  %v3742_v38 = vadd.f32 %v3741_v56, %v3740_v16 }
 0xa22   : > { %v3722_v52 = vrot.slane %v3721_v53, 2  ;;  %v3729_v24 = vrot.slane %v3728_v50, 2  ;;  %v3736_v59 = vrot.slane %v3735_v30, 2  ;;  %v3743_v31 = vrot.slane %v3742_v38, 2 }
 0xa24   : > { %v3723_v36 = vadd.f32 %v3722_v52, %v3721_v53  ;;  %v3730_v17 = vadd.f32 %v3729_v24, %v3728_v50  ;;  %v3737_v48 = vadd.f32 %v3736_v59, %v3735_v30  ;;  %v3744_v45 = vadd.f32 %v3743_v31, %v3742_v38 }
 0xa26   : > { %v3724_v11 = vrot.slane %v3723_v36, 1  ;;  %v3731_v60 = vrot.slane %v3730_v17, 1  ;;  %v3738_v5 = vrot.slane %v3737_v48, 1  ;;  %v3745_v19 = vrot.slane %v3744_v45, 1 }
 0xa28   : > { %v3725_v0 = vadd.f32 %v3724_v11, %v3723_v36  ;;  %v3732_v25 = vadd.f32 %v3731_v60, %v3730_v17  ;;  %v3739_v28 = vadd.f32 %v3738_v5, %v3737_v48  ;;  %v3746_v55 = vadd.f32 %v3745_v19, %v3744_v45 }
 0xa2a   : > { %v3752_v37 = vadd.f32 %v3750_v3, %v3725_v0  ;;  %v3753_v14 = vadd.f32 %v3750_v3, %v3732_v25  ;;  %v3754_v58 = vadd.f32 %v3750_v3, %v3739_v28  ;;  %v3755_v26 = vadd.f32 %v3750_v3, %v3746_v55 }
 0xa2c   : > { %v3756_v20 = vsub.f32 0.0, %v3752_v37  ;;  %v3757_v6 = vsub.f32 0.0, %v3753_v14  ;;  %v3758_v34 = vsub.f32 0.0, %v3754_v58  ;;  %v3759_v61 = vsub.f32 0.0, %v3755_v26 }
 0xa2e   : > { %v3760_v7 = vmul.f32 1.442695, %v3756_v20  ;;  %v3762_v33 = vmul.f32 1.442695, %v3757_v6  ;;  %v3764_v22 = vmul.f32 1.442695, %v3758_v34 }
 0xa2f   : > { %v3766_v29 = vmul.f32 1.442695, %v3759_v61 }
 0xa30   : > { %4276 = vpow2.f32 %v3760_v7 }
 0xa31   : > { %4278 = vpow2.f32 %v3762_v33 }
 0xa32   : > { %4280 = vpow2.f32 %v3764_v22 }
 0xa33   : > { %4282 = vpow2.f32 %v3766_v29 }
 0xa36   : > { %v4277_v9 = vpop.eup %4276 }
 0xa37   : > { %v4279_v4 = vpop.eup %4278  ;;  %v3768_v39 = vadd.f32 1.0, %v4277_v9 }
 0xa38   : > { %v4281_v49 = vpop.eup %4280  ;;  %v3769_v43 = vadd.f32 1.0, %v4279_v4 }
 0xa39   : > { %v4283_v18 = vpop.eup %4282  ;;  %v3770_v13 = vadd.f32 1.0, %v4281_v49  ;;  %4284 = vrcp.f32 %v3768_v39 }
 0xa3a   : > { %v3771_v2 = vadd.f32 1.0, %v4283_v18  ;;  %4286 = vrcp.f32 %v3769_v43 }
 0xa3b   : > { %4288 = vrcp.f32 %v3770_v13 }
 0xa3c   : > { %4290 = vrcp.f32 %v3771_v2 }
 0xa3f   : > { %v4285_v57 = vpop.eup %4284 }
 0xa40   : > { %v4287_v40 = vpop.eup %4286 }
 0xa41   : > { %v4289_v32 = vpop.eup %4288  ;;  %v3780_v23 = vrot.slane %v4287_v40, 7 }
 0xa42   : > { %v4291_v42 = vpop.eup %4290  ;;  %v3781_v41 = vrot.slane %v4289_v32, 6 }
 0xa43   : > { %v3782_v8 = vrot.slane %v4291_v42, 5  ;;  %v3784_v1 = vsel %vm3783_vm1, %v4285_v57, %v3780_v23 }
 0xa45   : > { %v3786_v15 = vsel %vm3785_vm2, %v3781_v41, %v3782_v8 }
 0xa46   : > { %v3788_v27 = vsel %vm3787_vm3, %v3784_v1, %v3786_v15 }
 0xa47   : > { %3794 = vst.msk [vmem:[%s315_s19] sm:$0xf] %vm3792_vm15, %v3788_v27 }
 0xa48 PF: > { %s19_s27 = sadd.s32 1, %s4300_s27  }
 0xa49   : > { %p16_p4 = scmp.ge.s32.totalorder %s19_s27, 4  }
 0xa4b   :  { %18 = sbr.rel (!%p16_p4) target bundleno = 1 (0x1), region = 105 }

</bundles_post_ra>
